<compile_context>
chip_gen: v6e
topology: v6e:2x2x1
jax: 0.10.0
libtpu: 0.0.40
codegen_flags: <defaults>
</compile_context>

<pallas_src>
import functools

import jax
import jax.numpy as jnp
import numpy as np
from jax.experimental import pallas as pl
from jax.experimental.pallas import tpu as pltpu

_LN_EPS = 1e-5  # torch.nn.LayerNorm default


def _round_up(x, m):
    return (x + m - 1) // m * m


# ----------------------------------------------------------------------------
# Pallas kernels
# ----------------------------------------------------------------------------
def _conv_ln_relu_kernel(x_ref, w_ref, b_ref, g_ref, beta_ref, o_ref):
    # x: (TM, Kp) bf16 im2col patches, w: (Kp, N) bf16, b/g/beta: (1, N) f32.
    y = jnp.dot(x_ref[...], w_ref[...], preferred_element_type=jnp.float32)
    y = y + b_ref[...]
    # LayerNorm over channels (true N, unaffected by K zero-padding), in f32.
    mean = jnp.mean(y, axis=-1, keepdims=True)
    var = jnp.mean(jnp.square(y - mean), axis=-1, keepdims=True)
    y = (y - mean) * jax.lax.rsqrt(var + _LN_EPS)
    y = y * g_ref[...] + beta_ref[...]
    o_ref[...] = jnp.maximum(y, 0.0)


def _heads_kernel(f_ref, wht_ref, bh_ref, wv1_ref, bv1_ref, pool_ref,
                  wv2_ref, bv2_ref, heat_ref, val_ref):
    f = f_ref[...]                                                    # (B*HW, C)
    # Policy head, emitted lane-dense: (1, C) @ (C, B*HW) -> (1, B*HW).
    heat_ref[...] = (jnp.dot(wht_ref[...], f.T,
                             preferred_element_type=jnp.float32) + bh_ref[...])
    # Value head: 1x1 conv -> ReLU -> global average pool (pooling matmul)
    # -> final linear, fully fused; no per-batch grid steps.
    v = jnp.dot(f, wv1_ref[...], preferred_element_type=jnp.float32) + bv1_ref[...]
    v = jnp.maximum(v, 0.0)                                           # (B*HW, 32)
    pooled = jnp.dot(pool_ref[...], v, preferred_element_type=jnp.float32)  # (B, 32)
    val_ref[...] = (jnp.dot(pooled, wv2_ref[...],
                            preferred_element_type=jnp.float32) + bv2_ref[...])


# ----------------------------------------------------------------------------
# Pallas wrappers
# ----------------------------------------------------------------------------
def conv_ln_relu(patches, w_mat, b, gamma, beta, *, block_m=512):
    """Fused im2col-matmul + bias + LayerNorm(channels) + ReLU."""
    M, K = patches.shape
    N = w_mat.shape[1]

    # bf16 matmul operands: 2x MXU rate, half the HBM/VMEM traffic.
    patches = patches.astype(jnp.bfloat16)
    w_mat = w_mat.astype(jnp.bfloat16)

    # Lane-align the contraction axis K to a multiple of 128 (exact: zeros
    # contribute nothing to the dot; LayerNorm is over N so it is unaffected).
    Kp = _round_up(K, 128)
    if Kp != K:
        patches = jnp.pad(patches, ((0, 0), (0, Kp - K)))
        w_mat = jnp.pad(w_mat, ((0, Kp - K), (0, 0)))

    # Tile + pipeline over the row axis so large batches never blow VMEM.
    tm = min(block_m, _round_up(M, 8))
    grid_m = pl.cdiv(M, tm)
    Mp = grid_m * tm
    if Mp != M:
        patches = jnp.pad(patches, ((0, Mp - M), (0, 0)))

    flops = 2 * Mp * Kp * N
    bytes_accessed = Mp * Kp * 2 + Kp * N * 2 + Mp * N * 4 + 3 * N * 4

    out = pl.pallas_call(
        _conv_ln_relu_kernel,
        out_shape=jax.ShapeDtypeStruct((Mp, N), jnp.float32),
        grid=(grid_m,),
        in_specs=[
            pl.BlockSpec((tm, Kp), lambda i: (i, 0)),
            pl.BlockSpec((Kp, N), lambda i: (0, 0)),
            pl.BlockSpec((1, N), lambda i: (0, 0)),
            pl.BlockSpec((1, N), lambda i: (0, 0)),
            pl.BlockSpec((1, N), lambda i: (0, 0)),
        ],
        out_specs=pl.BlockSpec((tm, N), lambda i: (i, 0)),
        compiler_params=pltpu.CompilerParams(
            dimension_semantics=("parallel",),       # megacore / 2 TCs on v7x
            vmem_limit_bytes=32 * 1024 * 1024,       # explicit scoped-VMEM budget
        ),
        cost_estimate=pl.CostEstimate(
            flops=flops, transcendentals=Mp, bytes_accessed=bytes_accessed),
    )(patches, w_mat,
      b.reshape(1, N).astype(jnp.float32),
      gamma.reshape(1, N).astype(jnp.float32),
      beta.reshape(1, N).astype(jnp.float32))
    return out[:M]


def heads(feats_flat, batch, hw, wh, bh, wv1, bv1, wv2, bv2):
    """Fused policy/value heads on the flat (B*HW, C) feature matrix."""
    M, C = feats_flat.shape
    nv = wv1.shape[1]
    # Block-diagonal average-pool matrix: pool[b, b*hw:(b+1)*hw] = 1/hw.
    pool = jnp.kron(jnp.eye(batch, dtype=jnp.float32),
                    jnp.full((1, hw), 1.0 / hw, jnp.float32))         # (B, B*HW)
    heat_t, val = pl.pallas_call(
        _heads_kernel,
        out_shape=[jax.ShapeDtypeStruct((1, M), jnp.float32),
                   jax.ShapeDtypeStruct((batch, 1), jnp.float32)],
        in_specs=[pl.BlockSpec(memory_space=pltpu.MemorySpace.VMEM)] * 8,
        out_specs=[pl.BlockSpec(memory_space=pltpu.MemorySpace.VMEM)] * 2,
        compiler_params=pltpu.CompilerParams(vmem_limit_bytes=32 * 1024 * 1024),
    )(feats_flat, wh.reshape(1, C), bh.reshape(1, 1),
      wv1, bv1.reshape(1, nv), pool, wv2, bv2.reshape(1, 1))
    return heat_t, val


# ----------------------------------------------------------------------------
# Glue: im2col, parameter init, full forward
# ----------------------------------------------------------------------------
def im2col(x, k, s, p):
    """x: (B, H, W, C) -> (B*Ho*Wo, k*k*C) patches ordered (kh, kw, cin)."""
    x = jnp.pad(x, ((0, 0), (p, p), (p, p), (0, 0)))
    B, Hp, Wp, C = x.shape
    Ho = (Hp - k) // s + 1
    Wo = (Wp - k) // s + 1
    cols = []
    for di in range(k):
        for dj in range(k):
            cols.append(x[:, di:di + s * Ho:s, dj:dj + s * Wo:s, :])
    patches = jnp.concatenate(cols, axis=-1)        # (B, Ho, Wo, k*k*C)
    return patches.reshape(B * Ho * Wo, k * k * C), Ho, Wo


def init_params(key):
    """Deterministic synthetic parameters (matmul-layout conv weights)."""
    ks = jax.random.split(key, 10)

    def w(k, shape, scale=0.05):
        return scale * jax.random.normal(k, shape, jnp.float32)

    params = {
        # conv1: 3->32, k5   -> weight matrix (5*5*3, 32), ordering (kh, kw, cin)
        "w1": w(ks[0], (5 * 5 * 3, 32)), "b1": w(ks[1], (32,)),
        "g1": jnp.ones((32,), jnp.float32), "be1": jnp.zeros((32,), jnp.float32),
        # conv2: 32->64, k3
        "w2": w(ks[2], (3 * 3 * 32, 64)), "b2": w(ks[3], (64,)),
        "g2": jnp.ones((64,), jnp.float32), "be2": jnp.zeros((64,), jnp.float32),
        # conv3: 64->128, k3
        "w3": w(ks[4], (3 * 3 * 64, 128)), "b3": w(ks[5], (128,)),
        "g3": jnp.ones((128,), jnp.float32), "be3": jnp.zeros((128,), jnp.float32),
        # policy head 1x1 conv: 128->1
        "wh": w(ks[6], (128, 1)), "bh": w(ks[7], (1,)),
        # value head: 1x1 conv 128->32, linear 32->1
        "wv1": w(ks[8], (128, 32)), "bv1": jnp.zeros((32,), jnp.float32),
        "wv2": w(ks[9], (32, 1)), "bv2": jnp.zeros((1,), jnp.float32),
    }
    return params


def ppo_planner_forward(img, params):
    """Returns (heatmap_logits (B, Hf, Wf), value (B, 1))."""
    if img.ndim == 4 and img.shape[1] != 3 and img.shape[3] == 3:
        x = img                                     # already NHWC
    elif img.ndim == 4 and img.shape[1] == 3:
        x = jnp.transpose(img, (0, 2, 3, 1))        # NCHW -> NHWC
    else:
        raise ValueError(f"Input image has unexpected shape: {img.shape}")
    x = x.astype(jnp.float32)
    B = x.shape[0]

    # feature extractor: (conv + LayerNorm2d + ReLU) x 3, each fused in Pallas
    p1, H1, W1 = im2col(x, 5, 2, 2)
    y1 = conv_ln_relu(p1, params["w1"], params["b1"], params["g1"], params["be1"])
    y1 = y1.reshape(B, H1, W1, 32)

    p2, H2, W2 = im2col(y1, 3, 2, 1)
    y2 = conv_ln_relu(p2, params["w2"], params["b2"], params["g2"], params["be2"])
    y2 = y2.reshape(B, H2, W2, 64)

    p3, H3, W3 = im2col(y2, 3, 2, 1)
    feats = conv_ln_relu(p3, params["w3"], params["b3"], params["g3"], params["be3"])
    # feats is already the flat (B*H3*W3, 128) matrix the fused heads consume.

    heat_t, val = heads(feats, B, H3 * W3, params["wh"], params["bh"],
                        params["wv1"], params["bv1"], params["wv2"], params["bv2"])
    heatmap_logits = heat_t.reshape(B, H3, W3)
    value = val.reshape(B, 1)
    return heatmap_logits, value


# ----------------------------------------------------------------------------
# Pure-JAX (f32) reference for validation
# ----------------------------------------------------------------------------
def ref_forward(img, params):
    x = jnp.transpose(img, (0, 2, 3, 1)).astype(jnp.float32)

    def conv(x, w_mat, b, k, s, p):
        cin, cout = x.shape[-1], w_mat.shape[1]
        w = w_mat.reshape(k, k, cin, cout)
        return jax.lax.conv_general_dilated(
            x, w, (s, s), ((p, p), (p, p)),
            dimension_numbers=("NHWC", "HWIO", "NHWC")) + b

    def ln_relu(y, g, be):
        m = jnp.mean(y, -1, keepdims=True)
        v = jnp.mean((y - m) ** 2, -1, keepdims=True)
        return jnp.maximum((y - m) / jnp.sqrt(v + _LN_EPS) * g + be, 0.0)

    y = ln_relu(conv(x, params["w1"], params["b1"], 5, 2, 2), params["g1"], params["be1"])
    y = ln_relu(conv(y, params["w2"], params["b2"], 3, 2, 1), params["g2"], params["be2"])
    y = ln_relu(conv(y, params["w3"], params["b3"], 3, 2, 1), params["g3"], params["be3"])

    heat = (jnp.einsum("bhwc,co->bhwo", y, params["wh"]) + params["bh"])[..., 0]
    v = jnp.maximum(jnp.einsum("bhwc,co->bhwo", y, params["wv1"]) + params["bv1"], 0.0)
    pooled = jnp.mean(v, axis=(1, 2))
    value = pooled @ params["wv2"] + params["bv2"]
    return heat, value


# ----------------------------------------------------------------------------
if __name__ == "__main__":
    key = jax.random.PRNGKey(0)
    k_param, k_img = jax.random.split(key)
    params = init_params(k_param)

    # Small input consistent with the module: (B, 3, H, W); 32x32 -> 4x4 features.
    img = jax.random.normal(k_img, (2, 3, 32, 32), jnp.float32)

    fwd = jax.jit(ppo_planner_forward)
    heatmap_logits, value = fwd(img, params)
    jax.block_until_ready((heatmap_logits, value))

    # Sanity-check against the pure-JAX f32 reference (the kernels use bf16
    # matmul operands with f32 accumulation, hence the tolerance).
    ref_heat, ref_value = ref_forward(img, params)
    np.testing.assert_allclose(np.asarray(heatmap_logits), np.asarray(ref_heat),
                               atol=5e-2, rtol=5e-2)
    np.testing.assert_allclose(np.asarray(value), np.asarray(ref_value),
                               atol=5e-2, rtol=5e-2)

    assert heatmap_logits.shape == (2, 4, 4)
    assert value.shape == (2, 1)
    print("KERNEL_OK")
</pallas_src>

<mosaic_0001>
module attributes {stable_mosaic.version = 11 : i64} {
  func.func @_conv_ln_relu_kernel(%arg0: i32, %arg1: memref<512x128xbf16, #tpu.memory_space<vmem>>, %arg2: memref<128x32xbf16, #tpu.memory_space<vmem>>, %arg3: memref<1x32xf32, #tpu.memory_space<vmem>>, %arg4: memref<1x32xf32, #tpu.memory_space<vmem>>, %arg5: memref<1x32xf32, #tpu.memory_space<vmem>>, %arg6: memref<512x32xf32, #tpu.memory_space<vmem>>) attributes {dimension_semantics = [#tpu.dimension_semantics<parallel>], iteration_bounds = array<i64: 1>, scalar_prefetch = 0 : i64, scratch_operands = 0 : i64, tpu.core_type = #tpu.core_type<tc>, window_params = [{transform_indices = @transform_0, window_bounds = array<i64: 512, 128>}, {pipeline_mode = #tpu.pipeline_mode<synchronous>, transform_indices = @transform_1, window_bounds = array<i64: 128, 32>}, {pipeline_mode = #tpu.pipeline_mode<synchronous>, transform_indices = @transform_2, window_bounds = array<i64: 1, 32>}, {pipeline_mode = #tpu.pipeline_mode<synchronous>, transform_indices = @transform_3, window_bounds = array<i64: 1, 32>}, {pipeline_mode = #tpu.pipeline_mode<synchronous>, transform_indices = @transform_4, window_bounds = array<i64: 1, 32>}, {transform_indices = @transform_5, window_bounds = array<i64: 512, 32>}]} {
    %c0 = arith.constant 0 : index
    %c0_0 = arith.constant 0 : index
    %0 = vector.load %arg1[%c0, %c0_0] : memref<512x128xbf16, #tpu.memory_space<vmem>>, vector<512x128xbf16>
    %c0_1 = arith.constant 0 : index
    %c0_2 = arith.constant 0 : index
    %1 = vector.load %arg2[%c0_1, %c0_2] : memref<128x32xbf16, #tpu.memory_space<vmem>>, vector<128x32xbf16>
    %cst = arith.constant dense<0.000000e+00> : vector<512x32xf32>
    %2 = tpu.matmul %0, %1, %cst {dimension_numbers = #tpu.dot_dimension_numbers<[1], [0], [0], [1], [0, 0, 1, 1], [], []>} : vector<512x128xbf16>, vector<128x32xbf16>, vector<512x32xf32> -> vector<512x32xf32>
    %c0_3 = arith.constant 0 : index
    %c0_4 = arith.constant 0 : index
    %3 = vector.load %arg3[%c0_3, %c0_4] : memref<1x32xf32, #tpu.memory_space<vmem>>, vector<1x32xf32>
    %4 = vector.broadcast %3 : vector<1x32xf32> to vector<512x32xf32>
    %5 = arith.addf %2, %4 : vector<512x32xf32>
    %cst_5 = arith.constant dense<0.000000e+00> : vector<512xf32>
    %6 = vector.multi_reduction <add>, %5, %cst_5 [1] : vector<512x32xf32> to vector<512xf32>
    %7 = vector.shape_cast %6 : vector<512xf32> to vector<512x1xf32>
    %cst_6 = arith.constant 3.200000e+01 : f32
    %8 = vector.broadcast %cst_6 : f32 to vector<512x1xf32>
    %9 = arith.divf %7, %8 : vector<512x1xf32>
    %10 = vector.broadcast %9 : vector<512x1xf32> to vector<512x32xf32>
    %11 = arith.subf %5, %10 : vector<512x32xf32>
    %12 = arith.mulf %11, %11 : vector<512x32xf32>
    %cst_7 = arith.constant dense<0.000000e+00> : vector<512xf32>
    %13 = vector.multi_reduction <add>, %12, %cst_7 [1] : vector<512x32xf32> to vector<512xf32>
    %14 = vector.shape_cast %13 : vector<512xf32> to vector<512x1xf32>
    %cst_8 = arith.constant 3.200000e+01 : f32
    %15 = vector.broadcast %cst_8 : f32 to vector<512x1xf32>
    %16 = arith.divf %14, %15 : vector<512x1xf32>
    %17 = vector.broadcast %9 : vector<512x1xf32> to vector<512x32xf32>
    %18 = arith.subf %5, %17 : vector<512x32xf32>
    %cst_9 = arith.constant 9.99999974E-6 : f32
    %19 = vector.broadcast %cst_9 : f32 to vector<512x1xf32>
    %20 = arith.addf %16, %19 : vector<512x1xf32>
    %21 = math.rsqrt %20 : vector<512x1xf32>
    %22 = vector.broadcast %21 : vector<512x1xf32> to vector<512x32xf32>
    %23 = arith.mulf %18, %22 : vector<512x32xf32>
    %c0_10 = arith.constant 0 : index
    %c0_11 = arith.constant 0 : index
    %24 = vector.load %arg4[%c0_10, %c0_11] : memref<1x32xf32, #tpu.memory_space<vmem>>, vector<1x32xf32>
    %25 = vector.broadcast %24 : vector<1x32xf32> to vector<512x32xf32>
    %26 = arith.mulf %23, %25 : vector<512x32xf32>
    %c0_12 = arith.constant 0 : index
    %c0_13 = arith.constant 0 : index
    %27 = vector.load %arg5[%c0_12, %c0_13] : memref<1x32xf32, #tpu.memory_space<vmem>>, vector<1x32xf32>
    %28 = vector.broadcast %27 : vector<1x32xf32> to vector<512x32xf32>
    %29 = arith.addf %26, %28 : vector<512x32xf32>
    %cst_14 = arith.constant 0.000000e+00 : f32
    %30 = vector.broadcast %cst_14 : f32 to vector<512x32xf32>
    %31 = arith.maximumf %29, %30 : vector<512x32xf32>
    %c0_15 = arith.constant 0 : index
    %c0_16 = arith.constant 0 : index
    %32 = vector.load %arg6[%c0_15, %c0_16] : memref<512x32xf32, #tpu.memory_space<vmem>>, vector<512x32xf32>
    tpu.vector_store %arg6[%c0_15, %c0_16], %31 {strides = array<i32>} : memref<512x32xf32, #tpu.memory_space<vmem>>, vector<512x32xf32>,
    return
  }
  func.func @transform_0(%arg0: i32) -> (i32, i32) {
    %c0_i32 = arith.constant 0 : i32
    %c0_i32_0 = arith.constant 0 : i32
    return %arg0, %c0_i32 : i32, i32
  }
  func.func @transform_1(%arg0: i32) -> (i32, i32) {
    %c0_i32 = arith.constant 0 : i32
    %c0_i32_0 = arith.constant 0 : i32
    %c0_i32_1 = arith.constant 0 : i32
    return %c0_i32, %c0_i32_0 : i32, i32
  }
  func.func @transform_2(%arg0: i32) -> (i32, i32) {
    %c0_i32 = arith.constant 0 : i32
    %c0_i32_0 = arith.constant 0 : i32
    %c0_i32_1 = arith.constant 0 : i32
    return %c0_i32, %c0_i32_0 : i32, i32
  }
  func.func @transform_3(%arg0: i32) -> (i32, i32) {
    %c0_i32 = arith.constant 0 : i32
    %c0_i32_0 = arith.constant 0 : i32
    %c0_i32_1 = arith.constant 0 : i32
    return %c0_i32, %c0_i32_0 : i32, i32
  }
  func.func @transform_4(%arg0: i32) -> (i32, i32) {
    %c0_i32 = arith.constant 0 : i32
    %c0_i32_0 = arith.constant 0 : i32
    %c0_i32_1 = arith.constant 0 : i32
    return %c0_i32, %c0_i32_0 : i32, i32
  }
  func.func @transform_5(%arg0: i32) -> (i32, i32) {
    %c0_i32 = arith.constant 0 : i32
    %c0_i32_0 = arith.constant 0 : i32
    return %arg0, %c0_i32 : i32, i32
  }
}

module attributes {stable_mosaic.version = 11 : i64} {
  func.func @_conv_ln_relu_kernel(%arg0: i32, %arg1: memref<128x384xbf16, #tpu.memory_space<vmem>>, %arg2: memref<384x64xbf16, #tpu.memory_space<vmem>>, %arg3: memref<1x64xf32, #tpu.memory_space<vmem>>, %arg4: memref<1x64xf32, #tpu.memory_space<vmem>>, %arg5: memref<1x64xf32, #tpu.memory_space<vmem>>, %arg6: memref<128x64xf32, #tpu.memory_space<vmem>>) attributes {dimension_semantics = [#tpu.dimension_semantics<parallel>], iteration_bounds = array<i64: 1>, scalar_prefetch = 0 : i64, scratch_operands = 0 : i64, tpu.core_type = #tpu.core_type<tc>, window_params = [{transform_indices = @transform_0, window_bounds = array<i64: 128, 384>}, {pipeline_mode = #tpu.pipeline_mode<synchronous>, transform_indices = @transform_1, window_bounds = array<i64: 384, 64>}, {pipeline_mode = #tpu.pipeline_mode<synchronous>, transform_indices = @transform_2, window_bounds = array<i64: 1, 64>}, {pipeline_mode = #tpu.pipeline_mode<synchronous>, transform_indices = @transform_3, window_bounds = array<i64: 1, 64>}, {pipeline_mode = #tpu.pipeline_mode<synchronous>, transform_indices = @transform_4, window_bounds = array<i64: 1, 64>}, {transform_indices = @transform_5, window_bounds = array<i64: 128, 64>}]} {
    %c0 = arith.constant 0 : index
    %c0_0 = arith.constant 0 : index
    %0 = vector.load %arg1[%c0, %c0_0] : memref<128x384xbf16, #tpu.memory_space<vmem>>, vector<128x384xbf16>
    %c0_1 = arith.constant 0 : index
    %c0_2 = arith.constant 0 : index
    %1 = vector.load %arg2[%c0_1, %c0_2] : memref<384x64xbf16, #tpu.memory_space<vmem>>, vector<384x64xbf16>
    %cst = arith.constant dense<0.000000e+00> : vector<128x64xf32>
    %2 = tpu.matmul %0, %1, %cst {dimension_numbers = #tpu.dot_dimension_numbers<[1], [0], [0], [1], [0, 0, 1, 1], [], []>} : vector<128x384xbf16>, vector<384x64xbf16>, vector<128x64xf32> -> vector<128x64xf32>
    %c0_3 = arith.constant 0 : index
    %c0_4 = arith.constant 0 : index
    %3 = vector.load %arg3[%c0_3, %c0_4] : memref<1x64xf32, #tpu.memory_space<vmem>>, vector<1x64xf32>
    %4 = vector.broadcast %3 : vector<1x64xf32> to vector<128x64xf32>
    %5 = arith.addf %2, %4 : vector<128x64xf32>
    %cst_5 = arith.constant dense<0.000000e+00> : vector<128xf32>
    %6 = vector.multi_reduction <add>, %5, %cst_5 [1] : vector<128x64xf32> to vector<128xf32>
    %7 = vector.shape_cast %6 : vector<128xf32> to vector<128x1xf32>
    %cst_6 = arith.constant 6.400000e+01 : f32
    %8 = vector.broadcast %cst_6 : f32 to vector<128x1xf32>
    %9 = arith.divf %7, %8 : vector<128x1xf32>
    %10 = vector.broadcast %9 : vector<128x1xf32> to vector<128x64xf32>
    %11 = arith.subf %5, %10 : vector<128x64xf32>
    %12 = arith.mulf %11, %11 : vector<128x64xf32>
    %cst_7 = arith.constant dense<0.000000e+00> : vector<128xf32>
    %13 = vector.multi_reduction <add>, %12, %cst_7 [1] : vector<128x64xf32> to vector<128xf32>
    %14 = vector.shape_cast %13 : vector<128xf32> to vector<128x1xf32>
    %cst_8 = arith.constant 6.400000e+01 : f32
    %15 = vector.broadcast %cst_8 : f32 to vector<128x1xf32>
    %16 = arith.divf %14, %15 : vector<128x1xf32>
    %17 = vector.broadcast %9 : vector<128x1xf32> to vector<128x64xf32>
    %18 = arith.subf %5, %17 : vector<128x64xf32>
    %cst_9 = arith.constant 9.99999974E-6 : f32
    %19 = vector.broadcast %cst_9 : f32 to vector<128x1xf32>
    %20 = arith.addf %16, %19 : vector<128x1xf32>
    %21 = math.rsqrt %20 : vector<128x1xf32>
    %22 = vector.broadcast %21 : vector<128x1xf32> to vector<128x64xf32>
    %23 = arith.mulf %18, %22 : vector<128x64xf32>
    %c0_10 = arith.constant 0 : index
    %c0_11 = arith.constant 0 : index
    %24 = vector.load %arg4[%c0_10, %c0_11] : memref<1x64xf32, #tpu.memory_space<vmem>>, vector<1x64xf32>
    %25 = vector.broadcast %24 : vector<1x64xf32> to vector<128x64xf32>
    %26 = arith.mulf %23, %25 : vector<128x64xf32>
    %c0_12 = arith.constant 0 : index
    %c0_13 = arith.constant 0 : index
    %27 = vector.load %arg5[%c0_12, %c0_13] : memref<1x64xf32, #tpu.memory_space<vmem>>, vector<1x64xf32>
    %28 = vector.broadcast %27 : vector<1x64xf32> to vector<128x64xf32>
    %29 = arith.addf %26, %28 : vector<128x64xf32>
    %cst_14 = arith.constant 0.000000e+00 : f32
    %30 = vector.broadcast %cst_14 : f32 to vector<128x64xf32>
    %31 = arith.maximumf %29, %30 : vector<128x64xf32>
    %c0_15 = arith.constant 0 : index
    %c0_16 = arith.constant 0 : index
    %32 = vector.load %arg6[%c0_15, %c0_16] : memref<128x64xf32, #tpu.memory_space<vmem>>, vector<128x64xf32>
    tpu.vector_store %arg6[%c0_15, %c0_16], %31 {strides = array<i32>} : memref<128x64xf32, #tpu.memory_space<vmem>>, vector<128x64xf32>,
    return
  }
  func.func @transform_0(%arg0: i32) -> (i32, i32) {
    %c0_i32 = arith.constant 0 : i32
    %c0_i32_0 = arith.constant 0 : i32
    return %arg0, %c0_i32 : i32, i32
  }
  func.func @transform_1(%arg0: i32) -> (i32, i32) {
    %c0_i32 = arith.constant 0 : i32
    %c0_i32_0 = arith.constant 0 : i32
    %c0_i32_1 = arith.constant 0 : i32
    return %c0_i32, %c0_i32_0 : i32, i32
  }
  func.func @transform_2(%arg0: i32) -> (i32, i32) {
    %c0_i32 = arith.constant 0 : i32
    %c0_i32_0 = arith.constant 0 : i32
    %c0_i32_1 = arith.constant 0 : i32
    return %c0_i32, %c0_i32_0 : i32, i32
  }
  func.func @transform_3(%arg0: i32) -> (i32, i32) {
    %c0_i32 = arith.constant 0 : i32
    %c0_i32_0 = arith.constant 0 : i32
    %c0_i32_1 = arith.constant 0 : i32
    return %c0_i32, %c0_i32_0 : i32, i32
  }
  func.func @transform_4(%arg0: i32) -> (i32, i32) {
    %c0_i32 = arith.constant 0 : i32
    %c0_i32_0 = arith.constant 0 : i32
    %c0_i32_1 = arith.constant 0 : i32
    return %c0_i32, %c0_i32_0 : i32, i32
  }
  func.func @transform_5(%arg0: i32) -> (i32, i32) {
    %c0_i32 = arith.constant 0 : i32
    %c0_i32_0 = arith.constant 0 : i32
    return %arg0, %c0_i32 : i32, i32
  }
}

module attributes {stable_mosaic.version = 11 : i64} {
  func.func @_heads_kernel(%arg0: memref<32x128xf32, #tpu.memory_space<vmem>>, %arg1: memref<1x128xf32, #tpu.memory_space<vmem>>, %arg2: memref<1x1xf32, #tpu.memory_space<vmem>>, %arg3: memref<128x32xf32, #tpu.memory_space<vmem>>, %arg4: memref<1x32xf32, #tpu.memory_space<vmem>>, %arg5: memref<2x32xf32, #tpu.memory_space<vmem>>, %arg6: memref<32x1xf32, #tpu.memory_space<vmem>>, %arg7: memref<1x1xf32, #tpu.memory_space<vmem>>, %arg8: memref<1x32xf32, #tpu.memory_space<vmem>>, %arg9: memref<2x1xf32, #tpu.memory_space<vmem>>) attributes {dimension_semantics = [], scalar_prefetch = 0 : i64, scratch_operands = 0 : i64, tpu.core_type = #tpu.core_type<tc>} {
    %c0 = arith.constant 0 : index
    %c0_0 = arith.constant 0 : index
    %0 = vector.load %arg0[%c0, %c0_0] : memref<32x128xf32, #tpu.memory_space<vmem>>, vector<32x128xf32>
    %c0_1 = arith.constant 0 : index
    %c0_2 = arith.constant 0 : index
    %1 = vector.load %arg1[%c0_1, %c0_2] : memref<1x128xf32, #tpu.memory_space<vmem>>, vector<1x128xf32>
    %2 = tpu.transpose %0, [1, 0] : vector<32x128xf32> -> vector<128x32xf32>
    %cst = arith.constant dense<0.000000e+00> : vector<1x32xf32>
    %3 = tpu.matmul %1, %2, %cst {dimension_numbers = #tpu.dot_dimension_numbers<[1], [0], [0], [1], [0, 0, 1, 1], [], []>} : vector<1x128xf32>, vector<128x32xf32>, vector<1x32xf32> -> vector<1x32xf32>
    %c0_3 = arith.constant 0 : index
    %c0_4 = arith.constant 0 : index
    %4 = vector.load %arg2[%c0_3, %c0_4] : memref<1x1xf32, #tpu.memory_space<vmem>>, vector<1x1xf32>
    %5 = vector.broadcast %4 : vector<1x1xf32> to vector<1x32xf32>
    %6 = arith.addf %3, %5 : vector<1x32xf32>
    %c0_5 = arith.constant 0 : index
    %c0_6 = arith.constant 0 : index
    %7 = vector.load %arg8[%c0_5, %c0_6] : memref<1x32xf32, #tpu.memory_space<vmem>>, vector<1x32xf32>
    tpu.vector_store %arg8[%c0_5, %c0_6], %6 {strides = array<i32>} : memref<1x32xf32, #tpu.memory_space<vmem>>, vector<1x32xf32>,
    %c0_7 = arith.constant 0 : index
    %c0_8 = arith.constant 0 : index
    %8 = vector.load %arg3[%c0_7, %c0_8] : memref<128x32xf32, #tpu.memory_space<vmem>>, vector<128x32xf32>
    %cst_9 = arith.constant dense<0.000000e+00> : vector<32x32xf32>
    %9 = tpu.matmul %0, %8, %cst_9 {dimension_numbers = #tpu.dot_dimension_numbers<[1], [0], [0], [1], [0, 0, 1, 1], [], []>} : vector<32x128xf32>, vector<128x32xf32>, vector<32x32xf32> -> vector<32x32xf32>
    %c0_10 = arith.constant 0 : index
    %c0_11 = arith.constant 0 : index
    %10 = vector.load %arg4[%c0_10, %c0_11] : memref<1x32xf32, #tpu.memory_space<vmem>>, vector<1x32xf32>
    %11 = vector.broadcast %10 : vector<1x32xf32> to vector<32x32xf32>
    %12 = arith.addf %9, %11 : vector<32x32xf32>
    %cst_12 = arith.constant 0.000000e+00 : f32
    %13 = vector.broadcast %cst_12 : f32 to vector<32x32xf32>
    %14 = arith.maximumf %12, %13 : vector<32x32xf32>
    %c0_13 = arith.constant 0 : index
    %c0_14 = arith.constant 0 : index
    %15 = vector.load %arg5[%c0_13, %c0_14] : memref<2x32xf32, #tpu.memory_space<vmem>>, vector<2x32xf32>
    %cst_15 = arith.constant dense<0.000000e+00> : vector<2x32xf32>
    %16 = tpu.matmul %15, %14, %cst_15 {dimension_numbers = #tpu.dot_dimension_numbers<[1], [0], [0], [1], [0, 0, 1, 1], [], []>} : vector<2x32xf32>, vector<32x32xf32>, vector<2x32xf32> -> vector<2x32xf32>
    %c0_16 = arith.constant 0 : index
    %c0_17 = arith.constant 0 : index
    %17 = vector.load %arg6[%c0_16, %c0_17] : memref<32x1xf32, #tpu.memory_space<vmem>>, vector<32x1xf32>
    %cst_18 = arith.constant dense<0.000000e+00> : vector<2x1xf32>
    %18 = tpu.matmul %16, %17, %cst_18 {dimension_numbers = #tpu.dot_dimension_numbers<[1], [0], [0], [1], [0, 0, 1, 1], [], []>} : vector<2x32xf32>, vector<32x1xf32>, vector<2x1xf32> -> vector<2x1xf32>
    %c0_19 = arith.constant 0 : index
    %c0_20 = arith.constant 0 : index
    %19 = vector.load %arg7[%c0_19, %c0_20] : memref<1x1xf32, #tpu.memory_space<vmem>>, vector<1x1xf32>
    %20 = vector.broadcast %19 : vector<1x1xf32> to vector<2x1xf32>
    %21 = arith.addf %18, %20 : vector<2x1xf32>
    %c0_21 = arith.constant 0 : index
    %c0_22 = arith.constant 0 : index
    %22 = vector.load %arg9[%c0_21, %c0_22] : memref<2x1xf32, #tpu.memory_space<vmem>>, vector<2x1xf32>
    tpu.vector_store %arg9[%c0_21, %c0_22], %21 {strides = array<i32>} : memref<2x1xf32, #tpu.memory_space<vmem>>, vector<2x1xf32>,
    return
  }
}

module attributes {stable_mosaic.version = 11 : i64} {
  func.func @_conv_ln_relu_kernel(%arg0: i32, %arg1: memref<32x640xbf16, #tpu.memory_space<vmem>>, %arg2: memref<640x128xbf16, #tpu.memory_space<vmem>>, %arg3: memref<1x128xf32, #tpu.memory_space<vmem>>, %arg4: memref<1x128xf32, #tpu.memory_space<vmem>>, %arg5: memref<1x128xf32, #tpu.memory_space<vmem>>, %arg6: memref<32x128xf32, #tpu.memory_space<vmem>>) attributes {dimension_semantics = [#tpu.dimension_semantics<parallel>], iteration_bounds = array<i64: 1>, scalar_prefetch = 0 : i64, scratch_operands = 0 : i64, tpu.core_type = #tpu.core_type<tc>, window_params = [{transform_indices = @transform_0, window_bounds = array<i64: 32, 640>}, {pipeline_mode = #tpu.pipeline_mode<synchronous>, transform_indices = @transform_1, window_bounds = array<i64: 640, 128>}, {pipeline_mode = #tpu.pipeline_mode<synchronous>, transform_indices = @transform_2, window_bounds = array<i64: 1, 128>}, {pipeline_mode = #tpu.pipeline_mode<synchronous>, transform_indices = @transform_3, window_bounds = array<i64: 1, 128>}, {pipeline_mode = #tpu.pipeline_mode<synchronous>, transform_indices = @transform_4, window_bounds = array<i64: 1, 128>}, {transform_indices = @transform_5, window_bounds = array<i64: 32, 128>}]} {
    %c0 = arith.constant 0 : index
    %c0_0 = arith.constant 0 : index
    %0 = vector.load %arg1[%c0, %c0_0] : memref<32x640xbf16, #tpu.memory_space<vmem>>, vector<32x640xbf16>
    %c0_1 = arith.constant 0 : index
    %c0_2 = arith.constant 0 : index
    %1 = vector.load %arg2[%c0_1, %c0_2] : memref<640x128xbf16, #tpu.memory_space<vmem>>, vector<640x128xbf16>
    %cst = arith.constant dense<0.000000e+00> : vector<32x128xf32>
    %2 = tpu.matmul %0, %1, %cst {dimension_numbers = #tpu.dot_dimension_numbers<[1], [0], [0], [1], [0, 0, 1, 1], [], []>} : vector<32x640xbf16>, vector<640x128xbf16>, vector<32x128xf32> -> vector<32x128xf32>
    %c0_3 = arith.constant 0 : index
    %c0_4 = arith.constant 0 : index
    %3 = vector.load %arg3[%c0_3, %c0_4] : memref<1x128xf32, #tpu.memory_space<vmem>>, vector<1x128xf32>
    %4 = vector.broadcast %3 : vector<1x128xf32> to vector<32x128xf32>
    %5 = arith.addf %2, %4 : vector<32x128xf32>
    %cst_5 = arith.constant dense<0.000000e+00> : vector<32xf32>
    %6 = vector.multi_reduction <add>, %5, %cst_5 [1] : vector<32x128xf32> to vector<32xf32>
    %7 = vector.shape_cast %6 : vector<32xf32> to vector<32x1xf32>
    %cst_6 = arith.constant 1.280000e+02 : f32
    %8 = vector.broadcast %cst_6 : f32 to vector<32x1xf32>
    %9 = arith.divf %7, %8 : vector<32x1xf32>
    %10 = vector.broadcast %9 : vector<32x1xf32> to vector<32x128xf32>
    %11 = arith.subf %5, %10 : vector<32x128xf32>
    %12 = arith.mulf %11, %11 : vector<32x128xf32>
    %cst_7 = arith.constant dense<0.000000e+00> : vector<32xf32>
    %13 = vector.multi_reduction <add>, %12, %cst_7 [1] : vector<32x128xf32> to vector<32xf32>
    %14 = vector.shape_cast %13 : vector<32xf32> to vector<32x1xf32>
    %cst_8 = arith.constant 1.280000e+02 : f32
    %15 = vector.broadcast %cst_8 : f32 to vector<32x1xf32>
    %16 = arith.divf %14, %15 : vector<32x1xf32>
    %17 = vector.broadcast %9 : vector<32x1xf32> to vector<32x128xf32>
    %18 = arith.subf %5, %17 : vector<32x128xf32>
    %cst_9 = arith.constant 9.99999974E-6 : f32
    %19 = vector.broadcast %cst_9 : f32 to vector<32x1xf32>
    %20 = arith.addf %16, %19 : vector<32x1xf32>
    %21 = math.rsqrt %20 : vector<32x1xf32>
    %22 = vector.broadcast %21 : vector<32x1xf32> to vector<32x128xf32>
    %23 = arith.mulf %18, %22 : vector<32x128xf32>
    %c0_10 = arith.constant 0 : index
    %c0_11 = arith.constant 0 : index
    %24 = vector.load %arg4[%c0_10, %c0_11] : memref<1x128xf32, #tpu.memory_space<vmem>>, vector<1x128xf32>
    %25 = vector.broadcast %24 : vector<1x128xf32> to vector<32x128xf32>
    %26 = arith.mulf %23, %25 : vector<32x128xf32>
    %c0_12 = arith.constant 0 : index
    %c0_13 = arith.constant 0 : index
    %27 = vector.load %arg5[%c0_12, %c0_13] : memref<1x128xf32, #tpu.memory_space<vmem>>, vector<1x128xf32>
    %28 = vector.broadcast %27 : vector<1x128xf32> to vector<32x128xf32>
    %29 = arith.addf %26, %28 : vector<32x128xf32>
    %cst_14 = arith.constant 0.000000e+00 : f32
    %30 = vector.broadcast %cst_14 : f32 to vector<32x128xf32>
    %31 = arith.maximumf %29, %30 : vector<32x128xf32>
    %c0_15 = arith.constant 0 : index
    %c0_16 = arith.constant 0 : index
    %32 = vector.load %arg6[%c0_15, %c0_16] : memref<32x128xf32, #tpu.memory_space<vmem>>, vector<32x128xf32>
    tpu.vector_store %arg6[%c0_15, %c0_16], %31 {strides = array<i32>} : memref<32x128xf32, #tpu.memory_space<vmem>>, vector<32x128xf32>,
    return
  }
  func.func @transform_0(%arg0: i32) -> (i32, i32) {
    %c0_i32 = arith.constant 0 : i32
    %c0_i32_0 = arith.constant 0 : i32
    return %arg0, %c0_i32 : i32, i32
  }
  func.func @transform_1(%arg0: i32) -> (i32, i32) {
    %c0_i32 = arith.constant 0 : i32
    %c0_i32_0 = arith.constant 0 : i32
    %c0_i32_1 = arith.constant 0 : i32
    return %c0_i32, %c0_i32_0 : i32, i32
  }
  func.func @transform_2(%arg0: i32) -> (i32, i32) {
    %c0_i32 = arith.constant 0 : i32
    %c0_i32_0 = arith.constant 0 : i32
    %c0_i32_1 = arith.constant 0 : i32
    return %c0_i32, %c0_i32_0 : i32, i32
  }
  func.func @transform_3(%arg0: i32) -> (i32, i32) {
    %c0_i32 = arith.constant 0 : i32
    %c0_i32_0 = arith.constant 0 : i32
    %c0_i32_1 = arith.constant 0 : i32
    return %c0_i32, %c0_i32_0 : i32, i32
  }
  func.func @transform_4(%arg0: i32) -> (i32, i32) {
    %c0_i32 = arith.constant 0 : i32
    %c0_i32_0 = arith.constant 0 : i32
    %c0_i32_1 = arith.constant 0 : i32
    return %c0_i32, %c0_i32_0 : i32, i32
  }
  func.func @transform_5(%arg0: i32) -> (i32, i32) {
    %c0_i32 = arith.constant 0 : i32
    %c0_i32_0 = arith.constant 0 : i32
    return %arg0, %c0_i32 : i32, i32
  }
}

</mosaic_0001>

<bundles_post_ra>
// kernel: ppo_planner_forward.4
= control target key start
LH: loop header
LB: loop body
LE: loop exit
PB: predicated region body
PF: predicated region fallthrough
CT: control target
= control target key end

     0   :  { %vm637_vm0 = vcmask 261120   ;;  %s3421_s1 = inlined_call_operand.vmem [shape: bf16[128,32], index: 1, kind: input, shape index: {}]   ;;  %s3422_s0 = inlined_call_operand.vmem [shape: bf16[512,128], index: 0, kind: input, shape index: {}]   ;;  %s3423_s2 = inlined_call_operand.vmem [shape: f32[1,32], index: 2, kind: input, shape index: {}]   ;;  %s3424_s3 = inlined_call_operand.vmem [shape: f32[1,32], index: 3, kind: input, shape index: {}]   ;;  %s3425_s4 = inlined_call_operand.vmem [shape: f32[1,32], index: 4, kind: input, shape index: {}]   ;;  %s3426_s5 = inlined_call_operand.vmem [shape: f32[512,32], index: 5, kind: output, shape index: {}]  }
   0x1   :  { %v1924_v0 = vld [vmem:[%s3421_s1 + $0x38] sm:$0xff]   ;;  %v1925_v1 = vld [vmem:[%s3421_s1 + $0x30] sm:$0xff]   ;;  %v1926_v2 = vld [vmem:[%s3421_s1 + $0x28] sm:$0xff]  }
   0x2   :  { %1828 = vmatprep.subr.bf16.mxu0 %v1924_v0  ;;  %1908 = vmatprep.subr.bf16.mxu1 %v1924_v0  ;;  %v1927_v3 = vld [vmem:[%s3421_s1 + $0x20] sm:$0xff]   ;;  %v1928_v6 = vld [vmem:[%s3421_s1 + $0x18] sm:$0xff]   ;;  %v1929_v7 = vld [vmem:[%s3421_s1 + $0x10] sm:$0xff]  }
   0x3   :  { %1829 = vmatpush3.bf16.msra.mxu0 %v1924_v0  ;;  %1916 = vmatpush3.bf16.msra.mxu1 %v1924_v0  ;;  %v1932_v4 = vld [vmem:[%s3422_s0] sm:$0xff]   ;;  %v1930_v8 = vld [vmem:[%s3421_s1 + $0x8] sm:$0xff]   ;;  %v1936_v12 = vld [vmem:[%s3422_s0 + $0x10] sm:$0xff]  }
   0x4   :  { %1830 = vmatprep.subr.bf16.mxu0 %v1925_v1  ;;  %1909 = vmatprep.subr.bf16.mxu1 %v1925_v1  ;;  %v1933_v5 = vld [vmem:[%s3422_s0 + $0x80] sm:$0xff]   ;;  %v1934_v10 = vld [vmem:[%s3422_s0 + $0x8] sm:$0xff]   ;;  %v1938_v13 = vld [vmem:[%s3422_s0 + $0x90] sm:$0xff]  }
   0x5   :  { %1844 = vmatprep.mubr.bf16.mxu0 %v1932_v4  ;;  %1876 = vmatprep.mubr.bf16.mxu1 %v1933_v5  ;;  %v1931_v9 = vld [vmem:[%s3421_s1] sm:$0xff]   ;;  %v1935_v11 = vld [vmem:[%s3422_s0 + $0x88] sm:$0xff]   ;;  %v1937_v14 = vld [vmem:[%s3422_s0 + $0x18] sm:$0xff]  }
   0x6   :  { %v1939_v15 = vld [vmem:[%s3422_s0 + $0x98] sm:$0xff]   ;;  %v1940_v16 = vld [vmem:[%s3422_s0 + $0x20] sm:$0xff]   ;;  %v1941_v18 = vld [vmem:[%s3422_s0 + $0x28] sm:$0xff]  }
   0x7   :  { %1831 = vmatpush3.bf16.msra.mxu0 %v1925_v1  ;;  %1917 = vmatpush3.bf16.msra.mxu1 %v1925_v1  ;;  %v1942_v17 = vld [vmem:[%s3422_s0 + $0xa0] sm:$0xff]   ;;  %v1943_v19 = vld [vmem:[%s3422_s0 + $0xa8] sm:$0xff]   ;;  %v1944_v20 = vld [vmem:[%s3422_s0 + $0x30] sm:$0xff]  }
   0x8   :  { %1832 = vmatprep.subr.bf16.mxu0 %v1926_v2  ;;  %1910 = vmatprep.subr.bf16.mxu1 %v1926_v2  ;;  %v1946_v21 = vld [vmem:[%s3422_s0 + $0xb0] sm:$0xff]   ;;  %v1945_v22 = vld [vmem:[%s3422_s0 + $0x38] sm:$0xff]   ;;  %v1948_v24 = vld [vmem:[%s3422_s0 + $0x40] sm:$0xff]  }
   0x9   :  { %v1947_v23 = vld [vmem:[%s3422_s0 + $0xb8] sm:$0xff]   ;;  %v1950_v25 = vld [vmem:[%s3422_s0 + $0xc0] sm:$0xff]   ;;  %v1949_v26 = vld [vmem:[%s3422_s0 + $0x48] sm:$0xff]  }
   0xa   :  { %v1951_v27 = vld [vmem:[%s3422_s0 + $0xc8] sm:$0xff]   ;;  %v1952_v28 = vld [vmem:[%s3422_s0 + $0x50] sm:$0xff]   ;;  %v1953_v30 = vld [vmem:[%s3422_s0 + $0x58] sm:$0xff]  }
   0xb   :  { %1833 = vmatpush3.bf16.msra.mxu0 %v1926_v2  ;;  %1918 = vmatpush3.bf16.msra.mxu1 %v1926_v2  ;;  %v1954_v29 = vld [vmem:[%s3422_s0 + $0xd0] sm:$0xff]   ;;  %v1955_v31 = vld [vmem:[%s3422_s0 + $0xd8] sm:$0xff]   ;;  %v1956_v32 = vld [vmem:[%s3422_s0 + $0x60] sm:$0xff]  }
   0xc   :  { %1834 = vmatprep.subr.bf16.mxu0 %v1927_v3  ;;  %1911 = vmatprep.subr.bf16.mxu1 %v1927_v3  ;;  %v1958_v33 = vld [vmem:[%s3422_s0 + $0xe0] sm:$0xff]   ;;  %v1957_v34 = vld [vmem:[%s3422_s0 + $0x68] sm:$0xff]   ;;  %v1960_v36 = vld [vmem:[%s3422_s0 + $0x70] sm:$0xff]  }
   0xd   :  { %v1959_v35 = vld [vmem:[%s3422_s0 + $0xe8] sm:$0xff]   ;;  %v1962_v37 = vld [vmem:[%s3422_s0 + $0xf0] sm:$0xff]   ;;  %v1961_v38 = vld [vmem:[%s3422_s0 + $0x78] sm:$0xff]  }
   0xe   :  { %v1963_v39 = vld [vmem:[%s3422_s0 + $0xf8] sm:$0xff]   ;;  %v2247_v40 = vld [vmem:[%s3423_s2] ss:$0 sm:$0xff] }
   0xf   :  { %1835 = vmatpush3.bf16.msra.mxu0 %v1927_v3  ;;  %1919 = vmatpush3.bf16.msra.mxu1 %v1927_v3 }
  0x10   :  { %1836 = vmatprep.subr.bf16.mxu0 %v1928_v6  ;;  %1912 = vmatprep.subr.bf16.mxu1 %v1928_v6 }
  0x13   :  { %1837 = vmatpush3.bf16.msra.mxu0 %v1928_v6  ;;  %1920 = vmatpush3.bf16.msra.mxu1 %v1928_v6 }
  0x14   :  { %1838 = vmatprep.subr.bf16.mxu0 %v1929_v7  ;;  %1913 = vmatprep.subr.bf16.mxu1 %v1929_v7 }
  0x17   :  { %1839 = vmatpush3.bf16.msra.mxu0 %v1929_v7  ;;  %1921 = vmatpush3.bf16.msra.mxu1 %v1929_v7 }
  0x18   :  { %1840 = vmatprep.subr.bf16.mxu0 %v1930_v8  ;;  %1914 = vmatprep.subr.bf16.mxu1 %v1930_v8 }
  0x1b   :  { %1841 = vmatpush3.bf16.msra.mxu0 %v1930_v8  ;;  %1922 = vmatpush3.bf16.msra.mxu1 %v1930_v8 }
  0x1c   :  { %1842 = vmatprep.subr.bf16.mxu0 %v1931_v9  ;;  %1915 = vmatprep.subr.bf16.mxu1 %v1931_v9 }
  0x1f   :  { %1843 = vmatpush3.bf16.msra.mxu0 %v1931_v9  ;;  %1923 = vmatpush3.bf16.msra.mxu1 %v1931_v9 }
  0x22   :  { %1845 = vmatmul.mubr.bf16.vlgmr.msra.gmra.mxu0 %v1934_v10  ;;  %1877 = vmatmul.mubr.bf16.vlgmr.msra.gmra.mxu1 %v1935_v11 }
  0x23   :  { %1848 = vmatprep.mubr.bf16.mxu0 %v1936_v12  ;;  %1880 = vmatprep.mubr.bf16.mxu1 %v1938_v13 }
  0x2a   :  { %1849 = vmatmul.mubr.bf16.gmra.mxu0 %v1937_v14  ;;  %1881 = vmatmul.mubr.bf16.gmra.mxu1 %v1939_v15 }
  0x2b   :  { %1852 = vmatprep.mubr.bf16.mxu0 %v1940_v16  ;;  %1884 = vmatprep.mubr.bf16.mxu1 %v1942_v17 }
  0x32   :  { %1853 = vmatmul.mubr.bf16.gmra.mxu0 %v1941_v18  ;;  %1885 = vmatmul.mubr.bf16.gmra.mxu1 %v1943_v19 }
  0x33   :  { %1856 = vmatprep.mubr.bf16.mxu0 %v1944_v20  ;;  %1888 = vmatprep.mubr.bf16.mxu1 %v1946_v21 }
  0x3a   :  { %1857 = vmatmul.mubr.bf16.gmra.mxu0 %v1945_v22  ;;  %1889 = vmatmul.mubr.bf16.gmra.mxu1 %v1947_v23 }
  0x3b   :  { %1860 = vmatprep.mubr.bf16.mxu0 %v1948_v24  ;;  %1892 = vmatprep.mubr.bf16.mxu1 %v1950_v25 }
  0x42   :  { %1861 = vmatmul.mubr.bf16.gmra.mxu0 %v1949_v26  ;;  %1893 = vmatmul.mubr.bf16.gmra.mxu1 %v1951_v27 }
  0x43   :  { %1864 = vmatprep.mubr.bf16.mxu0 %v1952_v28  ;;  %1896 = vmatprep.mubr.bf16.mxu1 %v1954_v29 }
  0x4a   :  { %1865 = vmatmul.mubr.bf16.gmra.mxu0 %v1953_v30  ;;  %1897 = vmatmul.mubr.bf16.gmra.mxu1 %v1955_v31 }
  0x4b   :  { %1868 = vmatprep.mubr.bf16.mxu0 %v1956_v32  ;;  %1900 = vmatprep.mubr.bf16.mxu1 %v1958_v33 }
  0x52   :  { %1869 = vmatmul.mubr.bf16.gmra.mxu0 %v1957_v34  ;;  %1901 = vmatmul.mubr.bf16.gmra.mxu1 %v1959_v35 }
  0x53   :  { %1872 = vmatprep.mubr.bf16.mxu0 %v1960_v36  ;;  %1904 = vmatprep.mubr.bf16.mxu1 %v1962_v37 }
  0x5a   :  { %1873 = vmatmul.mubr.bf16.gmra.mxu0 %v1961_v38  ;;  %1905 = vmatmul.mubr.bf16.gmra.mxu1 %v1963_v39 }
  0xe2   :  { %v1846_v41 = vpop.f32.mrf.mxu0  ;;  %v1878_v42 = vpop.f32.mrf.mxu1 }
  0xe3   :  { %v2250_v43 = vadd.f32 %v1846_v41, %v2247_v40  ;;  %v2253_v44 = vadd.f32 %v1878_v42, %v2247_v40 }
  0xe4   :  { %v382_v45 = vpop.f32.mrf.mxu0  ;;  %v510_v46 = vpop.f32.mrf.mxu1 }
  0xe5   :  { %v2256_v47 = vadd.f32 %v2247_v40, %v382_v45  ;;  %v740_v48 = vsel %vm637_vm0, %v2253_v44, 0.0  ;;  %v644_v49 = vsel %vm637_vm0, %v2250_v43, 0.0  ;;  %v2266_v54 = vadd.f32 %v2247_v40, %v510_v46 }
  0xe6   :  { %741 = vadd.xlane.f32.xlu0 %v740_v48  ;;  %v1879_v50 = vpop.f32.mrf.mxu1  ;;  %645 = vadd.xlane.f32.xlu1 %v644_v49  ;;  %v1847_v51 = vpop.f32.mrf.mxu0 }
  0xe7   :  { %v2263_v52 = vadd.f32 %v1847_v51, %v2247_v40  ;;  %v2269_v55 = vadd.f32 %v1879_v50, %v2247_v40  ;;  %v638_v57 = vsel %vm637_vm0, %v2256_v47, 0.0  ;;  %v734_v1 = vsel %vm637_vm0, %v2266_v54, 0.0 }
  0xe8   :  { %v385_v53 = vpop.f32.mrf.mxu0  ;;  %v513_v58 = vpop.f32.mrf.mxu1 }
  0xe9   :  { %v647_v56 = vsel %vm637_vm0, %v2263_v52, 0.0  ;;  %v2276_v62 = vadd.f32 %v2247_v40, %v385_v53  ;;  %v2279_v63 = vadd.f32 %v2247_v40, %v513_v58  ;;  %v743_v0 = vsel %vm637_vm0, %v2269_v55, 0.0 }
  0xea   :  { %648 = vadd.xlane.f32.xlu1 %v647_v56  ;;  %v1850_v59 = vpop.f32.mrf.mxu0  ;;  %639 = vadd.xlane.f32.xlu0 %v638_v57  ;;  %v1882_v61 = vpop.f32.mrf.mxu1 }
  0xeb   :  { %v2286_v4 = vadd.f32 %v1850_v59, %v2247_v40  ;;  %v737_v6 = vsel %vm637_vm0, %v2279_v63, 0.0  ;;  %v641_v7 = vsel %vm637_vm0, %v2276_v62, 0.0  ;;  %v2296_v9 = vadd.f32 %v1882_v61, %v2247_v40 }
  0xec   :  { %v398_v60 = vpop.f32.mrf.mxu0  ;;  %v526_v3 = vpop.f32.mrf.mxu1 }
  0xed   :  { %v656_v12 = vsel %vm637_vm0, %v2286_v4, 0.0  ;;  %v2306_v15 = vadd.f32 %v2247_v40, %v398_v60  ;;  %v752_v18 = vsel %vm637_vm0, %v2296_v9, 0.0  ;;  %v2316_v22 = vadd.f32 %v2247_v40, %v526_v3 }
  0xee   :  { %744 = vadd.xlane.f32.xlu1 %v743_v0  ;;  %v1851_v2 = vpop.f32.mrf.mxu0  ;;  %735 = vadd.xlane.f32.xlu0 %v734_v1  ;;  %v1883_v8 = vpop.f32.mrf.mxu1 }
  0xef   :  { %v2289_v5 = vadd.f32 %v1851_v2, %v2247_v40  ;;  %v2299_v10 = vadd.f32 %v1883_v8, %v2247_v40  ;;  %v650_v25 = vsel %vm637_vm0, %v2306_v15, 0.0  ;;  %v746_v31 = vsel %vm637_vm0, %v2316_v22, 0.0 }
  0xf0   :  { %v401_v13 = vpop.f32.mrf.mxu0  ;;  %v529_v19 = vpop.f32.mrf.mxu1 }
  0xf1   :  { %v659_v11 = vsel %vm637_vm0, %v2289_v5, 0.0  ;;  %v2309_v16 = vadd.f32 %v2247_v40, %v401_v13  ;;  %v755_v17 = vsel %vm637_vm0, %v2299_v10, 0.0  ;;  %v2319_v23 = vadd.f32 %v2247_v40, %v529_v19 }
  0xf2   :  { %738 = vadd.xlane.f32.xlu1 %v737_v6  ;;  %642 = vadd.xlane.f32.xlu0 %v641_v7  ;;  %v1854_v14 = vpop.f32.mrf.mxu0  ;;  %v1886_v21 = vpop.f32.mrf.mxu1 }
  0xf3   :  { %v653_v24 = vsel %vm637_vm0, %v2309_v16, 0.0  ;;  %v2326_v28 = vadd.f32 %v1854_v14, %v2247_v40  ;;  %v749_v30 = vsel %vm637_vm0, %v2319_v23, 0.0  ;;  %v2336_v33 = vadd.f32 %v1886_v21, %v2247_v40 }
  0xf4   :  { %v414_v20 = vpop.f32.mrf.mxu0  ;;  %v542_v27 = vpop.f32.mrf.mxu1 }
  0xf5   :  { %v668_v36 = vsel %vm637_vm0, %v2326_v28, 0.0  ;;  %v2346_v39 = vadd.f32 %v2247_v40, %v414_v20  ;;  %v764_v45 = vsel %vm637_vm0, %v2336_v33, 0.0  ;;  %v2356_v50 = vadd.f32 %v2247_v40, %v542_v27 }
  0xf6   :  { %660 = vadd.xlane.f32.xlu1 %v659_v11  ;;  %657 = vadd.xlane.f32.xlu0 %v656_v12  ;;  %v1855_v26 = vpop.f32.mrf.mxu0  ;;  %v1887_v32 = vpop.f32.mrf.mxu1 }
  0xf7   :  { %v2329_v29 = vadd.f32 %v1855_v26, %v2247_v40  ;;  %v2339_v34 = vadd.f32 %v1887_v32, %v2247_v40  ;;  %v662_v56 = vsel %vm637_vm0, %v2346_v39, 0.0  ;;  %v758_v0 = vsel %vm637_vm0, %v2356_v50, 0.0 }
  0xf8   :  { %v417_v37 = vpop.f32.mrf.mxu0  ;;  %v545_v46 = vpop.f32.mrf.mxu1 }
  0xf9   :  { %v671_v35 = vsel %vm637_vm0, %v2329_v29, 0.0  ;;  %v2349_v41 = vadd.f32 %v2247_v40, %v417_v37  ;;  %v767_v42 = vsel %vm637_vm0, %v2339_v34, 0.0  ;;  %v2359_v51 = vadd.f32 %v2247_v40, %v545_v46 }
  0xfa   :  { %756 = vadd.xlane.f32.xlu1 %v755_v17  ;;  %753 = vadd.xlane.f32.xlu0 %v752_v18  ;;  %v1858_v38 = vpop.f32.mrf.mxu0  ;;  %v1890_v49 = vpop.f32.mrf.mxu1 }
  0xfb   :  { %v665_v53 = vsel %vm637_vm0, %v2349_v41, 0.0  ;;  %v2366_v59 = vadd.f32 %v1858_v38, %v2247_v40  ;;  %v761_v61 = vsel %vm637_vm0, %v2359_v51, 0.0  ;;  %v2376_v2 = vadd.f32 %v1890_v49, %v2247_v40 }
  0xfc   :  { %v430_v48 = vpop.f32.mrf.mxu0  ;;  %v558_v58 = vpop.f32.mrf.mxu1 }
  0xfd   :  { %v680_v7 = vsel %vm637_vm0, %v2366_v59, 0.0  ;;  %v2386_v12 = vadd.f32 %v2247_v40, %v430_v48  ;;  %v776_v17 = vsel %vm637_vm0, %v2376_v2, 0.0  ;;  %v2396_v21 = vadd.f32 %v2247_v40, %v558_v58 }
  0xfe   :  { %654 = vadd.xlane.f32.xlu1 %v653_v24  ;;  %651 = vadd.xlane.f32.xlu0 %v650_v25  ;;  %v1859_v57 = vpop.f32.mrf.mxu0  ;;  %v1891_v1 = vpop.f32.mrf.mxu1 }
  0xff   :  { %v2369_v60 = vadd.f32 %v1859_v57, %v2247_v40  ;;  %v2379_v3 = vadd.f32 %v1891_v1, %v2247_v40  ;;  %v674_v26 = vsel %vm637_vm0, %v2386_v12, 0.0 }
 0x100   :  { %v433_v8 = vpop.f32.mrf.mxu0  ;;  %v561_v18 = vpop.f32.mrf.mxu1 }
 0x101   :  { %v683_v6 = vsel %vm637_vm0, %v2369_v60, 0.0  ;;  %v2389_v13 = vadd.f32 %v2247_v40, %v433_v8  ;;  %v779_v14 = vsel %vm637_vm0, %v2379_v3, 0.0  ;;  %v2399_v24 = vadd.f32 %v2247_v40, %v561_v18 }
 0x102   :  { %750 = vadd.xlane.f32.xlu1 %v749_v30  ;;  %747 = vadd.xlane.f32.xlu0 %v746_v31  ;;  %v1862_v11 = vpop.f32.mrf.mxu0  ;;  %v1894_v20 = vpop.f32.mrf.mxu1 }
 0x103   :  { %v677_v25 = vsel %vm637_vm0, %v2389_v13, 0.0  ;;  %v2406_v31 = vadd.f32 %v1862_v11, %v2247_v40  ;;  %v2416_v38 = vadd.f32 %v1894_v20, %v2247_v40 }
 0x104   :  { %v446_v19 = vpop.f32.mrf.mxu0  ;;  %v574_v30 = vpop.f32.mrf.mxu1 }
 0x105   :  { %v692_v46 = vsel %vm637_vm0, %v2406_v31, 0.0  ;;  %v788_v58 = vsel %vm637_vm0, %v2416_v38, 0.0 }
 0x106   :  { %672 = vadd.xlane.f32.xlu1 %v671_v35  ;;  %669 = vadd.xlane.f32.xlu0 %v668_v36  ;;  %v1863_v27 = vpop.f32.mrf.mxu0  ;;  %v773_v35 = vsel %vm637_vm0, %v2399_v24, 0.0  ;;  %v770_v36 = vsel %vm637_vm0, %v2396_v21, 0.0  ;;  %v1895_v37 = vpop.f32.mrf.mxu1 }
 0x107   :  { %v2409_v32 = vadd.f32 %v1863_v27, %v2247_v40 }
 0x108   :  { %v449_v48 = vpop.f32.mrf.mxu0 }
 0x10a   :  { %768 = vadd.xlane.f32.xlu1 %v767_v42  ;;  %765 = vadd.xlane.f32.xlu0 %v764_v45  ;;  %v2419_v42 = vadd.f32 %v1895_v37, %v2247_v40  ;;  %v695_v45 = vsel %vm637_vm0, %v2409_v32, 0.0  ;;  %v1866_v49 = vpop.f32.mrf.mxu0 }
 0x10b   :  { %v2446_v18 = vadd.f32 %v1866_v49, %v2247_v40 }
 0x10c   :  { %v791_v57 = vsel %vm637_vm0, %v2419_v42, 0.0 }
 0x10e   :  { %666 = vadd.xlane.f32.xlu1 %v665_v53  ;;  %663 = vadd.xlane.f32.xlu0 %v662_v56  ;;  %v2426_v53 = vadd.f32 %v2247_v40, %v446_v19  ;;  %v2429_v56 = vadd.f32 %v2247_v40, %v449_v48 }
 0x110   :  { %v689_v8 = vsel %vm637_vm0, %v2429_v56, 0.0  ;;  %v686_v11 = vsel %vm637_vm0, %v2426_v53, 0.0 }
 0x112   :  { %762 = vadd.xlane.f32.xlu1 %v761_v61  ;;  %759 = vadd.xlane.f32.xlu0 %v758_v0  ;;  %v577_v61 = vpop.f32.mrf.mxu1  ;;  %v462_v0 = vpop.f32.mrf.mxu0 }
 0x114   :  { %v1898_v1 = vpop.f32.mrf.mxu1 }
 0x115   :  { %v2456_v27 = vadd.f32 %v1898_v1, %v2247_v40 }
 0x116   :  { %684 = vadd.xlane.f32.xlu1 %v683_v6  ;;  %681 = vadd.xlane.f32.xlu0 %v680_v7  ;;  %v2436_v6 = vadd.f32 %v2247_v40, %v574_v30  ;;  %v2439_v7 = vadd.f32 %v2247_v40, %v577_v61 }
 0x118   :  { %v785_v20 = vsel %vm637_vm0, %v2439_v7, 0.0 }
 0x11a   :  { %780 = vadd.xlane.f32.xlu1 %v779_v14  ;;  %777 = vadd.xlane.f32.xlu0 %v776_v17  ;;  %v1867_v14 = vpop.f32.mrf.mxu0  ;;  %v590_v17 = vpop.f32.mrf.mxu1 }
 0x11b   :  { %v2449_v19 = vadd.f32 %v1867_v14, %v2247_v40 }
 0x11c   :  { %v465_v37 = vpop.f32.mrf.mxu0 }
 0x11d   :  { %v2469_v48 = vadd.f32 %v2247_v40, %v465_v37 }
 0x11e   :  { %678 = vadd.xlane.f32.xlu1 %v677_v25  ;;  %675 = vadd.xlane.f32.xlu0 %v674_v26  ;;  %v782_v25 = vsel %vm637_vm0, %v2436_v6, 0.0  ;;  %v1899_v26 = vpop.f32.mrf.mxu1 }
 0x11f   :  { %v2459_v30 = vadd.f32 %v1899_v26, %v2247_v40 }
 0x121   :  { %v803_v49 = vsel %vm637_vm0, %v2459_v30, 0.0 }
 0x122   :  { %774 = vadd.xlane.f32.xlu1 %v773_v35  ;;  %771 = vadd.xlane.f32.xlu0 %v770_v36  ;;  %v707_v35 = vsel %vm637_vm0, %v2449_v19, 0.0  ;;  %v704_v36 = vsel %vm637_vm0, %v2446_v18, 0.0 }
 0x126   :  { %696 = vadd.xlane.f32.xlu1 %v695_v45  ;;  %693 = vadd.xlane.f32.xlu0 %v692_v46  ;;  %v1870_v45 = vpop.f32.mrf.mxu0  ;;  %v2466_v46 = vadd.f32 %v2247_v40, %v462_v0 }
 0x127   :  { %v2486_v26 = vadd.f32 %v1870_v45, %v2247_v40 }
 0x128   :  { %v478_v61 = vpop.f32.mrf.mxu0  ;;  %v698_v14 = vsel %vm637_vm0, %v2466_v46, 0.0 }
 0x129   :  { %3461 = vst [vmem:[#allocation2_spill] sm:$0xff] %v2486_v26 }
 0x12a   :  { %792 = vadd.xlane.f32.xlu1 %v791_v57  ;;  %789 = vadd.xlane.f32.xlu0 %v788_v58  ;;  %v800_v57 = vsel %vm637_vm0, %v2456_v27, 0.0  ;;  %v593_v58 = vpop.f32.mrf.mxu1 }
 0x12b   :  { %v2479_v0 = vadd.f32 %v2247_v40, %v593_v58  ;;  %v716_v58 = vsel %vm637_vm0, %v2486_v26, 0.0 }
 0x12c   :  { %v1902_v1 = vpop.f32.mrf.mxu1 }
 0x12e   :  { %690 = vadd.xlane.f32.xlu1 %v689_v8  ;;  %687 = vadd.xlane.f32.xlu0 %v686_v11  ;;  %v2476_v8 = vadd.f32 %v2247_v40, %v590_v17  ;;  %v701_v11 = vsel %vm637_vm0, %v2469_v48, 0.0  ;;  %v797_v17 = vsel %vm637_vm0, %v2479_v0, 0.0 }
 0x132   :  { %786 = vadd.xlane.f32.xlu1 %v785_v20  ;;  %783 = vadd.xlane.f32.xlu0 %v782_v25  ;;  %v1871_v20 = vpop.f32.mrf.mxu0  ;;  %v606_v25 = vpop.f32.mrf.mxu1 }
 0x134   :  { %v1903_v37 = vpop.f32.mrf.mxu1 }
 0x136   :  { %708 = vadd.xlane.f32.xlu1 %v707_v35  ;;  %705 = vadd.xlane.f32.xlu0 %v704_v36  ;;  %v2489_v35 = vadd.f32 %v1871_v20, %v2247_v40  ;;  %v794_v36 = vsel %vm637_vm0, %v2476_v8, 0.0  ;;  %v2506_v20 = vadd.f32 %v2247_v40, %v478_v61 }
 0x138   :  { %3462 = vst [vmem:[#allocation3_spill] sm:$0xff] %v2489_v35  ;;  %v719_v45 = vsel %vm637_vm0, %v2489_v35, 0.0  ;;  %3465 = vst [vmem:[#allocation6_spill] sm:$0xff] %v2506_v20 }
 0x13a   :  { %804 = vadd.xlane.f32.xlu1 %v803_v49  ;;  %801 = vadd.xlane.f32.xlu0 %v800_v57  ;;  %v2496_v49 = vadd.f32 %v1902_v1, %v2247_v40  ;;  %v2499_v57 = vadd.f32 %v1903_v37, %v2247_v40  ;;  %v609_v37 = vpop.f32.mrf.mxu1 }
 0x13b   :  { %v2519_v61 = vadd.f32 %v2247_v40, %v609_v37 }
 0x13c   :  { %3463 = vst [vmem:[#allocation4_spill] sm:$0xff] %v2496_v49  ;;  %3464 = vst [vmem:[#allocation5_spill] sm:$0xff] %v2499_v57  ;;  %v815_v1 = vsel %vm637_vm0, %v2499_v57, 0.0  ;;  %v1906_v35 = vpop.f32.mrf.mxu1 }
 0x13e   :  { %702 = vadd.xlane.f32.xlu1 %v701_v11  ;;  %699 = vadd.xlane.f32.xlu0 %v698_v14  ;;  %v481_v11 = vpop.f32.mrf.mxu0  ;;  %v622_v57 = vpop.f32.mrf.mxu1 }
 0x140   :  { %v1874_v14 = vpop.f32.mrf.mxu0 }
 0x142   :  { %798 = vadd.xlane.f32.xlu1 %v797_v17  ;;  %795 = vadd.xlane.f32.xlu0 %v794_v36  ;;  %v2509_v17 = vadd.f32 %v2247_v40, %v481_v11  ;;  %v812_v36 = vsel %vm637_vm0, %v2496_v49, 0.0  ;;  %v494_v26 = vpop.f32.mrf.mxu0  ;;  %v710_v11 = vsel %vm637_vm0, %v2506_v20, 0.0 }
 0x144   :  { %3466 = vst [vmem:[#allocation7_spill] sm:$0xff] %v2509_v17  ;;  %v1875_v49 = vpop.f32.mrf.mxu0 }
 0x146   :  { %720 = vadd.xlane.f32.xlu1 %v719_v45  ;;  %717 = vadd.xlane.f32.xlu0 %v716_v58  ;;  %v2516_v45 = vadd.f32 %v2247_v40, %v606_v25  ;;  %v713_v58 = vsel %vm637_vm0, %v2509_v17, 0.0  ;;  %v809_v25 = vsel %vm637_vm0, %v2519_v61, 0.0  ;;  %v1907_v17 = vpop.f32.mrf.mxu1  ;;  %v497_v20 = vpop.f32.mrf.mxu0 }
 0x148   :  { %3467 = vst [vmem:[#allocation8_spill] sm:$0xff] %v2516_v45  ;;  %v806_v37 = vsel %vm637_vm0, %v2516_v45, 0.0  ;;  %v2546_v45 = vadd.f32 %v2247_v40, %v494_v26 }
 0x14a   :  { %816 = vadd.xlane.f32.xlu1 %v815_v1  ;;  %813 = vadd.xlane.f32.xlu0 %v812_v36  ;;  %v2526_v1 = vadd.f32 %v1874_v14, %v2247_v40  ;;  %v2529_v36 = vadd.f32 %v1875_v49, %v2247_v40  ;;  %3471 = vst [vmem:[#allocation12_spill] sm:$0xff] %v2546_v45 }
 0x14c   :  { %3468 = vst [vmem:[#allocation9_spill] sm:$0xff] %v2526_v1  ;;  %v731_v14 = vsel %vm637_vm0, %v2529_v36, 0.0  ;;  %v728_v49 = vsel %vm637_vm0, %v2526_v1, 0.0  ;;  %v2556_v1 = vadd.f32 %v2247_v40, %v622_v57 }
 0x14e   :  { %714 = vadd.xlane.f32.xlu1 %v713_v58  ;;  %711 = vadd.xlane.f32.xlu0 %v710_v11  ;;  %v2536_v58 = vadd.f32 %v1906_v35, %v2247_v40  ;;  %v2539_v11 = vadd.f32 %v1907_v17, %v2247_v40 }
 0x150   :  { %3469 = vst [vmem:[#allocation10_spill] sm:$0xff] %v2536_v58  ;;  %3470 = vst [vmem:[#allocation11_spill] sm:$0xff] %v2539_v11  ;;  %v827_v35 = vsel %vm637_vm0, %v2539_v11, 0.0  ;;  %v824_v17 = vsel %vm637_vm0, %v2536_v58, 0.0 }
 0x152   :  { %810 = vadd.xlane.f32.xlu1 %v809_v25  ;;  %807 = vadd.xlane.f32.xlu0 %v806_v37  ;;  %v2549_v25 = vadd.f32 %v2247_v40, %v497_v20  ;;  %v625_v37 = vpop.f32.mrf.mxu1  ;;  %v722_v20 = vsel %vm637_vm0, %v2546_v45, 0.0 }
 0x154   :  { %3472 = vst [vmem:[#allocation13_spill] sm:$0xff] %v2549_v25  ;;  %v725_v26 = vsel %vm637_vm0, %v2549_v25, 0.0 }
 0x156   :  { %732 = vadd.xlane.f32.xlu1 %v731_v14  ;;  %729 = vadd.xlane.f32.xlu0 %v728_v49  ;;  %v2559_v14 = vadd.f32 %v2247_v40, %v625_v37 }
 0x158   :  { %3473 = vst [vmem:[#allocation14_spill] sm:$0xff] %v2559_v14  ;;  %v821_v49 = vsel %vm637_vm0, %v2559_v14, 0.0 }
 0x15a   :  { %828 = vadd.xlane.f32.xlu1 %v827_v35  ;;  %825 = vadd.xlane.f32.xlu0 %v824_v17  ;;  %v818_v35 = vsel %vm637_vm0, %v2556_v1, 0.0 }
 0x15e   :  { %726 = vadd.xlane.f32.xlu1 %v725_v26  ;;  %723 = vadd.xlane.f32.xlu0 %v722_v20 }
 0x162   :  { %822 = vadd.xlane.f32.xlu1 %v821_v49  ;;  %819 = vadd.xlane.f32.xlu0 %v818_v35 }
 0x16f   :  { %v742_v57 = vpop.xlane.xlu0 %741  ;;  %v646_v17 = vpop.xlane.xlu1 %645 }
 0x170   :  { %v865_v40 = vmul.f32 0.03125, %v742_v57  ;;  %v833_v37 = vmul.f32 0.03125, %v646_v17 }
 0x172   :  { %v2570_v58 = vsub.f32 %v2253_v44, %v865_v40  ;;  %v2573_v11 = vsub.f32 %v2250_v43, %v833_v37 }
 0x173   :  { %v649_v26 = vpop.xlane.xlu1 %648  ;;  %v640_v20 = vpop.xlane.xlu0 %639 }
 0x174   :  { %3474 = vst [vmem:[#allocation15_spill] sm:$0xff] %v2570_v58  ;;  %v834_v45 = vmul.f32 0.03125, %v649_v26  ;;  %v831_v25 = vmul.f32 0.03125, %v640_v20  ;;  %v961_v14 = vmul.f32 %v2573_v11, %v2573_v11  ;;  %v993_v49 = vmul.f32 %v2570_v58, %v2570_v58 }
 0x176   :  { %v2580_v35 = vsub.f32 %v2263_v52, %v834_v45  ;;  %v2583_v57 = vsub.f32 %v2256_v47, %v831_v25  ;;  %v1029_v44 = vsel %vm637_vm0, %v961_v14, 0.0  ;;  %v1125_v20 = vsel %vm637_vm0, %v993_v49, 0.0 }
 0x177   :  { %v745_v43 = vpop.xlane.xlu1 %744  ;;  %1030 = vadd.xlane.f32.xlu0 %v1029_v44  ;;  %v736_v17 = vpop.xlane.xlu0 %735 }
 0x178   :  { %v866_v40 = vmul.f32 0.03125, %v745_v43  ;;  %v863_v37 = vmul.f32 0.03125, %v736_v17  ;;  %v962_v26 = vmul.f32 %v2580_v35, %v2580_v35  ;;  %v959_v45 = vmul.f32 %v2583_v57, %v2583_v57 }
 0x17a   :  { %v2590_v58 = vsub.f32 %v2269_v55, %v866_v40  ;;  %v2593_v52 = vsub.f32 %v2266_v54, %v863_v37  ;;  %v1032_v47 = vsel %vm637_vm0, %v962_v26, 0.0  ;;  %v1023_v37 = vsel %vm637_vm0, %v959_v45, 0.0 }
 0x17b   :  { %v739_v25 = vpop.xlane.xlu1 %738  ;;  %1033 = vadd.xlane.f32.xlu1 %v1032_v47  ;;  %1126 = vadd.xlane.f32.xlu0 %v1125_v20  ;;  %v643_v14 = vpop.xlane.xlu0 %642 }
 0x17c   :  { %3475 = vst [vmem:[#allocation16_spill] sm:$0xff] %v2593_v52  ;;  %v864_v44 = vmul.f32 0.03125, %v739_v25  ;;  %v832_v43 = vmul.f32 0.03125, %v643_v14  ;;  %v994_v49 = vmul.f32 %v2590_v58, %v2590_v58  ;;  %v991_v55 = vmul.f32 %v2593_v52, %v2593_v52 }
 0x17e   :  { %v2603_v54 = vsub.f32 %v2279_v63, %v864_v44  ;;  %v2606_v17 = vsub.f32 %v2276_v62, %v832_v43  ;;  %v1128_v40 = vsel %vm637_vm0, %v994_v49, 0.0  ;;  %v1119_v52 = vsel %vm637_vm0, %v991_v55, 0.0 }
 0x17f   :  { %v661_v26 = vpop.xlane.xlu1 %660  ;;  %1129 = vadd.xlane.f32.xlu1 %v1128_v40  ;;  %1024 = vadd.xlane.f32.xlu0 %v1023_v37  ;;  %v658_v20 = vpop.xlane.xlu0 %657 }
 0x180   :  { %v838_v47 = vmul.f32 0.03125, %v661_v26  ;;  %v837_v25 = vmul.f32 0.03125, %v658_v20  ;;  %v960_v14 = vmul.f32 %v2606_v17, %v2606_v17  ;;  %v992_v45 = vmul.f32 %v2603_v54, %v2603_v54 }
 0x182   :  { %v2614_v63 = vsub.f32 %v2289_v5, %v838_v47  ;;  %v2617_v62 = vsub.f32 %v2286_v4, %v837_v25  ;;  %v1026_v44 = vsel %vm637_vm0, %v960_v14, 0.0  ;;  %v1122_v20 = vsel %vm637_vm0, %v992_v45, 0.0 }
 0x183   :  { %v757_v43 = vpop.xlane.xlu1 %756  ;;  %1120 = vadd.xlane.f32.xlu0 %v1119_v52  ;;  %1027 = vadd.xlane.f32.xlu1 %v1026_v44  ;;  %v754_v49 = vpop.xlane.xlu0 %753 }
 0x184   :  { %v870_v40 = vmul.f32 0.03125, %v757_v43  ;;  %v869_v37 = vmul.f32 0.03125, %v754_v49  ;;  %v965_v55 = vmul.f32 %v2617_v62, %v2617_v62  ;;  %v966_v5 = vmul.f32 %v2614_v63, %v2614_v63 }
 0x186   :  { %v2627_v4 = vsub.f32 %v2299_v10, %v870_v40  ;;  %v2630_v26 = vsub.f32 %v2296_v9, %v869_v37  ;;  %v1041_v52 = vsel %vm637_vm0, %v965_v55, 0.0  ;;  %v1044_v49 = vsel %vm637_vm0, %v966_v5, 0.0 }
 0x187   :  { %v655_v47 = vpop.xlane.xlu1 %654  ;;  %1123 = vadd.xlane.f32.xlu1 %v1122_v20  ;;  %1042 = vadd.xlane.f32.xlu0 %v1041_v52  ;;  %v652_v25 = vpop.xlane.xlu0 %651 }
 0x188   :  { %v836_v14 = vmul.f32 0.03125, %v655_v47  ;;  %v835_v44 = vmul.f32 0.03125, %v652_v25  ;;  %v997_v43 = vmul.f32 %v2630_v26, %v2630_v26  ;;  %v998_v40 = vmul.f32 %v2627_v4, %v2627_v4 }
 0x18a   :  { %v2638_v10 = vsub.f32 %v2309_v16, %v836_v14  ;;  %v2641_v9 = vsub.f32 %v2306_v15, %v835_v44  ;;  %v1137_v45 = vsel %vm637_vm0, %v997_v43, 0.0  ;;  %v1140_v25 = vsel %vm637_vm0, %v998_v40, 0.0 }
 0x18b   :  { %v751_v37 = vpop.xlane.xlu1 %750  ;;  %1045 = vadd.xlane.f32.xlu1 %v1044_v49  ;;  %1138 = vadd.xlane.f32.xlu0 %v1137_v45  ;;  %v748_v55 = vpop.xlane.xlu0 %747 }
 0x18c   :  { %v868_v20 = vmul.f32 0.03125, %v751_v37  ;;  %v867_v52 = vmul.f32 0.03125, %v748_v55  ;;  %v963_v5 = vmul.f32 %v2641_v9, %v2641_v9  ;;  %v964_v16 = vmul.f32 %v2638_v10, %v2638_v10 }
 0x18e   :  { %v2651_v15 = vsub.f32 %v2319_v23, %v868_v20  ;;  %v2654_v47 = vsub.f32 %v2316_v22, %v867_v52  ;;  %v1035_v14 = vsel %vm637_vm0, %v963_v5, 0.0  ;;  %v1038_v55 = vsel %vm637_vm0, %v964_v16, 0.0 }
 0x18f   :  { %v673_v44 = vpop.xlane.xlu1 %672  ;;  %1141 = vadd.xlane.f32.xlu1 %v1140_v25  ;;  %1036 = vadd.xlane.f32.xlu0 %v1035_v14  ;;  %v670_v43 = vpop.xlane.xlu0 %669 }
 0x190   :  { %v842_v49 = vmul.f32 0.03125, %v673_v44  ;;  %v841_v45 = vmul.f32 0.03125, %v670_v43  ;;  %v995_v37 = vmul.f32 %v2654_v47, %v2654_v47  ;;  %v996_v20 = vmul.f32 %v2651_v15, %v2651_v15 }
 0x192   :  { %v2662_v23 = vsub.f32 %v2329_v29, %v842_v49  ;;  %v2665_v22 = vsub.f32 %v2326_v28, %v841_v45  ;;  %v1131_v40 = vsel %vm637_vm0, %v995_v37, 0.0  ;;  %v1134_v43 = vsel %vm637_vm0, %v996_v20, 0.0 }
 0x193   :  { %v769_v52 = vpop.xlane.xlu1 %768  ;;  %1039 = vadd.xlane.f32.xlu1 %v1038_v55  ;;  %1132 = vadd.xlane.f32.xlu0 %v1131_v40  ;;  %v766_v5 = vpop.xlane.xlu0 %765 }
 0x194   :  { %v874_v25 = vmul.f32 0.03125, %v769_v52  ;;  %v873_v14 = vmul.f32 0.03125, %v766_v5  ;;  %v969_v16 = vmul.f32 %v2665_v22, %v2665_v22  ;;  %v970_v29 = vmul.f32 %v2662_v23, %v2662_v23 }
 0x196   :  { %v2675_v28 = vsub.f32 %v2339_v34, %v874_v25  ;;  %v2678_v44 = vsub.f32 %v2336_v33, %v873_v14  ;;  %v1053_v49 = vsel %vm637_vm0, %v969_v16, 0.0  ;;  %v1056_v5 = vsel %vm637_vm0, %v970_v29, 0.0 }
 0x197   :  { %v667_v45 = vpop.xlane.xlu1 %666  ;;  %1135 = vadd.xlane.f32.xlu1 %v1134_v43  ;;  %1054 = vadd.xlane.f32.xlu0 %v1053_v49  ;;  %v664_v37 = vpop.xlane.xlu0 %663 }
 0x198   :  { %v840_v55 = vmul.f32 0.03125, %v667_v45  ;;  %v839_v40 = vmul.f32 0.03125, %v664_v37  ;;  %v1001_v52 = vmul.f32 %v2678_v44, %v2678_v44  ;;  %v1002_v25 = vmul.f32 %v2675_v28, %v2675_v28 }
 0x19a   :  { %v2686_v34 = vsub.f32 %v2349_v41, %v840_v55  ;;  %v2689_v33 = vsub.f32 %v2346_v39, %v839_v40  ;;  %v1149_v20 = vsel %vm637_vm0, %v1001_v52, 0.0  ;;  %v1152_v37 = vsel %vm637_vm0, %v1002_v25, 0.0 }
 0x19b   :  { %v763_v14 = vpop.xlane.xlu1 %762  ;;  %1057 = vadd.xlane.f32.xlu1 %v1056_v5  ;;  %1150 = vadd.xlane.f32.xlu0 %v1149_v20  ;;  %v760_v16 = vpop.xlane.xlu0 %759 }
 0x19c   :  { %v872_v43 = vmul.f32 0.03125, %v763_v14  ;;  %v871_v49 = vmul.f32 0.03125, %v760_v16  ;;  %v967_v29 = vmul.f32 %v2689_v33, %v2689_v33  ;;  %v968_v41 = vmul.f32 %v2686_v34, %v2686_v34 }
 0x19e   :  { %v2699_v39 = vsub.f32 %v2359_v51, %v872_v43  ;;  %v2702_v45 = vsub.f32 %v2356_v50, %v871_v49  ;;  %v1047_v55 = vsel %vm637_vm0, %v967_v29, 0.0  ;;  %v1050_v16 = vsel %vm637_vm0, %v968_v41, 0.0 }
 0x19f   :  { %v685_v40 = vpop.xlane.xlu1 %684  ;;  %1153 = vadd.xlane.f32.xlu1 %v1152_v37  ;;  %1048 = vadd.xlane.f32.xlu0 %v1047_v55  ;;  %v682_v52 = vpop.xlane.xlu0 %681 }
 0x1a0   :  { %v846_v5 = vmul.f32 0.03125, %v685_v40  ;;  %v845_v20 = vmul.f32 0.03125, %v682_v52  ;;  %v999_v14 = vmul.f32 %v2702_v45, %v2702_v45  ;;  %v1000_v43 = vmul.f32 %v2699_v39, %v2699_v39 }
 0x1a2   :  { %v2710_v51 = vsub.f32 %v2369_v60, %v846_v5  ;;  %v2713_v50 = vsub.f32 %v2366_v59, %v845_v20  ;;  %v1143_v25 = vsel %vm637_vm0, %v999_v14, 0.0  ;;  %v1146_v52 = vsel %vm637_vm0, %v1000_v43, 0.0 }
 0x1a3   :  { %v781_v49 = vpop.xlane.xlu1 %780  ;;  %1051 = vadd.xlane.f32.xlu1 %v1050_v16  ;;  %1144 = vadd.xlane.f32.xlu0 %v1143_v25  ;;  %v778_v29 = vpop.xlane.xlu0 %777 }
 0x1a4   :  { %v878_v37 = vmul.f32 0.03125, %v781_v49  ;;  %v877_v55 = vmul.f32 0.03125, %v778_v29  ;;  %v973_v41 = vmul.f32 %v2713_v50, %v2713_v50  ;;  %v974_v60 = vmul.f32 %v2710_v51, %v2710_v51 }
 0x1a6   :  { %v2723_v59 = vsub.f32 %v2379_v3, %v878_v37  ;;  %v2726_v40 = vsub.f32 %v2376_v2, %v877_v55  ;;  %v1065_v5 = vsel %vm637_vm0, %v973_v41, 0.0  ;;  %v1068_v29 = vsel %vm637_vm0, %v974_v60, 0.0 }
 0x1a7   :  { %v679_v20 = vpop.xlane.xlu1 %678  ;;  %1147 = vadd.xlane.f32.xlu1 %v1146_v52  ;;  %1066 = vadd.xlane.f32.xlu0 %v1065_v5  ;;  %v676_v14 = vpop.xlane.xlu0 %675 }
 0x1a8   :  { %v844_v16 = vmul.f32 0.03125, %v679_v20  ;;  %v843_v25 = vmul.f32 0.03125, %v676_v14  ;;  %v1005_v49 = vmul.f32 %v2726_v40, %v2726_v40  ;;  %v1006_v37 = vmul.f32 %v2723_v59, %v2723_v59 }
 0x1aa   :  { %v2734_v3 = vsub.f32 %v2389_v13, %v844_v16  ;;  %v2737_v2 = vsub.f32 %v2386_v12, %v843_v25  ;;  %v1161_v43 = vsel %vm637_vm0, %v1005_v49, 0.0  ;;  %v1164_v14 = vsel %vm637_vm0, %v1006_v37, 0.0 }
 0x1ab   :  { %v775_v55 = vpop.xlane.xlu1 %774  ;;  %1069 = vadd.xlane.f32.xlu1 %v1068_v29  ;;  %1162 = vadd.xlane.f32.xlu0 %v1161_v43  ;;  %v772_v41 = vpop.xlane.xlu0 %771 }
 0x1ac   :  { %v876_v52 = vmul.f32 0.03125, %v775_v55  ;;  %v875_v5 = vmul.f32 0.03125, %v772_v41  ;;  %v971_v60 = vmul.f32 %v2737_v2, %v2737_v2  ;;  %v972_v13 = vmul.f32 %v2734_v3, %v2734_v3 }
 0x1ae   :  { %v2747_v12 = vsub.f32 %v2399_v24, %v876_v52  ;;  %v2750_v20 = vsub.f32 %v2396_v21, %v875_v5  ;;  %v1059_v16 = vsel %vm637_vm0, %v971_v60, 0.0  ;;  %v1062_v41 = vsel %vm637_vm0, %v972_v13, 0.0 }
 0x1af   :  { %v697_v25 = vpop.xlane.xlu1 %696  ;;  %1165 = vadd.xlane.f32.xlu1 %v1164_v14  ;;  %1060 = vadd.xlane.f32.xlu0 %v1059_v16  ;;  %v694_v49 = vpop.xlane.xlu0 %693 }
 0x1b0   :  { %v850_v29 = vmul.f32 0.03125, %v697_v25  ;;  %v849_v43 = vmul.f32 0.03125, %v694_v49  ;;  %v1003_v55 = vmul.f32 %v2750_v20, %v2750_v20  ;;  %v1004_v52 = vmul.f32 %v2747_v12, %v2747_v12 }
 0x1b2   :  { %v2758_v24 = vsub.f32 %v2409_v32, %v850_v29  ;;  %v2761_v21 = vsub.f32 %v2406_v31, %v849_v43  ;;  %v1155_v37 = vsel %vm637_vm0, %v1003_v55, 0.0  ;;  %v1158_v49 = vsel %vm637_vm0, %v1004_v52, 0.0 }
 0x1b3   :  { %v793_v5 = vpop.xlane.xlu1 %792  ;;  %1063 = vadd.xlane.f32.xlu1 %v1062_v41  ;;  %1156 = vadd.xlane.f32.xlu0 %v1155_v37  ;;  %v790_v60 = vpop.xlane.xlu0 %789 }
 0x1b4   :  { %v882_v14 = vmul.f32 0.03125, %v793_v5  ;;  %v881_v16 = vmul.f32 0.03125, %v790_v60  ;;  %v977_v13 = vmul.f32 %v2761_v21, %v2761_v21  ;;  %v978_v32 = vmul.f32 %v2758_v24, %v2758_v24 }
 0x1b6   :  { %v2771_v31 = vsub.f32 %v2419_v42, %v882_v14  ;;  %v2774_v25 = vsub.f32 %v2416_v38, %v881_v16  ;;  %v1077_v29 = vsel %vm637_vm0, %v977_v13, 0.0  ;;  %v1080_v60 = vsel %vm637_vm0, %v978_v32, 0.0 }
 0x1b7   :  { %v691_v43 = vpop.xlane.xlu1 %690  ;;  %1159 = vadd.xlane.f32.xlu1 %v1158_v49  ;;  %1078 = vadd.xlane.f32.xlu0 %v1077_v29  ;;  %v688_v55 = vpop.xlane.xlu0 %687 }
 0x1b8   :  { %v848_v41 = vmul.f32 0.03125, %v691_v43  ;;  %v847_v37 = vmul.f32 0.03125, %v688_v55  ;;  %v1009_v5 = vmul.f32 %v2774_v25, %v2774_v25  ;;  %v1010_v14 = vmul.f32 %v2771_v31, %v2771_v31 }
 0x1ba   :  { %v2782_v42 = vsub.f32 %v2429_v56, %v848_v41  ;;  %v2785_v38 = vsub.f32 %v2426_v53, %v847_v37  ;;  %v1173_v52 = vsel %vm637_vm0, %v1009_v5, 0.0  ;;  %v1176_v55 = vsel %vm637_vm0, %v1010_v14, 0.0 }
 0x1bb   :  { %v787_v16 = vpop.xlane.xlu1 %786  ;;  %1081 = vadd.xlane.f32.xlu1 %v1080_v60  ;;  %1174 = vadd.xlane.f32.xlu0 %v1173_v52  ;;  %v784_v13 = vpop.xlane.xlu0 %783 }
 0x1bc   :  { %v880_v49 = vmul.f32 0.03125, %v787_v16  ;;  %v879_v29 = vmul.f32 0.03125, %v784_v13  ;;  %v975_v32 = vmul.f32 %v2785_v38, %v2785_v38  ;;  %v976_v56 = vmul.f32 %v2782_v42, %v2782_v42 }
 0x1be   :  { %v2795_v53 = vsub.f32 %v2439_v7, %v880_v49  ;;  %v2798_v43 = vsub.f32 %v2436_v6, %v879_v29  ;;  %v1071_v41 = vsel %vm637_vm0, %v975_v32, 0.0  ;;  %v1074_v13 = vsel %vm637_vm0, %v976_v56, 0.0 }
 0x1bf   :  { %v709_v37 = vpop.xlane.xlu1 %708  ;;  %1177 = vadd.xlane.f32.xlu1 %v1176_v55  ;;  %1072 = vadd.xlane.f32.xlu0 %v1071_v41  ;;  %v706_v5 = vpop.xlane.xlu0 %705 }
 0x1c0   :  { %v854_v60 = vmul.f32 0.03125, %v709_v37  ;;  %v853_v52 = vmul.f32 0.03125, %v706_v5  ;;  %v1007_v16 = vmul.f32 %v2798_v43, %v2798_v43  ;;  %v1008_v49 = vmul.f32 %v2795_v53, %v2795_v53 }
 0x1c2   :  { %v2806_v7 = vsub.f32 %v2449_v19, %v854_v60  ;;  %v2809_v6 = vsub.f32 %v2446_v18, %v853_v52  ;;  %v1167_v14 = vsel %vm637_vm0, %v1007_v16, 0.0  ;;  %v1170_v5 = vsel %vm637_vm0, %v1008_v49, 0.0 }
 0x1c3   :  { %v805_v29 = vpop.xlane.xlu1 %804  ;;  %1075 = vadd.xlane.f32.xlu1 %v1074_v13  ;;  %1168 = vadd.xlane.f32.xlu0 %v1167_v14  ;;  %v802_v32 = vpop.xlane.xlu0 %801 }
 0x1c4   :  { %v886_v55 = vmul.f32 0.03125, %v805_v29  ;;  %v885_v41 = vmul.f32 0.03125, %v802_v32  ;;  %v981_v56 = vmul.f32 %v2809_v6, %v2809_v6  ;;  %v982_v19 = vmul.f32 %v2806_v7, %v2806_v7 }
 0x1c6   :  { %v2819_v18 = vsub.f32 %v2459_v30, %v886_v55  ;;  %v2822_v37 = vsub.f32 %v2456_v27, %v885_v41  ;;  %v1089_v60 = vsel %vm637_vm0, %v981_v56, 0.0  ;;  %v1092_v32 = vsel %vm637_vm0, %v982_v19, 0.0 }
 0x1c7   :  { %v703_v52 = vpop.xlane.xlu1 %702  ;;  %1171 = vadd.xlane.f32.xlu1 %v1170_v5  ;;  %1090 = vadd.xlane.f32.xlu0 %v1089_v60  ;;  %v700_v16 = vpop.xlane.xlu0 %699 }
 0x1c8   :  { %v852_v13 = vmul.f32 0.03125, %v703_v52  ;;  %v851_v14 = vmul.f32 0.03125, %v700_v16  ;;  %v1013_v29 = vmul.f32 %v2822_v37, %v2822_v37  ;;  %v1014_v55 = vmul.f32 %v2819_v18, %v2819_v18 }
 0x1ca   :  { %v2830_v30 = vsub.f32 %v2469_v48, %v852_v13  ;;  %v2833_v27 = vsub.f32 %v2466_v46, %v851_v14  ;;  %v1185_v49 = vsel %vm637_vm0, %v1013_v29, 0.0  ;;  %v1188_v16 = vsel %vm637_vm0, %v1014_v55, 0.0 }
 0x1cb   :  { %v799_v41 = vpop.xlane.xlu1 %798  ;;  %1093 = vadd.xlane.f32.xlu1 %v1092_v32  ;;  %1186 = vadd.xlane.f32.xlu0 %v1185_v49  ;;  %v796_v56 = vpop.xlane.xlu0 %795 }
 0x1cc   :  { %3476 = vst [vmem:[#allocation17_spill] sm:$0xff] %v2830_v30  ;;  %v884_v5 = vmul.f32 0.03125, %v799_v41  ;;  %v883_v60 = vmul.f32 0.03125, %v796_v56  ;;  %v979_v19 = vmul.f32 %v2833_v27, %v2833_v27  ;;  %v980_v48 = vmul.f32 %v2830_v30, %v2830_v30 }
 0x1ce   :  { %v2843_v46 = vsub.f32 %v2479_v0, %v884_v5  ;;  %v2846_v52 = vsub.f32 %v2476_v8, %v883_v60  ;;  %v1083_v13 = vsel %vm637_vm0, %v979_v19, 0.0  ;;  %v1086_v56 = vsel %vm637_vm0, %v980_v48, 0.0  ;;  %v3479_v0 = vld [vmem:[#allocation3_spill] sm:$0xff]  ;;  %v3481_v8 = vld [vmem:[#allocation2_spill] sm:$0xff] }
 0x1cf   :  { %v721_v14 = vpop.xlane.xlu1 %720  ;;  %1189 = vadd.xlane.f32.xlu1 %v1188_v16  ;;  %1084 = vadd.xlane.f32.xlu0 %v1083_v13  ;;  %v718_v29 = vpop.xlane.xlu0 %717 }
 0x1d0   :  { %3477 = vst [vmem:[#allocation18_spill] sm:$0xff] %v2843_v46  ;;  %3478 = vst [vmem:[#allocation19_spill] sm:$0xff] %v2846_v52  ;;  %v858_v32 = vmul.f32 0.03125, %v721_v14  ;;  %v857_v49 = vmul.f32 0.03125, %v718_v29  ;;  %v1011_v41 = vmul.f32 %v2846_v52, %v2846_v52  ;;  %v1012_v19 = vmul.f32 %v2843_v46, %v2843_v46 }
 0x1d2   :  { %v2854_v5 = vsub.f32 %v3479_v0, %v858_v32  ;;  %v2857_v60 = vsub.f32 %v3481_v8, %v857_v49  ;;  %v1179_v55 = vsel %vm637_vm0, %v1011_v41, 0.0  ;;  %v3483_v0 = vld [vmem:[#allocation5_spill] sm:$0xff]  ;;  %v3485_v8 = vld [vmem:[#allocation4_spill] sm:$0xff]  ;;  %v1182_v46 = vsel %vm637_vm0, %v1012_v19, 0.0 }
 0x1d3   :  { %v817_v16 = vpop.xlane.xlu1 %816  ;;  %1087 = vadd.xlane.f32.xlu1 %v1086_v56  ;;  %1180 = vadd.xlane.f32.xlu0 %v1179_v55  ;;  %v814_v13 = vpop.xlane.xlu0 %813 }
 0x1d4   :  { %3480 = vst [vmem:[#allocation3_spill] sm:$0xff] %v2854_v5  ;;  %3482 = vst [vmem:[#allocation2_spill] sm:$0xff] %v2857_v60  ;;  %v890_v14 = vmul.f32 0.03125, %v817_v16  ;;  %v889_v29 = vmul.f32 0.03125, %v814_v13  ;;  %v985_v48 = vmul.f32 %v2857_v60, %v2857_v60  ;;  %v986_v32 = vmul.f32 %v2854_v5, %v2854_v5 }
 0x1d6   :  { %v2867_v49 = vsub.f32 %v3483_v0, %v890_v14  ;;  %v2870_v41 = vsub.f32 %v3485_v8, %v889_v29  ;;  %v1101_v56 = vsel %vm637_vm0, %v985_v48, 0.0  ;;  %v1104_v5 = vsel %vm637_vm0, %v986_v32, 0.0  ;;  %v3487_v14 = vld [vmem:[#allocation7_spill] sm:$0xff]  ;;  %v3489_v29 = vld [vmem:[#allocation6_spill] sm:$0xff] }
 0x1d7   :  { %v715_v55 = vpop.xlane.xlu1 %714  ;;  %1183 = vadd.xlane.f32.xlu1 %v1182_v46  ;;  %1102 = vadd.xlane.f32.xlu0 %v1101_v56  ;;  %v712_v16 = vpop.xlane.xlu0 %711 }
 0x1d8   :  { %3484 = vst [vmem:[#allocation5_spill] sm:$0xff] %v2867_v49  ;;  %3486 = vst [vmem:[#allocation4_spill] sm:$0xff] %v2870_v41  ;;  %v856_v13 = vmul.f32 0.03125, %v715_v55  ;;  %v855_v52 = vmul.f32 0.03125, %v712_v16  ;;  %v1017_v60 = vmul.f32 %v2870_v41, %v2870_v41  ;;  %v1018_v46 = vmul.f32 %v2867_v49, %v2867_v49 }
 0x1da   :  { %v2878_v0 = vsub.f32 %v3487_v14, %v856_v13  ;;  %v2881_v8 = vsub.f32 %v3489_v29, %v855_v52  ;;  %v1197_v19 = vsel %vm637_vm0, %v1017_v60, 0.0  ;;  %v3492_v14 = vld [vmem:[#allocation8_spill] sm:$0xff]  ;;  %v1200_v29 = vsel %vm637_vm0, %v1018_v46, 0.0 }
 0x1db   :  { %v811_v48 = vpop.xlane.xlu1 %810  ;;  %1105 = vadd.xlane.f32.xlu1 %v1104_v5  ;;  %1198 = vadd.xlane.f32.xlu0 %v1197_v19  ;;  %v808_v56 = vpop.xlane.xlu0 %807 }
 0x1dc   :  { %3488 = vst [vmem:[#allocation7_spill] sm:$0xff] %v2878_v0  ;;  %3490 = vst [vmem:[#allocation6_spill] sm:$0xff] %v2881_v8  ;;  %v888_v55 = vmul.f32 0.03125, %v811_v48  ;;  %v887_v16 = vmul.f32 0.03125, %v808_v56  ;;  %v983_v32 = vmul.f32 %v2881_v8, %v2881_v8  ;;  %v984_v13 = vmul.f32 %v2878_v0, %v2878_v0 }
 0x1de   :  { %v2891_v52 = vsub.f32 %v2519_v61, %v888_v55  ;;  %v2894_v60 = vsub.f32 %v3492_v14, %v887_v16  ;;  %v1095_v5 = vsel %vm637_vm0, %v983_v32, 0.0  ;;  %v1098_v0 = vsel %vm637_vm0, %v984_v13, 0.0  ;;  %v3495_v55 = vld [vmem:[#allocation9_spill] sm:$0xff] }
 0x1df   :  { %v733_v19 = vpop.xlane.xlu1 %732  ;;  %1201 = vadd.xlane.f32.xlu1 %v1200_v29  ;;  %1096 = vadd.xlane.f32.xlu0 %v1095_v5  ;;  %v730_v48 = vpop.xlane.xlu0 %729 }
 0x1e0   :  { %3491 = vst [vmem:[#allocation20_spill] sm:$0xff] %v2891_v52  ;;  %3493 = vst [vmem:[#allocation8_spill] sm:$0xff] %v2894_v60  ;;  %v862_v56 = vmul.f32 0.03125, %v733_v19  ;;  %v861_v49 = vmul.f32 0.03125, %v730_v48  ;;  %v1015_v8 = vmul.f32 %v2894_v60, %v2894_v60  ;;  %v1016_v32 = vmul.f32 %v2891_v52, %v2891_v52  ;;  %v3499_v60 = vld [vmem:[#allocation12_spill] sm:$0xff] }
 0x1e2   :  { %v2902_v61 = vsub.f32 %v2529_v36, %v862_v56  ;;  %v2905_v16 = vsub.f32 %v3495_v55, %v861_v49  ;;  %v1191_v46 = vsel %vm637_vm0, %v1015_v8, 0.0  ;;  %v1194_v13 = vsel %vm637_vm0, %v1016_v32, 0.0 }
 0x1e3   :  { %v829_v14 = vpop.xlane.xlu1 %828  ;;  %1099 = vadd.xlane.f32.xlu1 %v1098_v0  ;;  %1192 = vadd.xlane.f32.xlu0 %v1191_v46  ;;  %v826_v29 = vpop.xlane.xlu0 %825  ;;  %v3497_v46 = vld [vmem:[#allocation13_spill] sm:$0xff] }
 0x1e4   :  { %3494 = vst [vmem:[#allocation21_spill] sm:$0xff] %v2902_v61  ;;  %3496 = vst [vmem:[#allocation9_spill] sm:$0xff] %v2905_v16  ;;  %v989_v5 = vmul.f32 %v2905_v16, %v2905_v16  ;;  %v990_v49 = vmul.f32 %v2902_v61, %v2902_v61  ;;  %v894_v55 = vmul.f32 0.03125, %v829_v14  ;;  %v893_v0 = vmul.f32 0.03125, %v826_v29  ;;  %v3501_v29 = vld [vmem:[#allocation11_spill] sm:$0xff] }
 0x1e6   :  { %v1113_v36 = vsel %vm637_vm0, %v989_v5, 0.0  ;;  %v1116_v32 = vsel %vm637_vm0, %v990_v49, 0.0 }
 0x1e7   :  { %v727_v19 = vpop.xlane.xlu1 %726  ;;  %1195 = vadd.xlane.f32.xlu1 %v1194_v13  ;;  %1114 = vadd.xlane.f32.xlu0 %v1113_v36  ;;  %v724_v8 = vpop.xlane.xlu0 %723  ;;  %v2928_v36 = vsub.f32 %v3501_v29, %v894_v55 }
 0x1e8   :  { %v860_v48 = vmul.f32 0.03125, %v727_v19  ;;  %v859_v56 = vmul.f32 0.03125, %v724_v8  ;;  %v3503_v19 = vld [vmem:[#allocation10_spill] sm:$0xff] }
 0x1e9   :  { %3502 = vst [vmem:[#allocation11_spill] sm:$0xff] %v2928_v36  ;;  %v2931_v8 = vsub.f32 %v3503_v19, %v893_v0 }
 0x1ea   :  { %v2917_v52 = vsub.f32 %v3497_v46, %v860_v48  ;;  %v2920_v16 = vsub.f32 %v3499_v60, %v859_v56  ;;  %v3505_v60 = vld [vmem:[#allocation14_spill] sm:$0xff] }
 0x1eb   :  { %v823_v5 = vpop.xlane.xlu1 %822  ;;  %1117 = vadd.xlane.f32.xlu1 %v1116_v32  ;;  %v820_v41 = vpop.xlane.xlu0 %819  ;;  %3504 = vst [vmem:[#allocation10_spill] sm:$0xff] %v2931_v8 }
 0x1ec   :  { %3498 = vst [vmem:[#allocation13_spill] sm:$0xff] %v2917_v52  ;;  %3500 = vst [vmem:[#allocation12_spill] sm:$0xff] %v2920_v16  ;;  %v892_v61 = vmul.f32 0.03125, %v823_v5  ;;  %v891_v30 = vmul.f32 0.03125, %v820_v41  ;;  %v988_v13 = vmul.f32 %v2917_v52, %v2917_v52  ;;  %v987_v14 = vmul.f32 %v2920_v16, %v2920_v16 }
 0x1ee   :  { %v2934_v48 = vsub.f32 %v3505_v60, %v892_v61  ;;  %v2937_v49 = vsub.f32 %v2556_v1, %v891_v30  ;;  %v1110_v41 = vsel %vm637_vm0, %v988_v13, 0.0  ;;  %v1107_v56 = vsel %vm637_vm0, %v987_v14, 0.0 }
 0x1ef   :  { %1111 = vadd.xlane.f32.xlu1 %v1110_v41  ;;  %1108 = vadd.xlane.f32.xlu0 %v1107_v56  ;;  %v1022_v1 = vmul.f32 %v2928_v36, %v2928_v36  ;;  %v1021_v30 = vmul.f32 %v2931_v8, %v2931_v8 }
 0x1f0   :  { %3506 = vst [vmem:[#allocation14_spill] sm:$0xff] %v2934_v48  ;;  %3507 = vst [vmem:[#allocation22_spill] sm:$0xff] %v2937_v49  ;;  %v1020_v46 = vmul.f32 %v2934_v48, %v2934_v48  ;;  %v1019_v55 = vmul.f32 %v2937_v49, %v2937_v49 }
 0x1f1   :  { %v1212_v32 = vsel %vm637_vm0, %v1022_v1, 0.0  ;;  %v1209_v5 = vsel %vm637_vm0, %v1021_v30, 0.0 }
 0x1f2   :  { %v1206_v0 = vsel %vm637_vm0, %v1020_v46, 0.0  ;;  %v1203_v61 = vsel %vm637_vm0, %v1019_v55, 0.0 }
 0x1f3   :  { %1207 = vadd.xlane.f32.xlu1 %v1206_v0  ;;  %1204 = vadd.xlane.f32.xlu0 %v1203_v61 }
 0x1f7   :  { %1213 = vadd.xlane.f32.xlu1 %v1212_v32  ;;  %1210 = vadd.xlane.f32.xlu0 %v1209_v5 }
 0x200   :  { %v1031_v13 = vpop.xlane.xlu0 %1030 }
 0x201   :  { %v1217_v14 = vmul.f32 0.03125, %v1031_v13 }
 0x203   :  { %v1281_v29 = vadd.f32 1e-05, %v1217_v14 }
 0x204   :  { %v1034_v19 = vpop.xlane.xlu1 %1033  ;;  %v1127_v60 = vpop.xlane.xlu0 %1126 }
 0x205   :  { %1964 = vrsqrt.f32 %v1281_v29  ;;  %v1218_v41 = vmul.f32 0.03125, %v1034_v19  ;;  %v1249_v56 = vmul.f32 0.03125, %v1127_v60 }
 0x207   :  { %v1282_v46 = vadd.f32 1e-05, %v1218_v41  ;;  %v1313_v55 = vadd.f32 1e-05, %v1249_v56 }
 0x208   :  { %v1130_v36 = vpop.xlane.xlu1 %1129  ;;  %v1025_v8 = vpop.xlane.xlu0 %1024 }
 0x209   :  { %1966 = vrsqrt.f32 %v1282_v46  ;;  %v1250_v0 = vmul.f32 0.03125, %v1130_v36  ;;  %v1215_v61 = vmul.f32 0.03125, %v1025_v8  ;;  %v2956_v36 = vld [vmem:[%s3424_s3] ss:$0 sm:$0xff] }
 0x20a   :  { %1968 = vrsqrt.f32 %v1313_v55 }
 0x20b   :  { %v1314_v1 = vadd.f32 1e-05, %v1250_v0  ;;  %v1279_v30 = vadd.f32 1e-05, %v1215_v61  ;;  %v2962_v0 = vld [vmem:[%s3425_s4] ss:$0 sm:$0xff] }
 0x20c   :  { %v1028_v32 = vpop.xlane.xlu1 %1027  ;;  %v1121_v5 = vpop.xlane.xlu0 %1120 }
 0x20d   :  { %1970 = vrsqrt.f32 %v1314_v1  ;;  %v1216_v13 = vmul.f32 0.03125, %v1028_v32  ;;  %v1247_v14 = vmul.f32 0.03125, %v1121_v5 }
 0x20e   :  { %1972 = vrsqrt.f32 %v1279_v30 }
 0x20f   :  { %v1280_v49 = vadd.f32 1e-05, %v1216_v13  ;;  %v1311_v29 = vadd.f32 1e-05, %v1247_v14 }
 0x210   :  { %v1124_v19 = vpop.xlane.xlu1 %1123  ;;  %v1043_v60 = vpop.xlane.xlu0 %1042 }
 0x211   :  { %1974 = vrsqrt.f32 %v1280_v49  ;;  %v1248_v41 = vmul.f32 0.03125, %v1124_v19  ;;  %v1221_v56 = vmul.f32 0.03125, %v1043_v60  ;;  %v3508_v19 = vld [vmem:[#allocation15_spill] sm:$0xff] }
 0x212   :  { %v1965_v48 = vpop.eup %1964  ;;  %1976 = vrsqrt.f32 %v1311_v29 }
 0x213   :  { %v1409_v8 = vmul.f32 %v1965_v48, %v2573_v11  ;;  %v1312_v46 = vadd.f32 1e-05, %v1248_v41  ;;  %v1285_v55 = vadd.f32 1e-05, %v1221_v56 }
 0x214   :  { %v1046_v61 = vpop.xlane.xlu1 %1045  ;;  %v1139_v49 = vpop.xlane.xlu0 %1138 }
 0x215   :  { %v1480_v1 = vmul.f32 %v2956_v36, %v1409_v8  ;;  %1978 = vrsqrt.f32 %v1312_v46  ;;  %v1222_v30 = vmul.f32 0.03125, %v1046_v61  ;;  %v1253_v32 = vmul.f32 0.03125, %v1139_v49 }
 0x216   :  { %v1967_v5 = vpop.eup %1966  ;;  %1980 = vrsqrt.f32 %v1285_v55 }
 0x217   :  { %v1969_v13 = vpop.eup %1968  ;;  %v1551_v14 = vadd.f32 %v2962_v0, %v1480_v1  ;;  %v1410_v11 = vmul.f32 %v1967_v5, %v2580_v35  ;;  %v1286_v48 = vadd.f32 1e-05, %v1222_v30  ;;  %v1317_v29 = vadd.f32 1e-05, %v1253_v32 }
 0x218   :  { %v1441_v60 = vmul.f32 %v1969_v13, %v3508_v19  ;;  %v1142_v41 = vpop.xlane.xlu1 %1141  ;;  %v1037_v56 = vpop.xlane.xlu0 %1036 }
 0x219   :  { %v1615_v16 = vmax.f32 %v1551_v14, 0.0  ;;  %v1481_v52 = vmul.f32 %v2956_v36, %v1410_v11  ;;  %1982 = vrsqrt.f32 %v1286_v48  ;;  %v1254_v8 = vmul.f32 0.03125, %v1142_v41 }
 0x21a   :  { %v1971_v46 = vpop.eup %1970  ;;  %v1512_v61 = vmul.f32 %v2956_v36, %v1441_v60  ;;  %1984 = vrsqrt.f32 %v1317_v29  ;;  %v1219_v55 = vmul.f32 0.03125, %v1037_v56 }
 0x21b   :  { %v1973_v49 = vpop.eup %1972  ;;  %1679 = vst.msk [vmem:[%s3426_s5 + $0x10] sm:$0xff] %vm637_vm0, %v1615_v16  ;;  %v1552_v35 = vadd.f32 %v2962_v0, %v1481_v52  ;;  %v1442_v1 = vmul.f32 %v1971_v46, %v2590_v58  ;;  %v1318_v30 = vadd.f32 1e-05, %v1254_v8 }
 0x21c   :  { %v1583_v32 = vadd.f32 %v2962_v0, %v1512_v61  ;;  %v1407_v5 = vmul.f32 %v1973_v49, %v2583_v57  ;;  %v1283_v13 = vadd.f32 1e-05, %v1219_v55  ;;  %v1040_v14 = vpop.xlane.xlu1 %1039  ;;  %v1133_v11 = vpop.xlane.xlu0 %1132  ;;  %v3509_v61 = vld [vmem:[#allocation16_spill] sm:$0xff] }
 0x21d   :  { %v1616_v48 = vmax.f32 %v1552_v35, 0.0  ;;  %v1513_v29 = vmul.f32 %v2956_v36, %v1442_v1  ;;  %1986 = vrsqrt.f32 %v1318_v30  ;;  %v1220_v19 = vmul.f32 0.03125, %v1040_v14 }
 0x21e   :  { %v1975_v60 = vpop.eup %1974  ;;  %v1647_v41 = vmax.f32 %v1583_v32, 0.0  ;;  %v1478_v16 = vmul.f32 %v2956_v36, %v1407_v5  ;;  %1988 = vrsqrt.f32 %v1283_v13  ;;  %v1251_v52 = vmul.f32 0.03125, %v1133_v11 }
 0x21f   :  { %v1977_v58 = vpop.eup %1976  ;;  %1680 = vst.msk [vmem:[%s3426_s5 + $0x18] sm:$0xff] %vm637_vm0, %v1616_v48  ;;  %v1584_v57 = vadd.f32 %v2962_v0, %v1513_v29  ;;  %v1408_v56 = vmul.f32 %v1975_v60, %v2606_v17  ;;  %v1284_v8 = vadd.f32 1e-05, %v1220_v19 }
 0x220   :  { %1711 = vst.msk [vmem:[%s3426_s5 + $0x110] sm:$0xff] %vm637_vm0, %v1647_v41  ;;  %v1549_v46 = vadd.f32 %v2962_v0, %v1478_v16  ;;  %v1439_v55 = vmul.f32 %v1977_v58, %v3509_v61  ;;  %v1315_v49 = vadd.f32 1e-05, %v1251_v52  ;;  %v1136_v35 = vpop.xlane.xlu1 %1135  ;;  %v1055_v1 = vpop.xlane.xlu0 %1054 }
 0x221   :  { %v1648_v30 = vmax.f32 %v1584_v57, 0.0  ;;  %v1479_v32 = vmul.f32 %v2956_v36, %v1408_v56  ;;  %1990 = vrsqrt.f32 %v1284_v8  ;;  %v1252_v5 = vmul.f32 0.03125, %v1136_v35 }
 0x222   :  { %v1979_v13 = vpop.eup %1978  ;;  %v1613_v17 = vmax.f32 %v1549_v46, 0.0  ;;  %v1510_v14 = vmul.f32 %v2956_v36, %v1439_v55  ;;  %1992 = vrsqrt.f32 %v1315_v49  ;;  %v1225_v11 = vmul.f32 0.03125, %v1055_v1 }
 0x223   :  { %v1981_v48 = vpop.eup %1980  ;;  %1712 = vst.msk [vmem:[%s3426_s5 + $0x118] sm:$0xff] %vm637_vm0, %v1648_v30  ;;  %v1550_v29 = vadd.f32 %v2962_v0, %v1479_v32  ;;  %v1440_v19 = vmul.f32 %v1979_v13, %v2603_v54  ;;  %v1316_v60 = vadd.f32 1e-05, %v1252_v5 }
 0x224   :  { %1677 = vst.msk [vmem:[%s3426_s5] sm:$0xff] %vm637_vm0, %v1613_v17  ;;  %v1581_v41 = vadd.f32 %v2962_v0, %v1510_v14  ;;  %v1413_v16 = vmul.f32 %v1981_v48, %v2617_v62  ;;  %v1289_v52 = vadd.f32 1e-05, %v1225_v11  ;;  %v1058_v58 = vpop.xlane.xlu1 %1057  ;;  %v1151_v57 = vpop.xlane.xlu0 %1150 }
 0x225   :  { %v1614_v56 = vmax.f32 %v1550_v29, 0.0  ;;  %v1511_v8 = vmul.f32 %v2956_v36, %v1440_v19  ;;  %1994 = vrsqrt.f32 %v1316_v60  ;;  %v1226_v46 = vmul.f32 0.03125, %v1058_v58 }
 0x226   :  { %v1983_v61 = vpop.eup %1982  ;;  %v1645_v54 = vmax.f32 %v1581_v41, 0.0  ;;  %v1484_v55 = vmul.f32 %v2956_v36, %v1413_v16  ;;  %1996 = vrsqrt.f32 %v1289_v52  ;;  %v1257_v49 = vmul.f32 0.03125, %v1151_v57 }
 0x227   :  { %v1985_v35 = vpop.eup %1984  ;;  %1678 = vst.msk [vmem:[%s3426_s5 + $0x8] sm:$0xff] %vm637_vm0, %v1614_v56  ;;  %v1582_v62 = vadd.f32 %v2962_v0, %v1511_v8  ;;  %v1414_v1 = vmul.f32 %v1983_v61, %v2614_v63  ;;  %v1290_v30 = vadd.f32 1e-05, %v1226_v46 }
 0x228   :  { %1709 = vst.msk [vmem:[%s3426_s5 + $0x100] sm:$0xff] %vm637_vm0, %v1645_v54  ;;  %v1555_v32 = vadd.f32 %v2962_v0, %v1484_v55  ;;  %v1445_v5 = vmul.f32 %v1985_v35, %v2630_v26  ;;  %v1321_v13 = vadd.f32 1e-05, %v1257_v49  ;;  %v1154_v17 = vpop.xlane.xlu1 %1153  ;;  %v1049_v14 = vpop.xlane.xlu0 %1048 }
 0x229   :  { %v1646_v11 = vmax.f32 %v1582_v62, 0.0  ;;  %v1485_v48 = vmul.f32 %v2956_v36, %v1414_v1  ;;  %1998 = vrsqrt.f32 %v1290_v30  ;;  %v1258_v29 = vmul.f32 0.03125, %v1154_v17 }
 0x22a   :  { %v1987_v19 = vpop.eup %1986  ;;  %v1619_v63 = vmax.f32 %v1555_v32, 0.0  ;;  %v1516_v60 = vmul.f32 %v2956_v36, %v1445_v5  ;;  %2000 = vrsqrt.f32 %v1321_v13  ;;  %v1223_v41 = vmul.f32 0.03125, %v1049_v14 }
 0x22b   :  { %v1989_v16 = vpop.eup %1988  ;;  %1710 = vst.msk [vmem:[%s3426_s5 + $0x108] sm:$0xff] %vm637_vm0, %v1646_v11  ;;  %v1556_v26 = vadd.f32 %v2962_v0, %v1485_v48  ;;  %v1446_v52 = vmul.f32 %v1987_v19, %v2627_v4  ;;  %v1322_v58 = vadd.f32 1e-05, %v1258_v29 }
 0x22c   :  { %1683 = vst.msk [vmem:[%s3426_s5 + $0x30] sm:$0xff] %vm637_vm0, %v1619_v63  ;;  %v1587_v57 = vadd.f32 %v2962_v0, %v1516_v60  ;;  %v1411_v56 = vmul.f32 %v1989_v16, %v2641_v9  ;;  %v1287_v8 = vadd.f32 1e-05, %v1223_v41  ;;  %v1052_v46 = vpop.xlane.xlu1 %1051  ;;  %v1145_v61 = vpop.xlane.xlu0 %1144 }
 0x22d   :  { %v1620_v54 = vmax.f32 %v1556_v26, 0.0  ;;  %v1517_v55 = vmul.f32 %v2956_v36, %v1446_v52  ;;  %2002 = vrsqrt.f32 %v1322_v58  ;;  %v1224_v49 = vmul.f32 0.03125, %v1052_v46 }
 0x22e   :  { %v1991_v35 = vpop.eup %1990  ;;  %v1651_v4 = vmax.f32 %v1587_v57, 0.0  ;;  %v1482_v62 = vmul.f32 %v2956_v36, %v1411_v56  ;;  %2004 = vrsqrt.f32 %v1287_v8  ;;  %v1255_v1 = vmul.f32 0.03125, %v1145_v61 }
 0x22f   :  { %v1993_v30 = vpop.eup %1992  ;;  %1684 = vst.msk [vmem:[%s3426_s5 + $0x38] sm:$0xff] %vm637_vm0, %v1620_v54  ;;  %v1588_v9 = vadd.f32 %v2962_v0, %v1517_v55  ;;  %v1412_v32 = vmul.f32 %v1991_v35, %v2638_v10  ;;  %v1288_v5 = vadd.f32 1e-05, %v1224_v49 }
 0x230   :  { %1715 = vst.msk [vmem:[%s3426_s5 + $0x130] sm:$0xff] %vm637_vm0, %v1651_v4  ;;  %v1553_v13 = vadd.f32 %v2962_v0, %v1482_v62  ;;  %v1443_v17 = vmul.f32 %v1993_v30, %v2654_v47  ;;  %v1319_v14 = vadd.f32 1e-05, %v1255_v1  ;;  %v1148_v11 = vpop.xlane.xlu1 %1147  ;;  %v1067_v48 = vpop.xlane.xlu0 %1066 }
 0x231   :  { %v1652_v29 = vmax.f32 %v1588_v9, 0.0  ;;  %v1483_v19 = vmul.f32 %v2956_v36, %v1412_v32  ;;  %2006 = vrsqrt.f32 %v1288_v5  ;;  %v1256_v63 = vmul.f32 0.03125, %v1148_v11 }
 0x232   :  { %v1995_v60 = vpop.eup %1994  ;;  %v1617_v10 = vmax.f32 %v1553_v13, 0.0  ;;  %v1514_v41 = vmul.f32 %v2956_v36, %v1443_v17  ;;  %2008 = vrsqrt.f32 %v1319_v14  ;;  %v1229_v16 = vmul.f32 0.03125, %v1067_v48 }
 0x233   :  { %v1997_v26 = vpop.eup %1996  ;;  %1716 = vst.msk [vmem:[%s3426_s5 + $0x138] sm:$0xff] %vm637_vm0, %v1652_v29  ;;  %v1554_v47 = vadd.f32 %v2962_v0, %v1483_v19  ;;  %v1444_v52 = vmul.f32 %v1995_v60, %v2651_v15  ;;  %v1320_v58 = vadd.f32 1e-05, %v1256_v63 }
 0x234   :  { %1681 = vst.msk [vmem:[%s3426_s5 + $0x20] sm:$0xff] %vm637_vm0, %v1617_v10  ;;  %v1585_v57 = vadd.f32 %v2962_v0, %v1514_v41  ;;  %v1417_v56 = vmul.f32 %v1997_v26, %v2665_v22  ;;  %v1293_v8 = vadd.f32 1e-05, %v1229_v16  ;;  %v1070_v46 = vpop.xlane.xlu1 %1069  ;;  %v1163_v61 = vpop.xlane.xlu0 %1162 }
 0x235   :  { %v1618_v54 = vmax.f32 %v1554_v47, 0.0  ;;  %v1515_v55 = vmul.f32 %v2956_v36, %v1444_v52  ;;  %2010 = vrsqrt.f32 %v1320_v58  ;;  %v1230_v49 = vmul.f32 0.03125, %v1070_v46 }
 0x236   :  { %v1999_v35 = vpop.eup %1998  ;;  %v1649_v15 = vmax.f32 %v1585_v57, 0.0  ;;  %v1488_v4 = vmul.f32 %v2956_v36, %v1417_v56  ;;  %2012 = vrsqrt.f32 %v1293_v8  ;;  %v1261_v62 = vmul.f32 0.03125, %v1163_v61 }
 0x237   :  { %v2001_v1 = vpop.eup %2000  ;;  %1682 = vst.msk [vmem:[%s3426_s5 + $0x28] sm:$0xff] %vm637_vm0, %v1618_v54  ;;  %v1586_v22 = vadd.f32 %v2962_v0, %v1515_v55  ;;  %v1418_v30 = vmul.f32 %v1999_v35, %v2662_v23  ;;  %v1294_v9 = vadd.f32 1e-05, %v1230_v49 }
 0x238   :  { %1713 = vst.msk [vmem:[%s3426_s5 + $0x120] sm:$0xff] %vm637_vm0, %v1649_v15  ;;  %v1559_v32 = vadd.f32 %v2962_v0, %v1488_v4  ;;  %v1449_v5 = vmul.f32 %v2001_v1, %v2678_v44  ;;  %v1325_v13 = vadd.f32 1e-05, %v1261_v62  ;;  %v1166_v17 = vpop.xlane.xlu1 %1165  ;;  %v1061_v14 = vpop.xlane.xlu0 %1060 }
 0x239   :  { %v1650_v11 = vmax.f32 %v1586_v22, 0.0  ;;  %v1489_v48 = vmul.f32 %v2956_v36, %v1418_v30  ;;  %2014 = vrsqrt.f32 %v1294_v9  ;;  %v1262_v29 = vmul.f32 0.03125, %v1166_v17 }
 0x23a   :  { %v2003_v19 = vpop.eup %2002  ;;  %v1623_v23 = vmax.f32 %v1559_v32, 0.0  ;;  %v1520_v63 = vmul.f32 %v2956_v36, %v1449_v5  ;;  %2016 = vrsqrt.f32 %v1325_v13  ;;  %v1227_v60 = vmul.f32 0.03125, %v1061_v14 }
 0x23b   :  { %v2005_v10 = vpop.eup %2004  ;;  %1714 = vst.msk [vmem:[%s3426_s5 + $0x128] sm:$0xff] %vm637_vm0, %v1650_v11  ;;  %v1560_v44 = vadd.f32 %v2962_v0, %v1489_v48  ;;  %v1450_v41 = vmul.f32 %v2003_v19, %v2675_v28  ;;  %v1326_v16 = vadd.f32 1e-05, %v1262_v29 }
 0x23c   :  { %1687 = vst.msk [vmem:[%s3426_s5 + $0x50] sm:$0xff] %vm637_vm0, %v1623_v23  ;;  %v1591_v26 = vadd.f32 %v2962_v0, %v1520_v63  ;;  %v1415_v47 = vmul.f32 %v2005_v10, %v2689_v33  ;;  %v1291_v52 = vadd.f32 1e-05, %v1227_v60  ;;  %v1064_v58 = vpop.xlane.xlu1 %1063  ;;  %v1157_v57 = vpop.xlane.xlu0 %1156 }
 0x23d   :  { %v1624_v56 = vmax.f32 %v1560_v44, 0.0  ;;  %v1521_v8 = vmul.f32 %v2956_v36, %v1450_v41  ;;  %2018 = vrsqrt.f32 %v1326_v16  ;;  %v1228_v46 = vmul.f32 0.03125, %v1064_v58 }
 0x23e   :  { %v2007_v61 = vpop.eup %2006  ;;  %v1655_v28 = vmax.f32 %v1591_v26, 0.0  ;;  %v1486_v54 = vmul.f32 %v2956_v36, %v1415_v47  ;;  %2020 = vrsqrt.f32 %v1291_v52  ;;  %v1259_v55 = vmul.f32 0.03125, %v1157_v57 }
 0x23f   :  { %v2009_v49 = vpop.eup %2008  ;;  %1688 = vst.msk [vmem:[%s3426_s5 + $0x58] sm:$0xff] %vm637_vm0, %v1624_v56  ;;  %v1592_v33 = vadd.f32 %v2962_v0, %v1521_v8  ;;  %v1416_v35 = vmul.f32 %v2007_v61, %v2686_v34  ;;  %v1292_v15 = vadd.f32 1e-05, %v1228_v46 }
 0x240   :  { %1719 = vst.msk [vmem:[%s3426_s5 + $0x150] sm:$0xff] %vm637_vm0, %v1655_v28  ;;  %v1557_v4 = vadd.f32 %v2962_v0, %v1486_v54  ;;  %v1447_v62 = vmul.f32 %v2009_v49, %v2702_v45  ;;  %v1323_v1 = vadd.f32 1e-05, %v1259_v55  ;;  %v1160_v22 = vpop.xlane.xlu1 %1159  ;;  %v1079_v30 = vpop.xlane.xlu0 %1078 }
 0x241   :  { %v1656_v9 = vmax.f32 %v1592_v33, 0.0  ;;  %v1487_v32 = vmul.f32 %v2956_v36, %v1416_v35  ;;  %2022 = vrsqrt.f32 %v1292_v15  ;;  %v1260_v5 = vmul.f32 0.03125, %v1160_v22 }
 0x242   :  { %v2011_v13 = vpop.eup %2010  ;;  %v1621_v34 = vmax.f32 %v1557_v4, 0.0  ;;  %v1518_v17 = vmul.f32 %v2956_v36, %v1447_v62  ;;  %2024 = vrsqrt.f32 %v1323_v1  ;;  %v1233_v14 = vmul.f32 0.03125, %v1079_v30 }
 0x243   :  { %v2013_v11 = vpop.eup %2012  ;;  %1720 = vst.msk [vmem:[%s3426_s5 + $0x158] sm:$0xff] %vm637_vm0, %v1656_v9  ;;  %v1558_v45 = vadd.f32 %v2962_v0, %v1487_v32  ;;  %v1448_v48 = vmul.f32 %v2011_v13, %v2699_v39  ;;  %v1324_v29 = vadd.f32 1e-05, %v1260_v5 }
 0x244   :  { %1685 = vst.msk [vmem:[%s3426_s5 + $0x40] sm:$0xff] %vm637_vm0, %v1621_v34  ;;  %v1589_v19 = vadd.f32 %v2962_v0, %v1518_v17  ;;  %v1421_v23 = vmul.f32 %v2013_v11, %v2713_v50  ;;  %v1297_v63 = vadd.f32 1e-05, %v1233_v14  ;;  %v1082_v60 = vpop.xlane.xlu1 %1081  ;;  %v1175_v10 = vpop.xlane.xlu0 %1174 }
 0x245   :  { %v1622_v44 = vmax.f32 %v1558_v45, 0.0  ;;  %v1519_v41 = vmul.f32 %v2956_v36, %v1448_v48  ;;  %2026 = vrsqrt.f32 %v1324_v29  ;;  %v1234_v16 = vmul.f32 0.03125, %v1082_v60 }
 0x246   :  { %v2015_v26 = vpop.eup %2014  ;;  %v1653_v39 = vmax.f32 %v1589_v19, 0.0  ;;  %v1492_v47 = vmul.f32 %v2956_v36, %v1421_v23  ;;  %2028 = vrsqrt.f32 %v1297_v63  ;;  %v1265_v52 = vmul.f32 0.03125, %v1175_v10 }
 0x247   :  { %v2017_v58 = vpop.eup %2016  ;;  %1686 = vst.msk [vmem:[%s3426_s5 + $0x48] sm:$0xff] %vm637_vm0, %v1622_v44  ;;  %v1590_v50 = vadd.f32 %v2962_v0, %v1519_v41  ;;  %v1422_v57 = vmul.f32 %v2015_v26, %v2710_v51  ;;  %v1298_v56 = vadd.f32 1e-05, %v1234_v16 }
 0x248   :  { %1717 = vst.msk [vmem:[%s3426_s5 + $0x140] sm:$0xff] %vm637_vm0, %v1653_v39  ;;  %v1563_v8 = vadd.f32 %v2962_v0, %v1492_v47  ;;  %v1453_v46 = vmul.f32 %v2017_v58, %v2726_v40  ;;  %v1329_v61 = vadd.f32 1e-05, %v1265_v52  ;;  %v1178_v28 = vpop.xlane.xlu1 %1177  ;;  %v1073_v54 = vpop.xlane.xlu0 %1072 }
 0x249   :  { %v1654_v55 = vmax.f32 %v1590_v50, 0.0  ;;  %v1493_v49 = vmul.f32 %v2956_v36, %v1422_v57  ;;  %2030 = vrsqrt.f32 %v1298_v56  ;;  %v1266_v33 = vmul.f32 0.03125, %v1178_v28 }
 0x24a   :  { %v2019_v35 = vpop.eup %2018  ;;  %v1627_v51 = vmax.f32 %v1563_v8, 0.0  ;;  %v1524_v15 = vmul.f32 %v2956_v36, %v1453_v46  ;;  %2032 = vrsqrt.f32 %v1329_v61  ;;  %v1231_v4 = vmul.f32 0.03125, %v1073_v54 }
 0x24b   :  { %v2021_v62 = vpop.eup %2020  ;;  %1718 = vst.msk [vmem:[%s3426_s5 + $0x148] sm:$0xff] %vm637_vm0, %v1654_v55  ;;  %v1564_v40 = vadd.f32 %v2962_v0, %v1493_v49  ;;  %v1454_v1 = vmul.f32 %v2019_v35, %v2723_v59  ;;  %v1330_v22 = vadd.f32 1e-05, %v1266_v33 }
 0x24c   :  { %1691 = vst.msk [vmem:[%s3426_s5 + $0x70] sm:$0xff] %vm637_vm0, %v1627_v51  ;;  %v1595_v30 = vadd.f32 %v2962_v0, %v1524_v15  ;;  %v1419_v9 = vmul.f32 %v2021_v62, %v2737_v2  ;;  %v1295_v32 = vadd.f32 1e-05, %v1231_v4  ;;  %v1076_v5 = vpop.xlane.xlu1 %1075  ;;  %v1169_v13 = vpop.xlane.xlu0 %1168 }
 0x24d   :  { %v1628_v34 = vmax.f32 %v1564_v40, 0.0  ;;  %v1525_v17 = vmul.f32 %v2956_v36, %v1454_v1  ;;  %2034 = vrsqrt.f32 %v1330_v22  ;;  %v1232_v14 = vmul.f32 0.03125, %v1076_v5 }
 0x24e   :  { %v2023_v11 = vpop.eup %2022  ;;  %v1659_v59 = vmax.f32 %v1595_v30, 0.0  ;;  %v1490_v45 = vmul.f32 %v2956_v36, %v1419_v9  ;;  %2036 = vrsqrt.f32 %v1295_v32  ;;  %v1263_v48 = vmul.f32 0.03125, %v1169_v13 }
 0x24f   :  { %v2025_v29 = vpop.eup %2024  ;;  %1692 = vst.msk [vmem:[%s3426_s5 + $0x78] sm:$0xff] %vm637_vm0, %v1628_v34  ;;  %v1596_v2 = vadd.f32 %v2962_v0, %v1525_v17  ;;  %v1420_v19 = vmul.f32 %v2023_v11, %v2734_v3  ;;  %v1296_v23 = vadd.f32 1e-05, %v1232_v14 }
 0x250   :  { %1723 = vst.msk [vmem:[%s3426_s5 + $0x170] sm:$0xff] %vm637_vm0, %v1659_v59  ;;  %v1561_v63 = vadd.f32 %v2962_v0, %v1490_v45  ;;  %v1451_v60 = vmul.f32 %v2025_v29, %v2750_v20  ;;  %v1327_v10 = vadd.f32 1e-05, %v1263_v48  ;;  %v1172_v44 = vpop.xlane.xlu1 %1171  ;;  %v1091_v41 = vpop.xlane.xlu0 %1090 }
 0x251   :  { %v1660_v16 = vmax.f32 %v1596_v2, 0.0  ;;  %v1491_v26 = vmul.f32 %v2956_v36, %v1420_v19  ;;  %2038 = vrsqrt.f32 %v1296_v23  ;;  %v1264_v39 = vmul.f32 0.03125, %v1172_v44 }
 0x252   :  { %v2027_v47 = vpop.eup %2026  ;;  %v1625_v3 = vmax.f32 %v1561_v63, 0.0  ;;  %v1522_v52 = vmul.f32 %v2956_v36, %v1451_v60  ;;  %2040 = vrsqrt.f32 %v1327_v10  ;;  %v1237_v58 = vmul.f32 0.03125, %v1091_v41 }
 0x253   :  { %v2029_v50 = vpop.eup %2028  ;;  %1724 = vst.msk [vmem:[%s3426_s5 + $0x178] sm:$0xff] %vm637_vm0, %v1660_v16  ;;  %v1562_v20 = vadd.f32 %v2962_v0, %v1491_v26  ;;  %v1452_v57 = vmul.f32 %v2027_v47, %v2747_v12  ;;  %v1328_v56 = vadd.f32 1e-05, %v1264_v39 }
 0x254   :  { %1689 = vst.msk [vmem:[%s3426_s5 + $0x60] sm:$0xff] %vm637_vm0, %v1625_v3  ;;  %v1593_v8 = vadd.f32 %v2962_v0, %v1522_v52  ;;  %v1425_v46 = vmul.f32 %v2029_v50, %v2761_v21  ;;  %v1301_v61 = vadd.f32 1e-05, %v1237_v58  ;;  %v1094_v28 = vpop.xlane.xlu1 %1093  ;;  %v1187_v54 = vpop.xlane.xlu0 %1186 }
 0x255   :  { %v1626_v55 = vmax.f32 %v1562_v20, 0.0  ;;  %v1523_v49 = vmul.f32 %v2956_v36, %v1452_v57  ;;  %2042 = vrsqrt.f32 %v1328_v56  ;;  %v1238_v33 = vmul.f32 0.03125, %v1094_v28 }
 0x256   :  { %v2031_v35 = vpop.eup %2030  ;;  %v1657_v12 = vmax.f32 %v1593_v8, 0.0  ;;  %v1496_v51 = vmul.f32 %v2956_v36, %v1425_v46  ;;  %2044 = vrsqrt.f32 %v1301_v61  ;;  %v1269_v15 = vmul.f32 0.03125, %v1187_v54 }
 0x257   :  { %v2033_v4 = vpop.eup %2032  ;;  %1690 = vst.msk [vmem:[%s3426_s5 + $0x68] sm:$0xff] %vm637_vm0, %v1626_v55  ;;  %v1594_v21 = vadd.f32 %v2962_v0, %v1523_v49  ;;  %v1426_v62 = vmul.f32 %v2031_v35, %v2758_v24  ;;  %v1302_v40 = vadd.f32 1e-05, %v1238_v33 }
 0x258   :  { %1721 = vst.msk [vmem:[%s3426_s5 + $0x160] sm:$0xff] %vm637_vm0, %v1657_v12  ;;  %v1567_v1 = vadd.f32 %v2962_v0, %v1496_v51  ;;  %v1457_v22 = vmul.f32 %v2033_v4, %v2774_v25  ;;  %v1333_v30 = vadd.f32 1e-05, %v1269_v15  ;;  %v1190_v9 = vpop.xlane.xlu1 %1189  ;;  %v1085_v32 = vpop.xlane.xlu0 %1084 }
 0x259   :  { %v1658_v5 = vmax.f32 %v1594_v21, 0.0  ;;  %v1497_v13 = vmul.f32 %v2956_v36, %v1426_v62  ;;  %2046 = vrsqrt.f32 %v1302_v40  ;;  %v1270_v34 = vmul.f32 0.03125, %v1190_v9 }
 0x25a   :  { %v2035_v17 = vpop.eup %2034  ;;  %v1631_v24 = vmax.f32 %v1567_v1, 0.0  ;;  %v1528_v14 = vmul.f32 %v2956_v36, %v1457_v22  ;;  %2048 = vrsqrt.f32 %v1333_v30  ;;  %v1235_v11 = vmul.f32 0.03125, %v1085_v32 }
 0x25b   :  { %v2037_v59 = vpop.eup %2036  ;;  %1722 = vst.msk [vmem:[%s3426_s5 + $0x168] sm:$0xff] %vm637_vm0, %v1658_v5  ;;  %v1568_v25 = vadd.f32 %v2962_v0, %v1497_v13  ;;  %v1458_v45 = vmul.f32 %v2035_v17, %v2771_v31  ;;  %v1334_v48 = vadd.f32 1e-05, %v1270_v34 }
 0x25c   :  { %1695 = vst.msk [vmem:[%s3426_s5 + $0x90] sm:$0xff] %vm637_vm0, %v1631_v24  ;;  %v1599_v29 = vadd.f32 %v2962_v0, %v1528_v14  ;;  %v1423_v2 = vmul.f32 %v2037_v59, %v2785_v38  ;;  %v1299_v19 = vadd.f32 1e-05, %v1235_v11  ;;  %v1088_v23 = vpop.xlane.xlu1 %1087  ;;  %v1181_v63 = vpop.xlane.xlu0 %1180 }
 0x25d   :  { %v1632_v60 = vmax.f32 %v1568_v25, 0.0  ;;  %v1529_v10 = vmul.f32 %v2956_v36, %v1458_v45  ;;  %2050 = vrsqrt.f32 %v1334_v48  ;;  %v1236_v44 = vmul.f32 0.03125, %v1088_v23 }
 0x25e   :  { %v2039_v41 = vpop.eup %2038  ;;  %v1663_v31 = vmax.f32 %v1599_v29, 0.0  ;;  %v1494_v16 = vmul.f32 %v2956_v36, %v1423_v2  ;;  %2052 = vrsqrt.f32 %v1299_v19  ;;  %v1267_v26 = vmul.f32 0.03125, %v1181_v63 }
 0x25f   :  { %v2041_v39 = vpop.eup %2040  ;;  %1696 = vst.msk [vmem:[%s3426_s5 + $0x98] sm:$0xff] %vm637_vm0, %v1632_v60  ;;  %v1600_v38 = vadd.f32 %v2962_v0, %v1529_v10  ;;  %v1424_v47 = vmul.f32 %v2039_v41, %v2782_v42  ;;  %v1300_v3 = vadd.f32 1e-05, %v1236_v44 }
 0x260   :  { %1727 = vst.msk [vmem:[%s3426_s5 + $0x190] sm:$0xff] %vm637_vm0, %v1663_v31  ;;  %v1565_v52 = vadd.f32 %v2962_v0, %v1494_v16  ;;  %v1455_v58 = vmul.f32 %v2041_v39, %v2798_v43  ;;  %v1331_v50 = vadd.f32 1e-05, %v1267_v26  ;;  %v1184_v20 = vpop.xlane.xlu1 %1183  ;;  %v1103_v57 = vpop.xlane.xlu0 %1102 }
 0x261   :  { %v1664_v56 = vmax.f32 %v1600_v38, 0.0  ;;  %v1495_v8 = vmul.f32 %v2956_v36, %v1424_v47  ;;  %2054 = vrsqrt.f32 %v1300_v3  ;;  %v1268_v46 = vmul.f32 0.03125, %v1184_v20 }
 0x262   :  { %v2043_v61 = vpop.eup %2042  ;;  %v1629_v42 = vmax.f32 %v1565_v52, 0.0  ;;  %v1526_v28 = vmul.f32 %v2956_v36, %v1455_v58  ;;  %2056 = vrsqrt.f32 %v1331_v50  ;;  %v1241_v54 = vmul.f32 0.03125, %v1103_v57  ;;  %v3510_v52 = vld [vmem:[#allocation17_spill] sm:$0xff]  ;;  %v3511_v57 = vld [vmem:[#allocation19_spill] sm:$0xff] }
 0x263   :  { %v2045_v55 = vpop.eup %2044  ;;  %1728 = vst.msk [vmem:[%s3426_s5 + $0x198] sm:$0xff] %vm637_vm0, %v1664_v56  ;;  %v1566_v43 = vadd.f32 %v2962_v0, %v1495_v8  ;;  %v1456_v49 = vmul.f32 %v2043_v61, %v2795_v53  ;;  %v1332_v33 = vadd.f32 1e-05, %v1268_v46 }
 0x264   :  { %1693 = vst.msk [vmem:[%s3426_s5 + $0x80] sm:$0xff] %vm637_vm0, %v1629_v42  ;;  %v1597_v35 = vadd.f32 %v2962_v0, %v1526_v28  ;;  %v1429_v12 = vmul.f32 %v2045_v55, %v2809_v6  ;;  %v1305_v51 = vadd.f32 1e-05, %v1241_v54  ;;  %v1106_v15 = vpop.xlane.xlu1 %1105  ;;  %v1199_v4 = vpop.xlane.xlu0 %1198 }
 0x265   :  { %v1630_v21 = vmax.f32 %v1566_v43, 0.0  ;;  %v1527_v62 = vmul.f32 %v2956_v36, %v1456_v49  ;;  %2058 = vrsqrt.f32 %v1332_v33  ;;  %v1242_v40 = vmul.f32 0.03125, %v1106_v15 }
 0x266   :  { %v2047_v1 = vpop.eup %2046  ;;  %v1661_v53 = vmax.f32 %v1597_v35, 0.0  ;;  %v1500_v22 = vmul.f32 %v2956_v36, %v1429_v12  ;;  %2060 = vrsqrt.f32 %v1305_v51  ;;  %v1273_v30 = vmul.f32 0.03125, %v1199_v4  ;;  %v3512_v51 = vld [vmem:[#allocation18_spill] sm:$0xff] }
 0x267   :  { %v2049_v9 = vpop.eup %2048  ;;  %1694 = vst.msk [vmem:[%s3426_s5 + $0x88] sm:$0xff] %vm637_vm0, %v1630_v21  ;;  %v1598_v6 = vadd.f32 %v2962_v0, %v1527_v62  ;;  %v1430_v32 = vmul.f32 %v2047_v1, %v2806_v7  ;;  %v1306_v5 = vadd.f32 1e-05, %v1242_v40  ;;  %v3513_v62 = vld [vmem:[#allocation2_spill] sm:$0xff] }
 0x268   :  { %1725 = vst.msk [vmem:[%s3426_s5 + $0x180] sm:$0xff] %vm637_vm0, %v1661_v53  ;;  %v1571_v13 = vadd.f32 %v2962_v0, %v1500_v22  ;;  %v1461_v34 = vmul.f32 %v2049_v9, %v2822_v37  ;;  %v1337_v17 = vadd.f32 1e-05, %v1273_v30  ;;  %v1202_v24 = vpop.xlane.xlu1 %1201  ;;  %v1097_v14 = vpop.xlane.xlu0 %1096 }
 0x269   :  { %v1662_v11 = vmax.f32 %v1598_v6, 0.0  ;;  %v1501_v59 = vmul.f32 %v2956_v36, %v1430_v32  ;;  %2062 = vrsqrt.f32 %v1306_v5  ;;  %v1274_v25 = vmul.f32 0.03125, %v1202_v24 }
 0x26a   :  { %v2051_v45 = vpop.eup %2050  ;;  %v1635_v7 = vmax.f32 %v1571_v13, 0.0  ;;  %v1532_v48 = vmul.f32 %v2956_v36, %v1461_v34  ;;  %2064 = vrsqrt.f32 %v1337_v17  ;;  %v1239_v29 = vmul.f32 0.03125, %v1097_v14  ;;  %v3514_v17 = vld [vmem:[#allocation3_spill] sm:$0xff] }
 0x26b   :  { %v2053_v2 = vpop.eup %2052  ;;  %1726 = vst.msk [vmem:[%s3426_s5 + $0x188] sm:$0xff] %vm637_vm0, %v1662_v11  ;;  %v1572_v37 = vadd.f32 %v2962_v0, %v1501_v59  ;;  %v1462_v19 = vmul.f32 %v2051_v45, %v2819_v18  ;;  %v1338_v23 = vadd.f32 1e-05, %v1274_v25  ;;  %v3515_v59 = vld [vmem:[#allocation4_spill] sm:$0xff] }
 0x26c   :  { %1699 = vst.msk [vmem:[%s3426_s5 + $0xb0] sm:$0xff] %vm637_vm0, %v1635_v7  ;;  %v1603_v63 = vadd.f32 %v2962_v0, %v1532_v48  ;;  %v1427_v60 = vmul.f32 %v2053_v2, %v2833_v27  ;;  %v1303_v10 = vadd.f32 1e-05, %v1239_v29  ;;  %v1100_v44 = vpop.xlane.xlu1 %1099  ;;  %v1193_v41 = vpop.xlane.xlu0 %1192 }
 0x26d   :  { %v1636_v31 = vmax.f32 %v1572_v37, 0.0  ;;  %v1533_v16 = vmul.f32 %v2956_v36, %v1462_v19  ;;  %2066 = vrsqrt.f32 %v1338_v23  ;;  %v1240_v26 = vmul.f32 0.03125, %v1100_v44  ;;  %v3516_v44 = vld [vmem:[#allocation5_spill] sm:$0xff] }
 0x26e   :  { %v2055_v39 = vpop.eup %2054  ;;  %v1667_v18 = vmax.f32 %v1603_v63, 0.0  ;;  %v1498_v38 = vmul.f32 %v2956_v36, %v1427_v60  ;;  %2068 = vrsqrt.f32 %v1303_v10  ;;  %v1271_v47 = vmul.f32 0.03125, %v1193_v41 }
 0x26f   :  { %v2057_v3 = vpop.eup %2056  ;;  %1700 = vst.msk [vmem:[%s3426_s5 + $0xb8] sm:$0xff] %vm637_vm0, %v1636_v31  ;;  %v1604_v27 = vadd.f32 %v2962_v0, %v1533_v16  ;;  %v1428_v58 = vmul.f32 %v2055_v39, %v3510_v52  ;;  %v1304_v50 = vadd.f32 1e-05, %v1240_v26 }
 0x270   :  { %1731 = vst.msk [vmem:[%s3426_s5 + $0x1b0] sm:$0xff] %vm637_vm0, %v1667_v18  ;;  %v1569_v20 = vadd.f32 %v2962_v0, %v1498_v38  ;;  %v1459_v56 = vmul.f32 %v2057_v3, %v3511_v57  ;;  %v1335_v8 = vadd.f32 1e-05, %v1271_v47  ;;  %v1196_v46 = vpop.xlane.xlu1 %1195  ;;  %v1115_v61 = vpop.xlane.xlu0 %1114  ;;  %v3317_v3 = vld [vmem:[%s3424_s3] ss:$0 sm:$0xff] }
 0x271   :  { %v1668_v42 = vmax.f32 %v1604_v27, 0.0  ;;  %v1499_v28 = vmul.f32 %v2956_v36, %v1428_v58  ;;  %2070 = vrsqrt.f32 %v1304_v50  ;;  %v1272_v54 = vmul.f32 0.03125, %v1196_v46  ;;  %v3518_v46 = vld [vmem:[#allocation7_spill] sm:$0xff] }
 0x272   :  { %v2059_v55 = vpop.eup %2058  ;;  %v1633_v43 = vmax.f32 %v1569_v20, 0.0  ;;  %v1530_v49 = vmul.f32 %v2956_v36, %v1459_v56  ;;  %2072 = vrsqrt.f32 %v1335_v8  ;;  %v1245_v33 = vmul.f32 0.03125, %v1115_v61  ;;  %v3328_v56 = vld [vmem:[%s3425_s4] ss:$0 sm:$0xff] }
 0x273   :  { %v2061_v35 = vpop.eup %2060  ;;  %1732 = vst.msk [vmem:[%s3426_s5 + $0x1b8] sm:$0xff] %vm637_vm0, %v1668_v42  ;;  %v1570_v12 = vadd.f32 %v2962_v0, %v1499_v28  ;;  %v1460_v15 = vmul.f32 %v2059_v55, %v3512_v51  ;;  %v1336_v4 = vadd.f32 1e-05, %v1272_v54  ;;  %v3519_v54 = vld [vmem:[#allocation8_spill] sm:$0xff] }
 0x274   :  { %1697 = vst.msk [vmem:[%s3426_s5 + $0xa0] sm:$0xff] %vm637_vm0, %v1633_v43  ;;  %v1601_v21 = vadd.f32 %v2962_v0, %v1530_v49  ;;  %v1433_v40 = vmul.f32 %v2061_v35, %v3513_v62  ;;  %v1309_v1 = vadd.f32 1e-05, %v1245_v33  ;;  %v1118_v53 = vpop.xlane.xlu1 %1117 }
 0x275   :  { %v1634_v22 = vmax.f32 %v1570_v12, 0.0  ;;  %v1531_v30 = vmul.f32 %v2956_v36, %v1460_v15  ;;  %2074 = vrsqrt.f32 %v1336_v4  ;;  %v1246_v9 = vmul.f32 0.03125, %v1118_v53  ;;  %v3520_v53 = vld [vmem:[#allocation20_spill] sm:$0xff] }
 0x276   :  { %v2063_v6 = vpop.eup %2062  ;;  %v1665_v32 = vmax.f32 %v1601_v21, 0.0  ;;  %v1504_v5 = vmul.f32 %v2956_v36, %v1433_v40  ;;  %2076 = vrsqrt.f32 %v1309_v1 }
 0x277   :  { %v2065_v13 = vpop.eup %2064  ;;  %1698 = vst.msk [vmem:[%s3426_s5 + $0xa8] sm:$0xff] %vm637_vm0, %v1634_v22  ;;  %v1602_v34 = vadd.f32 %v2962_v0, %v1531_v30  ;;  %v1434_v24 = vmul.f32 %v2063_v6, %v3514_v17  ;;  %v1310_v14 = vadd.f32 1e-05, %v1246_v9  ;;  %v3521_v6 = vld [vmem:[#allocation9_spill] sm:$0xff] }
 0x278   :  { %1729 = vst.msk [vmem:[%s3426_s5 + $0x1a0] sm:$0xff] %vm637_vm0, %v1665_v32  ;;  %v1575_v11 = vadd.f32 %v2962_v0, %v1504_v5  ;;  %v1465_v25 = vmul.f32 %v2065_v13, %v3515_v59  ;;  %v1112_v45 = vpop.xlane.xlu1 %1111  ;;  %v1109_v7 = vpop.xlane.xlu0 %1108  ;;  %v3522_v59 = vld [vmem:[#allocation21_spill] sm:$0xff] }
 0x279   :  { %v1666_v48 = vmax.f32 %v1602_v34, 0.0  ;;  %v1505_v29 = vmul.f32 %v2956_v36, %v1434_v24  ;;  %2078 = vrsqrt.f32 %v1310_v14  ;;  %v1244_v2 = vmul.f32 0.03125, %v1112_v45 }
 0x27a   :  { %v2067_v37 = vpop.eup %2066  ;;  %v1639_v19 = vmax.f32 %v1575_v11, 0.0  ;;  %v1536_v23 = vmul.f32 %v2956_v36, %v1465_v25  ;;  %v1243_v63 = vmul.f32 0.03125, %v1109_v7  ;;  %v3517_v36 = vld [vmem:[#allocation6_spill] sm:$0xff] }
 0x27b   :  { %v2069_v60 = vpop.eup %2068  ;;  %1730 = vst.msk [vmem:[%s3426_s5 + $0x1a8] sm:$0xff] %vm637_vm0, %v1666_v48  ;;  %v1576_v10 = vadd.f32 %v2962_v0, %v1505_v29  ;;  %v1466_v41 = vmul.f32 %v2067_v37, %v3516_v44  ;;  %v1308_v31 = vadd.f32 1e-05, %v1244_v2 }
 0x27c   :  { %1703 = vst.msk [vmem:[%s3426_s5 + $0xd0] sm:$0xff] %vm637_vm0, %v1639_v19  ;;  %v1607_v16 = vadd.f32 %v2962_v0, %v1536_v23  ;;  %v1431_v26 = vmul.f32 %v2069_v60, %v3517_v36  ;;  %v1307_v39 = vadd.f32 1e-05, %v1243_v63  ;;  %v1208_v18 = vpop.xlane.xlu1 %1207  ;;  %v1205_v38 = vpop.xlane.xlu0 %1204  ;;  %v3523_v23 = vld [vmem:[#allocation13_spill] sm:$0xff]  ;;  %v3524_v60 = vld [vmem:[#allocation12_spill] sm:$0xff] }
 0x27d   :  { %v1640_v47 = vmax.f32 %v1576_v10, 0.0  ;;  %v1537_v27 = vmul.f32 %v3317_v3, %v1466_v41  ;;  %2080 = vrsqrt.f32 %v1308_v31  ;;  %v1276_v52 = vmul.f32 0.03125, %v1208_v18 }
 0x27e   :  { %v2071_v58 = vpop.eup %2070  ;;  %v1671_v50 = vmax.f32 %v1607_v16, 0.0  ;;  %v1502_v20 = vmul.f32 %v3317_v3, %v1431_v26  ;;  %2082 = vrsqrt.f32 %v1307_v39  ;;  %v1275_v0 = vmul.f32 0.03125, %v1205_v38  ;;  %v3525_v39 = vld [vmem:[#allocation14_spill] sm:$0xff] }
 0x27f   :  { %v2073_v57 = vpop.eup %2072  ;;  %1704 = vst.msk [vmem:[%s3426_s5 + $0xd8] sm:$0xff] %vm637_vm0, %v1640_v47  ;;  %v1608_v8 = vadd.f32 %v3328_v56, %v1537_v27  ;;  %v1432_v61 = vmul.f32 %v2071_v58, %v3518_v46  ;;  %v1340_v42 = vadd.f32 1e-05, %v1276_v52  ;;  %v3526_v47 = vld [vmem:[#allocation22_spill] sm:$0xff]  ;;  %v3527_v46 = vld [vmem:[#allocation11_spill] sm:$0xff] }
 0x280   :  { %1735 = vst.msk [vmem:[%s3426_s5 + $0x1d0] sm:$0xff] %vm637_vm0, %v1671_v50  ;;  %v1573_v28 = vadd.f32 %v3328_v56, %v1502_v20  ;;  %v1463_v55 = vmul.f32 %v2073_v57, %v3519_v54  ;;  %v1339_v43 = vadd.f32 1e-05, %v1275_v0  ;;  %v1214_v49 = vpop.xlane.xlu1 %1213  ;;  %v1211_v33 = vpop.xlane.xlu0 %1210 }
 0x281   :  { %v1672_v35 = vmax.f32 %v1608_v8, 0.0  ;;  %v1503_v12 = vmul.f32 %v3317_v3, %v1432_v61  ;;  %2084 = vrsqrt.f32 %v1340_v42  ;;  %v1278_v51 = vmul.f32 0.03125, %v1214_v49 }
 0x282   :  { %v2075_v15 = vpop.eup %2074  ;;  %v1637_v4 = vmax.f32 %v1573_v28, 0.0  ;;  %v1534_v21 = vmul.f32 %v3317_v3, %v1463_v55  ;;  %2086 = vrsqrt.f32 %v1339_v43  ;;  %v1277_v62 = vmul.f32 0.03125, %v1211_v33  ;;  %v3528_v28 = vld [vmem:[#allocation10_spill] sm:$0xff] }
 0x283   :  { %v2077_v40 = vpop.eup %2076  ;;  %1736 = vst.msk [vmem:[%s3426_s5 + $0x1d8] sm:$0xff] %vm637_vm0, %v1672_v35  ;;  %v1574_v1 = vadd.f32 %v3328_v56, %v1503_v12  ;;  %v1464_v22 = vmul.f32 %v2075_v15, %v3520_v53  ;;  %v1342_v30 = vadd.f32 1e-05, %v1278_v51 }
 0x284   :  { %1701 = vst.msk [vmem:[%s3426_s5 + $0xc0] sm:$0xff] %vm637_vm0, %v1637_v4  ;;  %v1605_v9 = vadd.f32 %v3328_v56, %v1534_v21  ;;  %v1437_v32 = vmul.f32 %v2077_v40, %v3521_v6  ;;  %v1341_v5 = vadd.f32 1e-05, %v1277_v62 }
 0x285   :  { %v1638_v13 = vmax.f32 %v1574_v1, 0.0  ;;  %v1535_v34 = vmul.f32 %v3317_v3, %v1464_v22  ;;  %2088 = vrsqrt.f32 %v1342_v30 }
 0x286   :  { %v2079_v17 = vpop.eup %2078  ;;  %v1669_v24 = vmax.f32 %v1605_v9, 0.0  ;;  %v1508_v14 = vmul.f32 %v3317_v3, %v1437_v32  ;;  %2090 = vrsqrt.f32 %v1341_v5 }
 0x287   :  { %1702 = vst.msk [vmem:[%s3426_s5 + $0xc8] sm:$0xff] %vm637_vm0, %v1638_v13  ;;  %v1606_v11 = vadd.f32 %v3328_v56, %v1535_v34  ;;  %v1438_v25 = vmul.f32 %v2079_v17, %v3522_v59 }
 0x288   :  { %1733 = vst.msk [vmem:[%s3426_s5 + $0x1c0] sm:$0xff] %vm637_vm0, %v1669_v24  ;;  %v1579_v45 = vadd.f32 %v3328_v56, %v1508_v14 }
 0x289   :  { %v1670_v7 = vmax.f32 %v1606_v11, 0.0  ;;  %v1509_v48 = vmul.f32 %v3317_v3, %v1438_v25 }
 0x28a   :  { %v2081_v29 = vpop.eup %2080  ;;  %v1643_v2 = vmax.f32 %v1579_v45, 0.0 }
 0x28b   :  { %v2083_v37 = vpop.eup %2082  ;;  %1734 = vst.msk [vmem:[%s3426_s5 + $0x1c8] sm:$0xff] %vm637_vm0, %v1670_v7  ;;  %v1580_v19 = vadd.f32 %v3328_v56, %v1509_v48  ;;  %v1436_v63 = vmul.f32 %v2081_v29, %v3523_v23 }
 0x28c   :  { %1707 = vst.msk [vmem:[%s3426_s5 + $0xf0] sm:$0xff] %vm637_vm0, %v1643_v2  ;;  %v1435_v10 = vmul.f32 %v2083_v37, %v3524_v60 }
 0x28d   :  { %v1644_v44 = vmax.f32 %v1580_v19, 0.0  ;;  %v1507_v41 = vmul.f32 %v3317_v3, %v1436_v63 }
 0x28e   :  { %v2085_v31 = vpop.eup %2084  ;;  %v1506_v16 = vmul.f32 %v3317_v3, %v1435_v10 }
 0x28f   :  { %v2087_v36 = vpop.eup %2086  ;;  %1708 = vst.msk [vmem:[%s3426_s5 + $0xf8] sm:$0xff] %vm637_vm0, %v1644_v44  ;;  %v1578_v26 = vadd.f32 %v3328_v56, %v1507_v41  ;;  %v1468_v18 = vmul.f32 %v2085_v31, %v3525_v39 }
 0x290   :  { %v1577_v38 = vadd.f32 %v3328_v56, %v1506_v16  ;;  %v1467_v27 = vmul.f32 %v2087_v36, %v3526_v47 }
 0x291   :  { %v1642_v52 = vmax.f32 %v1578_v26, 0.0  ;;  %v1539_v58 = vmul.f32 %v3317_v3, %v1468_v18 }
 0x292   :  { %v2089_v50 = vpop.eup %2088  ;;  %v1641_v20 = vmax.f32 %v1577_v38, 0.0  ;;  %v1538_v0 = vmul.f32 %v3317_v3, %v1467_v27 }
 0x293   :  { %v2091_v57 = vpop.eup %2090  ;;  %1706 = vst.msk [vmem:[%s3426_s5 + $0xe8] sm:$0xff] %vm637_vm0, %v1642_v52  ;;  %v1610_v8 = vadd.f32 %v3328_v56, %v1539_v58  ;;  %v1470_v61 = vmul.f32 %v2089_v50, %v3527_v46 }
 0x294   :  { %1705 = vst.msk [vmem:[%s3426_s5 + $0xe0] sm:$0xff] %vm637_vm0, %v1641_v20  ;;  %v1609_v42 = vadd.f32 %v3328_v56, %v1538_v0  ;;  %v1469_v54 = vmul.f32 %v2091_v57, %v3528_v28 }
 0x295   :  { %v1674_v55 = vmax.f32 %v1610_v8, 0.0  ;;  %v1541_v43 = vmul.f32 %v3317_v3, %v1470_v61 }
 0x296   :  { %v1673_v49 = vmax.f32 %v1609_v42, 0.0  ;;  %v1540_v33 = vmul.f32 %v3317_v3, %v1469_v54 }
 0x297   :  { %1738 = vst.msk [vmem:[%s3426_s5 + $0x1e8] sm:$0xff] %vm637_vm0, %v1674_v55  ;;  %v1612_v35 = vadd.f32 %v3328_v56, %v1541_v43 }
 0x298   :  { %1737 = vst.msk [vmem:[%s3426_s5 + $0x1e0] sm:$0xff] %vm637_vm0, %v1673_v49  ;;  %v1611_v12 = vadd.f32 %v3328_v56, %v1540_v33 }
 0x299   :  { %v1676_v51 = vmax.f32 %v1612_v35, 0.0 }
 0x29a   :  { %v1675_v15 = vmax.f32 %v1611_v12, 0.0 }
 0x29b   :  { %1740 = vst.msk [vmem:[%s3426_s5 + $0x1f8] sm:$0xff] %vm637_vm0, %v1676_v51 }
 0x29c   :  { %1739 = vst.msk [vmem:[%s3426_s5 + $0x1f0] sm:$0xff] %vm637_vm0, %v1675_v15 }

// kernel: ppo_planner_forward.5
= control target key start
LH: loop header
LB: loop body
LE: loop exit
PB: predicated region body
PF: predicated region fallthrough
CT: control target
= control target key end

     0   :  { %vm574_vm0 = vcmask 523264   ;;  %s1594_s1 = inlined_call_operand.vmem [shape: bf16[384,64], index: 1, kind: input, shape index: {}]   ;;  %s1595_s0 = inlined_call_operand.vmem [shape: bf16[128,384], index: 0, kind: input, shape index: {}]   ;;  %s1596_s2 = inlined_call_operand.vmem [shape: f32[1,64], index: 2, kind: input, shape index: {}]   ;;  %s1597_s3 = inlined_call_operand.vmem [shape: f32[1,64], index: 3, kind: input, shape index: {}]   ;;  %s1598_s4 = inlined_call_operand.vmem [shape: f32[1,64], index: 4, kind: input, shape index: {}]   ;;  %s1599_s5 = inlined_call_operand.vmem [shape: f32[128,64], index: 5, kind: output, shape index: {}]  }
   0x1   :  { %v1029_v0 = vld [vmem:[%s1594_s1 + $0x78] sm:$0xff]   ;;  %v1031_v2 = vld [vmem:[%s1594_s1 + $0x70] sm:$0xff]   ;;  %v1034_v5 = vld [vmem:[%s1594_s1 + $0x68] sm:$0xff]  }
   0x2   :  { %v1030_v1 = vld [vmem:[%s1594_s1 + $0x38] sm:$0xff]   ;;  %917 = vmatprep.subr.bf16.mxu0 %v1029_v0  ;;  %v1033_v4 = vld [vmem:[%s1594_s1 + $0x30] sm:$0xff]   ;;  %v1036_v7 = vld [vmem:[%s1594_s1 + $0x28] sm:$0xff]  }
   0x3   :  { %918 = vmatpush3.bf16.msra.mxu0 %v1030_v1  ;;  %v1032_v3 = vld [vmem:[%s1594_s1 + $0xb8] sm:$0xff]   ;;  %v1035_v6 = vld [vmem:[%s1594_s1 + $0xb0] sm:$0xff]   ;;  %v1037_v8 = vld [vmem:[%s1594_s1 + $0x60] sm:$0xff]  }
   0x4   :  { %919 = vmatprep.subr.bf16.mxu0 %v1031_v2  ;;  %997 = vmatprep.subr.bf16.mxu1 %v1032_v3  ;;  %v1038_v9 = vld [vmem:[%s1594_s1 + $0xa8] sm:$0xff]   ;;  %v1039_v10 = vld [vmem:[%s1594_s1 + $0x20] sm:$0xff]   ;;  %v1040_v11 = vld [vmem:[%s1594_s1 + $0x58] sm:$0xff]  }
   0x5   :  { %998 = vmatpush3.bf16.msra.mxu1 %v1032_v3  ;;  %v1041_v12 = vld [vmem:[%s1594_s1 + $0xa0] sm:$0xff]   ;;  %v1042_v13 = vld [vmem:[%s1594_s1 + $0x18] sm:$0xff]   ;;  %v1043_v15 = vld [vmem:[%s1594_s1 + $0x50] sm:$0xff]  }
   0x6   :  { %999 = vmatprep.subr.bf16.mxu1 %v1035_v6  ;;  %v1044_v14 = vld [vmem:[%s1594_s1 + $0x98] sm:$0xff]   ;;  %v1045_v16 = vld [vmem:[%s1594_s1 + $0x10] sm:$0xff]   ;;  %v1046_v18 = vld [vmem:[%s1594_s1 + $0x48] sm:$0xff]  }
   0x7   :  { %920 = vmatpush3.bf16.msra.mxu0 %v1033_v4  ;;  %v1047_v17 = vld [vmem:[%s1594_s1 + $0x90] sm:$0xff]   ;;  %v1048_v19 = vld [vmem:[%s1594_s1 + $0x8] sm:$0xff]   ;;  %v1049_v20 = vld [vmem:[%s1594_s1 + $0x40] sm:$0xff]  }
   0x8   :  { %921 = vmatprep.subr.bf16.mxu0 %v1034_v5  ;;  %v1050_v21 = vld [vmem:[%s1594_s1 + $0x88] sm:$0xff]   ;;  %v1054_v22 = vld [vmem:[%s1595_s0 + $0x4] ss:$12 sps:$4 sm:$0xff]   ;;  %v1061_v31 = vld [vmem:[%s1595_s0 + $0x34] ss:$12 sps:$4 sm:$0xff]  }
   0x9   :  { %1000 = vmatpush3.bf16.msra.mxu1 %v1035_v6  ;;  %v1051_v23 = vld [vmem:[%s1594_s1] sm:$0xff]   ;;  %412 = vmatprep.mubr.bf16.mxu0 %v1054_v22  ;;  %v1056_v24 = vld [vmem:[%s1595_s0 + $0x8] ss:$12 sps:$4 sm:$0xff]   ;;  %v1065_v32 = vld [vmem:[%s1595_s0 + $0x50] ss:$12 sps:$4 sm:$0xff]  }
   0xa   :  { %1001 = vmatprep.subr.bf16.mxu1 %v1038_v9  ;;  %v1055_v25 = vld [vmem:[%s1594_s1 + $0x80] sm:$0xff]   ;;  %1013 = vmatprep.mubr.bf16.mxu1 %v1056_v24  ;;  %v1058_v27 = vld [vmem:[%s1595_s0 + $0x1c] ss:$12 sps:$4 sm:$0xff]   ;;  %v1066_v35 = vld [vmem:[%s1595_s0 + $0x4c] ss:$12 sps:$4 sm:$0xff]  }
   0xb   :  { %922 = vmatpush3.bf16.msra.mxu0 %v1036_v7  ;;  %v1052_v26 = vld [vmem:[%s1595_s0] ss:$12 sps:$4 sm:$0xff]   ;;  %v1064_v29 = vld [vmem:[%s1595_s0 + $0x38] ss:$12 sps:$4 sm:$0xff]   ;;  %v1072_v33 = vld [vmem:[%s1595_s0 + $0x68] ss:$12 sps:$4 sm:$0xff]  }
   0xc   :  { %923 = vmatprep.subr.bf16.mxu0 %v1037_v8  ;;  %v1057_v28 = vld [vmem:[%s1595_s0 + $0x20] ss:$12 sps:$4 sm:$0xff]   ;;  %v1060_v30 = vld [vmem:[%s1595_s0 + $0x18] ss:$12 sps:$4 sm:$0xff]   ;;  %v1063_v34 = vld [vmem:[%s1595_s0 + $0x30] ss:$12 sps:$4 sm:$0xff]  }
   0xd   :  { %1002 = vmatpush3.bf16.msra.mxu1 %v1038_v9  ;;  %v1073_v36 = vld [vmem:[%s1595_s0 + $0x80] ss:$12 sps:$4 sm:$0xff]   ;;  %v1080_v37 = vld [vmem:[%s1595_s0 + $0x98] ss:$12 sps:$4 sm:$0xff]   ;;  %v1068_v38 = vld [vmem:[%s1595_s0 + $0x48] ss:$12 sps:$4 sm:$0xff]  }
   0xe   :  { %1003 = vmatprep.subr.bf16.mxu1 %v1041_v12  ;;  %v1069_v39 = vld [vmem:[%s1595_s0 + $0x64] ss:$12 sps:$4 sm:$0xff]   ;;  %v1071_v41 = vld [vmem:[%s1595_s0 + $0x60] ss:$12 sps:$4 sm:$0xff]   ;;  %v1074_v42 = vld [vmem:[%s1595_s0 + $0x7c] ss:$12 sps:$4 sm:$0xff]  }
   0xf   :  { %924 = vmatpush3.bf16.msra.mxu0 %v1039_v10  ;;  %v1081_v40 = vld [vmem:[%s1595_s0 + $0xb0] ss:$12 sps:$4 sm:$0xff]   ;;  %v1076_v43 = vld [vmem:[%s1595_s0 + $0x78] ss:$12 sps:$4 sm:$0xff]   ;;  %v1077_v44 = vld [vmem:[%s1595_s0 + $0x94] ss:$12 sps:$4 sm:$0xff]  }
  0x10   :  { %925 = vmatprep.subr.bf16.mxu0 %v1040_v11  ;;  %v1079_v45 = vld [vmem:[%s1595_s0 + $0x90] ss:$12 sps:$4 sm:$0xff]   ;;  %v1082_v46 = vld [vmem:[%s1595_s0 + $0xac] ss:$12 sps:$4 sm:$0xff]   ;;  %v1084_v47 = vld [vmem:[%s1595_s0 + $0xa8] ss:$12 sps:$4 sm:$0xff]  }
  0x11   :  { %1004 = vmatpush3.bf16.msra.mxu1 %v1041_v12  ;;  %v1294_v50 = vld [vmem:[%s1596_s2] ss:$0 sm:$0xff] }
  0x12   :  { %1005 = vmatprep.subr.bf16.mxu1 %v1044_v14 }
  0x13   :  { %926 = vmatpush3.bf16.msra.mxu0 %v1042_v13 }
  0x14   :  { %927 = vmatprep.subr.bf16.mxu0 %v1043_v15 }
  0x15   :  { %1006 = vmatpush3.bf16.msra.mxu1 %v1044_v14 }
  0x16   :  { %1007 = vmatprep.subr.bf16.mxu1 %v1047_v17 }
  0x17   :  { %928 = vmatpush3.bf16.msra.mxu0 %v1045_v16 }
  0x18   :  { %929 = vmatprep.subr.bf16.mxu0 %v1046_v18 }
  0x19   :  { %1008 = vmatpush3.bf16.msra.mxu1 %v1047_v17 }
  0x1a   :  { %1009 = vmatprep.subr.bf16.mxu1 %v1050_v21 }
  0x1b   :  { %930 = vmatpush3.bf16.msra.mxu0 %v1048_v19 }
  0x1c   :  { %931 = vmatprep.subr.bf16.mxu0 %v1049_v20 }
  0x1d   :  { %1010 = vmatpush3.bf16.msra.mxu1 %v1050_v21 }
  0x1e   :  { %1011 = vmatprep.subr.bf16.mxu1 %v1055_v25 }
  0x1f   :  { %932 = vmatpush3.bf16.msra.mxu0 %v1051_v23 }
  0x21   :  { %1012 = vmatpush3.bf16.msra.mxu1 %v1055_v25 }
  0x22   :  { %413 = vmatmul.mubr.bf16.vlgmr.msra.gmra.mxu0 %v1052_v26 }
  0x23   :  { %420 = vmatprep.mubr.bf16.mxu0 %v1058_v27 }
  0x24   :  { %1014 = vmatmul.mubr.bf16.vlgmr.msra.gmra.mxu1 %v1057_v28 }
  0x25   :  { %1017 = vmatprep.mubr.bf16.mxu1 %v1064_v29 }
  0x2a   :  { %421 = vmatmul.mubr.bf16.gmra.mxu0 %v1060_v30 }
  0x2b   :  { %428 = vmatprep.mubr.bf16.mxu0 %v1061_v31 }
  0x2c   :  { %1018 = vmatmul.mubr.bf16.gmra.mxu1 %v1065_v32 }
  0x2d   :  { %1021 = vmatprep.mubr.bf16.mxu1 %v1072_v33 }
  0x32   :  { %429 = vmatmul.mubr.bf16.gmra.mxu0 %v1063_v34 }
  0x33   :  { %436 = vmatprep.mubr.bf16.mxu0 %v1066_v35 }
  0x34   :  { %1022 = vmatmul.mubr.bf16.gmra.mxu1 %v1073_v36 }
  0x35   :  { %1025 = vmatprep.mubr.bf16.mxu1 %v1080_v37 }
  0x3a   :  { %437 = vmatmul.mubr.bf16.gmra.mxu0 %v1068_v38 }
  0x3b   :  { %444 = vmatprep.mubr.bf16.mxu0 %v1069_v39 }
  0x3c   :  { %1026 = vmatmul.mubr.bf16.gmra.mxu1 %v1081_v40 }
  0x42   :  { %445 = vmatmul.mubr.bf16.gmra.mxu0 %v1071_v41 }
  0x43   :  { %452 = vmatprep.mubr.bf16.mxu0 %v1074_v42 }
  0x4a   :  { %453 = vmatmul.mubr.bf16.gmra.mxu0 %v1076_v43 }
  0x4b   :  { %460 = vmatprep.mubr.bf16.mxu0 %v1077_v44 }
  0x52   :  { %461 = vmatmul.mubr.bf16.gmra.mxu0 %v1079_v45 }
  0x53   :  { %468 = vmatprep.mubr.bf16.mxu0 %v1082_v46 }
  0x5a   :  { %469 = vmatmul.mubr.bf16.gmra.mxu0 %v1084_v47 }
  0xe2   :  { %v933_v48 = vpop.f32.mrf.mxu0 }
  0xe4   :  { %v934_v49 = vpop.f32.mrf.mxu0  ;;  %v1015_v52 = vpop.f32.mrf.mxu1 }
  0xe5   :  { %v935_v51 = vadd.f32 %v934_v49, %v933_v48 }
  0xe6   :  { %v936_v53 = vpop.f32.mrf.mxu0  ;;  %v511_v55 = vpop.f32.mrf.mxu1 }
  0xe7   :  { %v415_v54 = vadd.f32 %v935_v51, %v1294_v50 }
  0xe8   :  { %v937_v56 = vpop.f32.mrf.mxu0  ;;  %v1016_v59 = vpop.f32.mrf.mxu1 }
  0xe9   :  { %v938_v57 = vadd.f32 %v937_v56, %v936_v53  ;;  %v1297_v58 = vadd.f32 %v511_v55, %v415_v54 }
  0xea   :  { %v939_v60 = vpop.f32.mrf.mxu0  ;;  %v514_v62 = vpop.f32.mrf.mxu1 }
  0xeb   :  { %v418_v61 = vadd.f32 %v938_v57, %v1294_v50  ;;  %v575_v63 = vsel %vm574_vm0, %v1297_v58, 0.0 }
  0xec   :  { %v940_v0 = vpop.f32.mrf.mxu0  ;;  %576 = vadd.xlane.f32.xlu0 %v575_v63  ;;  %v1019_v4 = vpop.f32.mrf.mxu1 }
  0xed   :  { %v941_v1 = vadd.f32 %v940_v0, %v939_v60  ;;  %v1302_v2 = vadd.f32 %v514_v62, %v418_v61 }
  0xee   :  { %v942_v3 = vpop.f32.mrf.mxu0  ;;  %v527_v11 = vpop.f32.mrf.mxu1 }
  0xef   :  { %v423_v5 = vadd.f32 %v941_v1, %v1294_v50  ;;  %v578_v6 = vsel %vm574_vm0, %v1302_v2, 0.0 }
  0xf0   :  { %v943_v7 = vpop.f32.mrf.mxu0  ;;  %579 = vadd.xlane.f32.xlu0 %v578_v6  ;;  %v1020_v18 = vpop.f32.mrf.mxu1 }
  0xf1   :  { %v944_v8 = vadd.f32 %v943_v7, %v942_v3  ;;  %v1307_v9 = vadd.f32 %v1015_v52, %v423_v5 }
  0xf2   :  { %v945_v10 = vpop.f32.mrf.mxu0  ;;  %v530_v25 = vpop.f32.mrf.mxu1 }
  0xf3   :  { %v426_v12 = vadd.f32 %v944_v8, %v1294_v50  ;;  %v581_v13 = vsel %vm574_vm0, %v1307_v9, 0.0 }
  0xf4   :  { %v946_v14 = vpop.f32.mrf.mxu0  ;;  %582 = vadd.xlane.f32.xlu1 %v581_v13  ;;  %v1023_v32 = vpop.f32.mrf.mxu1 }
  0xf5   :  { %v947_v15 = vadd.f32 %v946_v14, %v945_v10  ;;  %v1312_v16 = vadd.f32 %v1016_v59, %v426_v12 }
  0xf6   :  { %v948_v17 = vpop.f32.mrf.mxu0  ;;  %v543_v39 = vpop.f32.mrf.mxu1 }
  0xf7   :  { %v431_v19 = vadd.f32 %v947_v15, %v1294_v50  ;;  %v584_v20 = vsel %vm574_vm0, %v1312_v16, 0.0 }
  0xf8   :  { %v949_v21 = vpop.f32.mrf.mxu0  ;;  %585 = vadd.xlane.f32.xlu1 %v584_v20  ;;  %v1024_v46 = vpop.f32.mrf.mxu1 }
  0xf9   :  { %v950_v22 = vadd.f32 %v949_v21, %v948_v17  ;;  %v1317_v23 = vadd.f32 %v527_v11, %v431_v19 }
  0xfa   :  { %v951_v24 = vpop.f32.mrf.mxu0  ;;  %v546_v54 = vpop.f32.mrf.mxu1 }
  0xfb   :  { %v434_v26 = vadd.f32 %v950_v22, %v1294_v50  ;;  %v587_v27 = vsel %vm574_vm0, %v1317_v23, 0.0 }
  0xfc   :  { %v952_v28 = vpop.f32.mrf.mxu0  ;;  %588 = vadd.xlane.f32.xlu0 %v587_v27  ;;  %v1027_v1 = vpop.f32.mrf.mxu1 }
  0xfd   :  { %v953_v29 = vadd.f32 %v952_v28, %v951_v24  ;;  %v1322_v30 = vadd.f32 %v530_v25, %v434_v26 }
  0xfe   :  { %v954_v31 = vpop.f32.mrf.mxu0  ;;  %v559_v10 = vpop.f32.mrf.mxu1 }
  0xff   :  { %v439_v33 = vadd.f32 %v953_v29, %v1294_v50  ;;  %v590_v34 = vsel %vm574_vm0, %v1322_v30, 0.0 }
 0x100   :  { %v955_v35 = vpop.f32.mrf.mxu0  ;;  %591 = vadd.xlane.f32.xlu1 %v590_v34 }
 0x101   :  { %v956_v36 = vadd.f32 %v955_v35, %v954_v31  ;;  %v1327_v37 = vadd.f32 %v1019_v4, %v439_v33 }
 0x102   :  { %v957_v38 = vpop.f32.mrf.mxu0 }
 0x103   :  { %v442_v40 = vadd.f32 %v956_v36, %v1294_v50  ;;  %v593_v41 = vsel %vm574_vm0, %v1327_v37, 0.0 }
 0x104   :  { %v958_v42 = vpop.f32.mrf.mxu0  ;;  %594 = vadd.xlane.f32.xlu0 %v593_v41 }
 0x105   :  { %v959_v43 = vadd.f32 %v958_v42, %v957_v38  ;;  %v1332_v44 = vadd.f32 %v1020_v18, %v442_v40  ;;  %v1028_v18 = vpop.f32.mrf.mxu1 }
 0x106   :  { %v960_v45 = vpop.f32.mrf.mxu0 }
 0x107   :  { %v447_v47 = vadd.f32 %v959_v43, %v1294_v50  ;;  %v596_v48 = vsel %vm574_vm0, %v1332_v44, 0.0  ;;  %v562_v25 = vpop.f32.mrf.mxu1 }
 0x108   :  { %v961_v49 = vpop.f32.mrf.mxu0  ;;  %597 = vadd.xlane.f32.xlu1 %v596_v48 }
 0x109   :  { %v962_v51 = vadd.f32 %v961_v49, %v960_v45  ;;  %v1337_v52 = vadd.f32 %v543_v39, %v447_v47 }
 0x10a   :  { %v963_v53 = vpop.f32.mrf.mxu0 }
 0x10b   :  { %v450_v55 = vadd.f32 %v962_v51, %v1294_v50  ;;  %v599_v56 = vsel %vm574_vm0, %v1337_v52, 0.0 }
 0x10c   :  { %v964_v57 = vpop.f32.mrf.mxu0  ;;  %600 = vadd.xlane.f32.xlu0 %v599_v56 }
 0x10d   :  { %v965_v59 = vadd.f32 %v964_v57, %v963_v53  ;;  %v1342_v60 = vadd.f32 %v546_v54, %v450_v55 }
 0x10e   :  { %v966_v61 = vpop.f32.mrf.mxu0 }
 0x10f   :  { %v455_v62 = vadd.f32 %v965_v59, %v1294_v50  ;;  %v602_v63 = vsel %vm574_vm0, %v1342_v60, 0.0 }
 0x110   :  { %v967_v0 = vpop.f32.mrf.mxu0  ;;  %603 = vadd.xlane.f32.xlu1 %v602_v63 }
 0x111   :  { %v968_v3 = vadd.f32 %v967_v0, %v966_v61  ;;  %v1347_v4 = vadd.f32 %v1023_v32, %v455_v62 }
 0x112   :  { %v969_v5 = vpop.f32.mrf.mxu0 }
 0x113   :  { %v458_v6 = vadd.f32 %v968_v3, %v1294_v50  ;;  %v605_v7 = vsel %vm574_vm0, %v1347_v4, 0.0 }
 0x114   :  { %v970_v8 = vpop.f32.mrf.mxu0  ;;  %606 = vadd.xlane.f32.xlu0 %v605_v7 }
 0x115   :  { %v971_v11 = vadd.f32 %v970_v8, %v969_v5  ;;  %v1352_v12 = vadd.f32 %v1024_v46, %v458_v6 }
 0x116   :  { %v972_v13 = vpop.f32.mrf.mxu0 }
 0x117   :  { %v463_v14 = vadd.f32 %v971_v11, %v1294_v50  ;;  %v608_v15 = vsel %vm574_vm0, %v1352_v12, 0.0 }
 0x118   :  { %v973_v17 = vpop.f32.mrf.mxu0  ;;  %609 = vadd.xlane.f32.xlu1 %v608_v15 }
 0x119   :  { %v1357_v19 = vadd.f32 %v559_v10, %v463_v14  ;;  %v974_v20 = vadd.f32 %v973_v17, %v972_v13 }
 0x11a   :  { %v975_v21 = vpop.f32.mrf.mxu0 }
 0x11b   :  { %v466_v22 = vadd.f32 %v974_v20, %v1294_v50  ;;  %v611_v24 = vsel %vm574_vm0, %v1357_v19, 0.0 }
 0x11c   :  { %v976_v26 = vpop.f32.mrf.mxu0  ;;  %612 = vadd.xlane.f32.xlu0 %v611_v24 }
 0x11d   :  { %v1362_v27 = vadd.f32 %v562_v25, %v466_v22  ;;  %v977_v28 = vadd.f32 %v976_v26, %v975_v21 }
 0x11e   :  { %v978_v29 = vpop.f32.mrf.mxu0 }
 0x11f   :  { %v471_v31 = vadd.f32 %v977_v28, %v1294_v50  ;;  %v614_v32 = vsel %vm574_vm0, %v1362_v27, 0.0 }
 0x120   :  { %v979_v33 = vpop.f32.mrf.mxu0  ;;  %615 = vadd.xlane.f32.xlu1 %v614_v32 }
 0x121   :  { %v980_v34 = vadd.f32 %v979_v33, %v978_v29  ;;  %v1367_v35 = vadd.f32 %v1027_v1, %v471_v31 }
 0x123   :  { %v474_v36 = vadd.f32 %v980_v34, %v1294_v50  ;;  %v617_v38 = vsel %vm574_vm0, %v1367_v35, 0.0 }
 0x124   :  { %618 = vadd.xlane.f32.xlu0 %v617_v38 }
 0x125   :  { %v1372_v39 = vadd.f32 %v1028_v18, %v474_v36 }
 0x127   :  { %v620_v40 = vsel %vm574_vm0, %v1372_v39, 0.0 }
 0x128   :  { %621 = vadd.xlane.f32.xlu1 %v620_v40 }
 0x175   :  { %v577_v41 = vpop.xlane.xlu0 %576 }
 0x176   :  { %v624_v42 = vmul.f32 0.015625, %v577_v41 }
 0x178   :  { %v1377_v43 = vsub.f32 %v1297_v58, %v624_v42 }
 0x179   :  { %v580_v45 = vpop.xlane.xlu0 %579 }
 0x17a   :  { %v625_v46 = vmul.f32 0.015625, %v580_v45  ;;  %v656_v50 = vmul.f32 %v1377_v43, %v1377_v43 }
 0x17c   :  { %v1382_v47 = vsub.f32 %v1302_v2, %v625_v46  ;;  %v672_v48 = vsel %vm574_vm0, %v656_v50, 0.0 }
 0x17d   :  { %v583_v49 = vpop.xlane.xlu1 %582  ;;  %673 = vadd.xlane.f32.xlu0 %v672_v48 }
 0x17e   :  { %v626_v51 = vmul.f32 0.015625, %v583_v49  ;;  %v657_v53 = vmul.f32 %v1382_v47, %v1382_v47 }
 0x180   :  { %v1388_v54 = vsub.f32 %v1307_v9, %v626_v51  ;;  %v675_v58 = vsel %vm574_vm0, %v657_v53, 0.0 }
 0x181   :  { %v586_v55 = vpop.xlane.xlu1 %585  ;;  %676 = vadd.xlane.f32.xlu1 %v675_v58 }
 0x182   :  { %v627_v56 = vmul.f32 0.015625, %v586_v55  ;;  %v658_v2 = vmul.f32 %v1388_v54, %v1388_v54 }
 0x184   :  { %v1394_v57 = vsub.f32 %v1312_v16, %v627_v56  ;;  %v678_v59 = vsel %vm574_vm0, %v658_v2, 0.0 }
 0x185   :  { %679 = vadd.xlane.f32.xlu0 %v678_v59  ;;  %v589_v61 = vpop.xlane.xlu0 %588 }
 0x186   :  { %v628_v62 = vmul.f32 0.015625, %v589_v61  ;;  %v659_v9 = vmul.f32 %v1394_v57, %v1394_v57 }
 0x188   :  { %v1400_v63 = vsub.f32 %v1317_v23, %v628_v62  ;;  %v681_v0 = vsel %vm574_vm0, %v659_v9, 0.0 }
 0x189   :  { %v592_v1 = vpop.xlane.xlu1 %591  ;;  %682 = vadd.xlane.f32.xlu1 %v681_v0 }
 0x18a   :  { %v629_v3 = vmul.f32 0.015625, %v592_v1  ;;  %v660_v16 = vmul.f32 %v1400_v63, %v1400_v63 }
 0x18c   :  { %v1406_v5 = vsub.f32 %v1322_v30, %v629_v3  ;;  %v684_v6 = vsel %vm574_vm0, %v660_v16, 0.0 }
 0x18d   :  { %685 = vadd.xlane.f32.xlu0 %v684_v6  ;;  %v595_v7 = vpop.xlane.xlu0 %594 }
 0x18e   :  { %v630_v8 = vmul.f32 0.015625, %v595_v7  ;;  %v661_v23 = vmul.f32 %v1406_v5, %v1406_v5 }
 0x190   :  { %v1412_v10 = vsub.f32 %v1327_v37, %v630_v8  ;;  %v687_v11 = vsel %vm574_vm0, %v661_v23, 0.0 }
 0x191   :  { %v598_v13 = vpop.xlane.xlu1 %597  ;;  %688 = vadd.xlane.f32.xlu1 %v687_v11 }
 0x192   :  { %v631_v14 = vmul.f32 0.015625, %v598_v13  ;;  %v662_v30 = vmul.f32 %v1412_v10, %v1412_v10 }
 0x194   :  { %v1418_v15 = vsub.f32 %v1332_v44, %v631_v14  ;;  %v690_v17 = vsel %vm574_vm0, %v662_v30, 0.0 }
 0x195   :  { %691 = vadd.xlane.f32.xlu0 %v690_v17  ;;  %v601_v18 = vpop.xlane.xlu0 %600 }
 0x196   :  { %v632_v20 = vmul.f32 0.015625, %v601_v18  ;;  %v663_v37 = vmul.f32 %v1418_v15, %v1418_v15 }
 0x198   :  { %v1424_v21 = vsub.f32 %v1337_v52, %v632_v20  ;;  %v693_v22 = vsel %vm574_vm0, %v663_v37, 0.0  ;;  %v1475_v20 = vld [vmem:[%s1597_s3] ss:$0 sm:$0xff] }
 0x199   :  { %v604_v24 = vpop.xlane.xlu1 %603  ;;  %694 = vadd.xlane.f32.xlu1 %v693_v22 }
 0x19a   :  { %v633_v25 = vmul.f32 0.015625, %v604_v24  ;;  %v664_v44 = vmul.f32 %v1424_v21, %v1424_v21  ;;  %v1481_v24 = vld [vmem:[%s1598_s4] ss:$0 sm:$0xff] }
 0x19c   :  { %v1430_v26 = vsub.f32 %v1342_v60, %v633_v25  ;;  %v696_v28 = vsel %vm574_vm0, %v664_v44, 0.0 }
 0x19d   :  { %697 = vadd.xlane.f32.xlu0 %v696_v28  ;;  %v607_v29 = vpop.xlane.xlu0 %606 }
 0x19e   :  { %v634_v31 = vmul.f32 0.015625, %v607_v29  ;;  %v665_v52 = vmul.f32 %v1430_v26, %v1430_v26 }
 0x1a0   :  { %v1436_v32 = vsub.f32 %v1347_v4, %v634_v31  ;;  %v699_v33 = vsel %vm574_vm0, %v665_v52, 0.0 }
 0x1a1   :  { %v610_v34 = vpop.xlane.xlu1 %609  ;;  %700 = vadd.xlane.f32.xlu1 %v699_v33 }
 0x1a2   :  { %v635_v36 = vmul.f32 0.015625, %v610_v34  ;;  %v666_v60 = vmul.f32 %v1436_v32, %v1436_v32 }
 0x1a4   :  { %v1442_v38 = vsub.f32 %v1352_v12, %v635_v36  ;;  %v702_v40 = vsel %vm574_vm0, %v666_v60, 0.0 }
 0x1a5   :  { %703 = vadd.xlane.f32.xlu0 %v702_v40  ;;  %v613_v41 = vpop.xlane.xlu0 %612 }
 0x1a6   :  { %v636_v42 = vmul.f32 0.015625, %v613_v41  ;;  %v667_v4 = vmul.f32 %v1442_v38, %v1442_v38 }
 0x1a8   :  { %v1448_v45 = vsub.f32 %v1357_v19, %v636_v42  ;;  %v705_v46 = vsel %vm574_vm0, %v667_v4, 0.0 }
 0x1a9   :  { %v616_v50 = vpop.xlane.xlu1 %615  ;;  %706 = vadd.xlane.f32.xlu1 %v705_v46 }
 0x1aa   :  { %v637_v48 = vmul.f32 0.015625, %v616_v50  ;;  %v668_v12 = vmul.f32 %v1448_v45, %v1448_v45 }
 0x1ac   :  { %v1454_v49 = vsub.f32 %v1362_v27, %v637_v48  ;;  %v708_v51 = vsel %vm574_vm0, %v668_v12, 0.0 }
 0x1ad   :  { %709 = vadd.xlane.f32.xlu0 %v708_v51  ;;  %v619_v53 = vpop.xlane.xlu0 %618 }
 0x1ae   :  { %v638_v58 = vmul.f32 0.015625, %v619_v53  ;;  %v669_v19 = vmul.f32 %v1454_v49, %v1454_v49 }
 0x1b0   :  { %v1460_v55 = vsub.f32 %v1367_v35, %v638_v58  ;;  %v711_v56 = vsel %vm574_vm0, %v669_v19, 0.0 }
 0x1b1   :  { %v622_v2 = vpop.xlane.xlu1 %621  ;;  %712 = vadd.xlane.f32.xlu1 %v711_v56 }
 0x1b2   :  { %v639_v59 = vmul.f32 0.015625, %v622_v2  ;;  %v670_v27 = vmul.f32 %v1460_v55, %v1460_v55 }
 0x1b4   :  { %v1466_v61 = vsub.f32 %v1372_v39, %v639_v59  ;;  %v714_v62 = vsel %vm574_vm0, %v670_v27, 0.0 }
 0x1b5   :  { %715 = vadd.xlane.f32.xlu0 %v714_v62 }
 0x1b6   :  { %v671_v9 = vmul.f32 %v1466_v61, %v1466_v61 }
 0x1b8   :  { %v717_v35 = vsel %vm574_vm0, %v671_v9, 0.0 }
 0x1b9   :  { %718 = vadd.xlane.f32.xlu1 %v717_v35 }
 0x206   :  { %v674_v0 = vpop.xlane.xlu0 %673 }
 0x207   :  { %v720_v1 = vmul.f32 0.015625, %v674_v0 }
 0x209   :  { %v736_v3 = vadd.f32 1e-05, %v720_v1 }
 0x20a   :  { %v677_v16 = vpop.xlane.xlu1 %676 }
 0x20b   :  { %1085 = vrsqrt.f32 %v736_v3  ;;  %v721_v6 = vmul.f32 0.015625, %v677_v16 }
 0x20d   :  { %v737_v7 = vadd.f32 1e-05, %v721_v6 }
 0x20e   :  { %v680_v8 = vpop.xlane.xlu0 %679 }
 0x20f   :  { %1087 = vrsqrt.f32 %v737_v7  ;;  %v722_v39 = vmul.f32 0.015625, %v680_v8 }
 0x211   :  { %v738_v23 = vadd.f32 1e-05, %v722_v39 }
 0x212   :  { %v683_v11 = vpop.xlane.xlu1 %682 }
 0x213   :  { %1089 = vrsqrt.f32 %v738_v23  ;;  %v723_v13 = vmul.f32 0.015625, %v683_v11 }
 0x215   :  { %v739_v14 = vadd.f32 1e-05, %v723_v13 }
 0x216   :  { %v686_v30 = vpop.xlane.xlu0 %685 }
 0x217   :  { %1091 = vrsqrt.f32 %v739_v14  ;;  %v724_v17 = vmul.f32 0.015625, %v686_v30 }
 0x218   :  { %v1086_v18 = vpop.eup %1085 }
 0x219   :  { %v768_v37 = vmul.f32 %v1086_v18, %v1377_v43  ;;  %v740_v22 = vadd.f32 1e-05, %v724_v17 }
 0x21a   :  { %v689_v25 = vpop.xlane.xlu1 %688 }
 0x21b   :  { %v791_v44 = vmul.f32 %v1475_v20, %v768_v37  ;;  %1093 = vrsqrt.f32 %v740_v22  ;;  %v725_v28 = vmul.f32 0.015625, %v689_v25 }
 0x21c   :  { %v1088_v29 = vpop.eup %1087 }
 0x21d   :  { %v814_v31 = vadd.f32 %v1481_v24, %v791_v44  ;;  %v769_v52 = vmul.f32 %v1088_v29, %v1382_v47  ;;  %v741_v33 = vadd.f32 1e-05, %v725_v28 }
 0x21e   :  { %v692_v34 = vpop.xlane.xlu0 %691 }
 0x21f   :  { %v830_v36 = vmax.f32 %v814_v31, 0.0  ;;  %v792_v43 = vmul.f32 %v1475_v20, %v769_v52  ;;  %1095 = vrsqrt.f32 %v741_v33  ;;  %v726_v60 = vmul.f32 0.015625, %v692_v34 }
 0x220   :  { %v1090_v40 = vpop.eup %1089 }
 0x221   :  { %846 = vst.msk [vmem:[%s1599_s5] sm:$0xff] %vm574_vm0, %v830_v36  ;;  %v815_v41 = vadd.f32 %v1481_v24, %v792_v43  ;;  %v770_v42 = vmul.f32 %v1090_v40, %v1388_v54  ;;  %v742_v4 = vadd.f32 1e-05, %v726_v60 }
 0x222   :  { %v695_v46 = vpop.xlane.xlu1 %694 }
 0x223   :  { %v831_v47 = vmax.f32 %v815_v41, 0.0  ;;  %v793_v50 = vmul.f32 %v1475_v20, %v770_v42  ;;  %1097 = vrsqrt.f32 %v742_v4  ;;  %v727_v48 = vmul.f32 0.015625, %v695_v46 }
 0x224   :  { %v1092_v12 = vpop.eup %1091 }
 0x225   :  { %847 = vst.msk [vmem:[%s1599_s5 + $0x8] sm:$0xff] %vm574_vm0, %v831_v47  ;;  %v816_v51 = vadd.f32 %v1481_v24, %v793_v50  ;;  %v771_v53 = vmul.f32 %v1092_v12, %v1394_v57  ;;  %v743_v58 = vadd.f32 1e-05, %v727_v48 }
 0x226   :  { %v698_v19 = vpop.xlane.xlu0 %697 }
 0x227   :  { %v832_v54 = vmax.f32 %v816_v51, 0.0  ;;  %v794_v56 = vmul.f32 %v1475_v20, %v771_v53  ;;  %1099 = vrsqrt.f32 %v743_v58  ;;  %v728_v2 = vmul.f32 0.015625, %v698_v19 }
 0x228   :  { %v1094_v59 = vpop.eup %1093 }
 0x229   :  { %848 = vst.msk [vmem:[%s1599_s5 + $0x10] sm:$0xff] %vm574_vm0, %v832_v54  ;;  %v817_v27 = vadd.f32 %v1481_v24, %v794_v56  ;;  %v772_v62 = vmul.f32 %v1094_v59, %v1400_v63  ;;  %v744_v9 = vadd.f32 1e-05, %v728_v2 }
 0x22a   :  { %v701_v35 = vpop.xlane.xlu1 %700 }
 0x22b   :  { %v833_v57 = vmax.f32 %v817_v27, 0.0  ;;  %v795_v0 = vmul.f32 %v1475_v20, %v772_v62  ;;  %1101 = vrsqrt.f32 %v744_v9  ;;  %v729_v1 = vmul.f32 0.015625, %v701_v35 }
 0x22c   :  { %v1096_v3 = vpop.eup %1095 }
 0x22d   :  { %849 = vst.msk [vmem:[%s1599_s5 + $0x18] sm:$0xff] %vm574_vm0, %v833_v57  ;;  %v818_v16 = vadd.f32 %v1481_v24, %v795_v0  ;;  %v773_v6 = vmul.f32 %v1096_v3, %v1406_v5  ;;  %v745_v7 = vadd.f32 1e-05, %v729_v1 }
 0x22e   :  { %v704_v8 = vpop.xlane.xlu0 %703 }
 0x22f   :  { %v834_v63 = vmax.f32 %v818_v16, 0.0  ;;  %v796_v39 = vmul.f32 %v1475_v20, %v773_v6  ;;  %1103 = vrsqrt.f32 %v745_v7  ;;  %v730_v23 = vmul.f32 0.015625, %v704_v8 }
 0x230   :  { %v1098_v11 = vpop.eup %1097 }
 0x231   :  { %850 = vst.msk [vmem:[%s1599_s5 + $0x20] sm:$0xff] %vm574_vm0, %v834_v63  ;;  %v819_v13 = vadd.f32 %v1481_v24, %v796_v39  ;;  %v774_v14 = vmul.f32 %v1098_v11, %v1412_v10  ;;  %v746_v30 = vadd.f32 1e-05, %v730_v23 }
 0x232   :  { %v707_v17 = vpop.xlane.xlu1 %706 }
 0x233   :  { %v835_v5 = vmax.f32 %v819_v13, 0.0  ;;  %v797_v18 = vmul.f32 %v1475_v20, %v774_v14  ;;  %1105 = vrsqrt.f32 %v746_v30  ;;  %v731_v37 = vmul.f32 0.015625, %v707_v17 }
 0x234   :  { %v1100_v22 = vpop.eup %1099 }
 0x235   :  { %851 = vst.msk [vmem:[%s1599_s5 + $0x28] sm:$0xff] %vm574_vm0, %v835_v5  ;;  %v820_v25 = vadd.f32 %v1481_v24, %v797_v18  ;;  %v775_v44 = vmul.f32 %v1100_v22, %v1418_v15  ;;  %v747_v28 = vadd.f32 1e-05, %v731_v37 }
 0x236   :  { %v710_v29 = vpop.xlane.xlu0 %709 }
 0x237   :  { %v836_v10 = vmax.f32 %v820_v25, 0.0  ;;  %v798_v31 = vmul.f32 %v1475_v20, %v775_v44  ;;  %1107 = vrsqrt.f32 %v747_v28  ;;  %v732_v52 = vmul.f32 0.015625, %v710_v29 }
 0x238   :  { %v1102_v33 = vpop.eup %1101 }
 0x239   :  { %852 = vst.msk [vmem:[%s1599_s5 + $0x30] sm:$0xff] %vm574_vm0, %v836_v10  ;;  %v821_v34 = vadd.f32 %v1481_v24, %v798_v31  ;;  %v776_v36 = vmul.f32 %v1102_v33, %v1424_v21  ;;  %v748_v43 = vadd.f32 1e-05, %v732_v52 }
 0x23a   :  { %v713_v60 = vpop.xlane.xlu1 %712 }
 0x23b   :  { %v837_v15 = vmax.f32 %v821_v34, 0.0  ;;  %v799_v40 = vmul.f32 %v1475_v20, %v776_v36  ;;  %1109 = vrsqrt.f32 %v748_v43  ;;  %v733_v41 = vmul.f32 0.015625, %v713_v60 }
 0x23c   :  { %v1104_v42 = vpop.eup %1103 }
 0x23d   :  { %853 = vst.msk [vmem:[%s1599_s5 + $0x38] sm:$0xff] %vm574_vm0, %v837_v15  ;;  %v822_v4 = vadd.f32 %v1481_v24, %v799_v40  ;;  %v777_v46 = vmul.f32 %v1104_v42, %v1430_v26  ;;  %v749_v47 = vadd.f32 1e-05, %v733_v41 }
 0x23e   :  { %v716_v50 = vpop.xlane.xlu0 %715 }
 0x23f   :  { %v838_v21 = vmax.f32 %v822_v4, 0.0  ;;  %v800_v48 = vmul.f32 %v1475_v20, %v777_v46  ;;  %1111 = vrsqrt.f32 %v749_v47  ;;  %v734_v12 = vmul.f32 0.015625, %v716_v50 }
 0x240   :  { %v1106_v51 = vpop.eup %1105 }
 0x241   :  { %854 = vst.msk [vmem:[%s1599_s5 + $0x40] sm:$0xff] %vm574_vm0, %v838_v21  ;;  %v823_v53 = vadd.f32 %v1481_v24, %v800_v48  ;;  %v778_v58 = vmul.f32 %v1106_v51, %v1436_v32  ;;  %v750_v19 = vadd.f32 1e-05, %v734_v12 }
 0x242   :  { %v719_v54 = vpop.xlane.xlu1 %718 }
 0x243   :  { %v839_v26 = vmax.f32 %v823_v53, 0.0  ;;  %v801_v56 = vmul.f32 %v1475_v20, %v778_v58  ;;  %1113 = vrsqrt.f32 %v750_v19  ;;  %v735_v2 = vmul.f32 0.015625, %v719_v54 }
 0x244   :  { %v1108_v59 = vpop.eup %1107 }
 0x245   :  { %855 = vst.msk [vmem:[%s1599_s5 + $0x48] sm:$0xff] %vm574_vm0, %v839_v26  ;;  %v824_v27 = vadd.f32 %v1481_v24, %v801_v56  ;;  %v779_v62 = vmul.f32 %v1108_v59, %v1442_v38  ;;  %v751_v9 = vadd.f32 1e-05, %v735_v2 }
 0x247   :  { %v840_v35 = vmax.f32 %v824_v27, 0.0  ;;  %v802_v32 = vmul.f32 %v1475_v20, %v779_v62  ;;  %1115 = vrsqrt.f32 %v751_v9 }
 0x248   :  { %v1110_v57 = vpop.eup %1109 }
 0x249   :  { %856 = vst.msk [vmem:[%s1599_s5 + $0x50] sm:$0xff] %vm574_vm0, %v840_v35  ;;  %v825_v0 = vadd.f32 %v1481_v24, %v802_v32  ;;  %v780_v1 = vmul.f32 %v1110_v57, %v1448_v45 }
 0x24b   :  { %v841_v3 = vmax.f32 %v825_v0, 0.0  ;;  %v803_v16 = vmul.f32 %v1475_v20, %v780_v1 }
 0x24c   :  { %v1112_v6 = vpop.eup %1111 }
 0x24d   :  { %857 = vst.msk [vmem:[%s1599_s5 + $0x58] sm:$0xff] %vm574_vm0, %v841_v3  ;;  %v826_v38 = vadd.f32 %v1481_v24, %v803_v16  ;;  %v781_v7 = vmul.f32 %v1112_v6, %v1454_v49 }
 0x24f   :  { %v842_v8 = vmax.f32 %v826_v38, 0.0  ;;  %v804_v63 = vmul.f32 %v1475_v20, %v781_v7 }
 0x250   :  { %v1114_v39 = vpop.eup %1113 }
 0x251   :  { %858 = vst.msk [vmem:[%s1599_s5 + $0x60] sm:$0xff] %vm574_vm0, %v842_v8  ;;  %v827_v45 = vadd.f32 %v1481_v24, %v804_v63  ;;  %v782_v23 = vmul.f32 %v1114_v39, %v1460_v55 }
 0x253   :  { %v843_v11 = vmax.f32 %v827_v45, 0.0  ;;  %v805_v13 = vmul.f32 %v1475_v20, %v782_v23 }
 0x254   :  { %v1116_v14 = vpop.eup %1115 }
 0x255   :  { %859 = vst.msk [vmem:[%s1599_s5 + $0x68] sm:$0xff] %vm574_vm0, %v843_v11  ;;  %v828_v49 = vadd.f32 %v1481_v24, %v805_v13  ;;  %v783_v30 = vmul.f32 %v1116_v14, %v1466_v61 }
 0x257   :  { %v844_v17 = vmax.f32 %v828_v49, 0.0  ;;  %v806_v5 = vmul.f32 %v1475_v20, %v783_v30 }
 0x259   :  { %860 = vst.msk [vmem:[%s1599_s5 + $0x70] sm:$0xff] %vm574_vm0, %v844_v17  ;;  %v829_v55 = vadd.f32 %v1481_v24, %v806_v5 }
 0x25b   :  { %v845_v18 = vmax.f32 %v829_v55, 0.0 }
 0x25d   :  { %861 = vst.msk [vmem:[%s1599_s5 + $0x78] sm:$0xff] %vm574_vm0, %v845_v18 }

// kernel: ppo_planner_forward.7
= control target key start
LH: loop header
LB: loop body
LE: loop exit
PB: predicated region body
PF: predicated region fallthrough
CT: control target
= control target key end

     0   :  { %v517_v2 = vmov 0.0   ;;  %vm518_vm0 = vmmov 0   ;;  %v519_v22 = vmov 0   ;;  %vm235_vm1 = vcmask 261120   ;;  %s683_s3 = inlined_call_operand.vmem [shape: f32[128,32], index: 3, kind: input, shape index: {}]   ;;  %s684_s0 = inlined_call_operand.vmem [shape: f32[32,128], index: 0, kind: input, shape index: {}]   ;;  %s685_s1 = inlined_call_operand.vmem [shape: f32[1,128], index: 1, kind: input, shape index: {}]   ;;  %s686_s2 = inlined_call_operand.<no memory space> [shape: f32[1,1], index: 2, kind: input, shape index: {}]   ;;  %s687_s4 = inlined_call_operand.vmem [shape: f32[1,32], index: 4, kind: input, shape index: {}]   ;;  %s688_s5 = inlined_call_operand.vmem [shape: f32[2,32], index: 5, kind: input, shape index: {}]   ;;  %s689_s6 = inlined_call_operand.vmem [shape: f32[32,1], index: 6, kind: input, shape index: {}]   ;;  %s690_s8 = inlined_call_operand.vmem [shape: f32[1,32], index: 8, kind: output, shape index: {0}]   ;;  %s691_s7 = inlined_call_operand.<no memory space> [shape: f32[1,1], index: 7, kind: input, shape index: {}]   ;;  %s692_s9 = inlined_call_operand.vmem [shape: f32[2,1], index: 9, kind: output, shape index: {1}]  }
   0x1   :  { %v137_v0 = vld [vmem:[%s683_s3 + $0x78] sm:$0xff]  ;;  %v136_v1 = vld [vmem:[%s683_s3 + $0x70] sm:$0xff]  ;;  %442 = vmatprep.subr.mxu0 %v517_v2  ;;  %v135_v3 = vld [vmem:[%s683_s3 + $0x68] sm:$0xff]  ;;  %450 = vmatprep.mubr.msk.f32.mxu0 %vm518_vm0, %v517_v2  ;;  %v15_v23 = vstv %s686_s2  ;;  %v46_v42 = vlaneseq  ;;  %vm120_vm2 = vcmask 253952   ;;  %vm393_vm3 = vcmask 1024  }
   0x2   :  { %453 = vmatprep.subr.mxu1 %v137_v0  ;;  %v134_v4 = vld [vmem:[%s683_s3 + $0x60] sm:$0xff]  ;;  %v133_v6 = vld [vmem:[%s683_s3 + $0x58] sm:$0xff]  ;;  %v132_v8 = vld [vmem:[%s683_s3 + $0x50] sm:$0xff]  ;;  %516 = vset.pattern.permute.xlu0 %v519_v22  ;;  %16 = vst [vmem:[#allocation2] sm:$0x1] %v15_v23  ;;  %v17_v51 = vstv %s691_s7 }
   0x3   :  { %454 = vmatpush3.msra.mxu1 %v137_v0  ;;  %v35_v5 = vld [vmem:[%s684_s0] sm:$0xff]  ;;  %v38_v7 = vld [vmem:[%s684_s0 + $0x18] sm:$0xff]  ;;  %v131_v9 = vld [vmem:[%s683_s3 + $0x48] sm:$0xff]  ;;  %v47_v43 = vshrl.u32 %v46_v42, 7  ;;  %18 = vst [vmem:[#allocation3] sm:$0x1] %v17_v51 }
   0x4   :  { %455 = vmatprep.subr.mxu1 %v136_v1  ;;  %485 = vmatprep.mubr.f32.mxu1 %v35_v5  ;;  %v37_v10 = vld [vmem:[%s684_s0 + $0x10] sm:$0xff]  ;;  %v130_v11 = vld [vmem:[%s683_s3 + $0x40] sm:$0xff]  ;;  %v129_v12 = vld [vmem:[%s683_s3 + $0x38] sm:$0xff] }
   0x5   :  { %456 = vmatpush3.msra.mxu1 %v136_v1  ;;  %443 = vmatpush3.xpose.msra.mxu0 %v38_v7  ;;  %v36_v13 = vld [vmem:[%s684_s0 + $0x8] sm:$0xff]  ;;  %v128_v14 = vld [vmem:[%s683_s3 + $0x30] sm:$0xff]  ;;  %v126_v16 = vld [vmem:[%s683_s3 + $0x20] sm:$0xff]  ;;  %v48_v44 = vsub.s32 0, %v47_v43 }
   0x6   :  { %457 = vmatprep.subr.mxu1 %v135_v3  ;;  %444 = vmatprep.subr.mxu0 %v517_v2  ;;  %v127_v15 = vld [vmem:[%s683_s3 + $0x28] sm:$0xff]  ;;  %v125_v17 = vld [vmem:[%s683_s3 + $0x18] sm:$0xff]  ;;  %v124_v18 = vld [vmem:[%s683_s3 + $0x10] sm:$0xff] }
   0x7   :  { %458 = vmatpush3.msra.mxu1 %v135_v3  ;;  %v123_v19 = vld [vmem:[%s683_s3 + $0x8] sm:$0xff]  ;;  %v122_v20 = vld [vmem:[%s683_s3] sm:$0xff]  ;;  %v312_v39 = vld [vmem:[%s689_s6 + $0x18] sm:$0xff] }
   0x8   :  { %459 = vmatprep.subr.mxu1 %v134_v4  ;;  %v39_v21 = vld [vmem:[%s685_s1] sm:$0x1]  ;;  %v311_v40 = vld [vmem:[%s689_s6 + $0x10] sm:$0xff]  ;;  %v310_v41 = vld [vmem:[%s689_s6 + $0x8] sm:$0xff] }
   0x9   :  { %460 = vmatpush3.msra.mxu1 %v134_v4  ;;  %445 = vmatpush3.xpose.msra.mxu0 %v37_v10  ;;  %v40_v24 = vld [vmem:[#allocation2] sm:$0x1] }
   0xa   :  { %461 = vmatprep.subr.mxu1 %v133_v6  ;;  %446 = vmatprep.subr.mxu0 %v517_v2  ;;  %v403_v27 = vld [vmem:[%s687_s4] ss:$0 sm:$0xff]  ;;  %v405_v54 = vld [vmem:[#allocation3] ss:$0 sm:$0xff] }
   0xb   :  { %462 = vmatpush3.msra.mxu1 %v133_v6  ;;  %43 = vperm.xlu0 %516, %v40_v24   ;;  %v234_v38 = vld [vmem:[%s688_s5] sm:$0x3] }
   0xc   :  { %463 = vmatprep.subr.mxu1 %v132_v8  ;;  %v309_v50 = vld [vmem:[%s689_s6] sm:$0xff] }
   0xd   :  { %464 = vmatpush3.msra.mxu1 %v132_v8  ;;  %447 = vmatpush3.xpose.msra.mxu0 %v36_v13 }
   0xe   :  { %465 = vmatprep.subr.mxu1 %v131_v9  ;;  %448 = vmatprep.subr.mxu0 %v517_v2 }
   0xf   :  { %466 = vmatpush3.msra.mxu1 %v131_v9 }
  0x10   :  { %467 = vmatprep.subr.mxu1 %v130_v11 }
  0x11   :  { %468 = vmatpush3.msra.mxu1 %v130_v11  ;;  %449 = vmatpush3.xpose.msra.mxu0 %v35_v5 }
  0x12   :  { %469 = vmatprep.subr.mxu1 %v129_v12  ;;  %491 = vmatprep.subr.mxu0 %v517_v2 }
  0x13   :  { %470 = vmatpush3.msra.mxu1 %v129_v12 }
  0x14   :  { %471 = vmatprep.subr.mxu1 %v128_v14  ;;  %451 = vmatmul.mubr.f32.vlgmr.msra.gmra.mxu0 %v39_v21 }
  0x15   :  { %472 = vmatpush3.msra.mxu1 %v128_v14  ;;  %499 = vmatprep.mubr.msk.f32.mxu0 %vm518_vm0, %v517_v2 }
  0x16   :  { %473 = vmatprep.subr.mxu1 %v127_v15 }
  0x17   :  { %474 = vmatpush3.msra.mxu1 %v127_v15 }
  0x18   :  { %475 = vmatprep.subr.mxu1 %v126_v16 }
  0x19   :  { %476 = vmatpush3.msra.mxu1 %v126_v16 }
  0x1a   :  { %477 = vmatprep.subr.mxu1 %v125_v17 }
  0x1b   :  { %478 = vmatpush3.msra.mxu1 %v125_v17 }
  0x1c   :  { %479 = vmatprep.subr.mxu1 %v124_v18 }
  0x1d   :  { %480 = vmatpush3.msra.mxu1 %v124_v18 }
  0x1e   :  { %481 = vmatprep.subr.mxu1 %v123_v19 }
  0x1f   :  { %482 = vmatpush3.msra.mxu1 %v123_v19 }
  0x20   :  { %483 = vmatprep.subr.mxu1 %v122_v20 }
  0x21   :  { %484 = vmatpush3.msra.mxu1 %v122_v20 }
  0x22   :  { %486 = vmatmul.mubr.f32.vlgmr.msra.gmra.mxu1 %v36_v13 }
  0x23   :  { %488 = vmatprep.mubr.f32.mxu1 %v37_v10 }
  0x26   :  { %489 = vmatmul.mubr.f32.gmra.mxu1 %v38_v7 }
  0x86   :  { %v44_v45 = vpop.permute.xlu0 %43 }
  0x87   :  { %v49_v46 = vrot.slane %v44_v45, %v48_v44 }
  0xd4   :  { %v116_v47 = vpop.f32.mrf.mxu0 }
  0xd5   :  { %v117_v48 = vadd.f32 %v116_v47, %v49_v46 }
  0xd6   :  { %v452_v49 = vpop.f32.mrf.mxu0 }
  0xd7   :  { %121 = vst.msk [vmem:[%s690_s8] sm:$0x1] %vm120_vm2, %v117_v48 }
  0xe2   :  { %v487_v25 = vpop.f32.mrf.mxu1 }
  0xe3   :  { %v217_v31 = vadd.f32 %v487_v25, %v403_v27 }
  0xe4   :  { %v211_v26 = vpop.f32.mrf.mxu1 }
  0xe5   :  { %v212_v34 = vadd.f32 %v403_v27, %v211_v26  ;;  %v231_v36 = vmax.f32 %v217_v31, 0.0 }
  0xe6   :  { %v490_v28 = vpop.f32.mrf.mxu1 }
  0xe7   :  { %v227_v29 = vadd.f32 %v490_v28, %v403_v27  ;;  %v230_v37 = vmax.f32 %v212_v34, 0.0 }
  0xe8   :  { %v221_v30 = vpop.f32.mrf.mxu1 }
  0xe9   :  { %v233_v32 = vmax.f32 %v227_v29, 0.0  ;;  %v222_v33 = vadd.f32 %v403_v27, %v221_v30 }
  0xeb   :  { %v232_v35 = vmax.f32 %v222_v33, 0.0  ;;  %492 = vmatpush3.msra.mxu0 %v233_v32 }
  0xec   :  { %493 = vmatprep.subr.mxu0 %v517_v2 }
  0xed   :  { %494 = vmatpush3.msra.mxu0 %v232_v35 }
  0xee   :  { %495 = vmatprep.subr.mxu0 %v517_v2 }
  0xef   :  { %496 = vmatpush3.msra.mxu0 %v231_v36 }
  0xf0   :  { %497 = vmatprep.subr.mxu0 %v517_v2 }
  0xf1   :  { %498 = vmatpush3.msra.mxu0 %v230_v37 }
  0xf2   :  { %500 = vmatmul.mubr.msk.f32.vlgmr.msra.gmra.mxu0 %vm235_vm1, %v234_v38  ;;  %502 = vmatprep.subr.mxu0 %v517_v2 }
  0xf3   :  { %503 = vmatpush3.msra.mxu0 %v312_v39  ;;  %510 = vmatprep.mubr.msk.f32.mxu0 %vm518_vm0, %v517_v2 }
  0xf4   :  { %504 = vmatprep.subr.mxu0 %v517_v2 }
  0xf5   :  { %505 = vmatpush3.msra.mxu0 %v311_v40 }
  0xf6   :  { %506 = vmatprep.subr.mxu0 %v517_v2 }
  0xf7   :  { %507 = vmatpush3.msra.mxu0 %v310_v41 }
  0xf8   :  { %508 = vmatprep.subr.mxu0 %v517_v2 }
  0xf9   :  { %509 = vmatpush3.msra.mxu0 %v309_v50 }
 0x1b2   :  { %v305_v52 = vpop.f32.mrf.mxu0 }
 0x1b3   :  { %511 = vmatmul.mubr.msk.f32.vlgmr.msra.gmra.mxu0 %vm235_vm1, %v305_v52 }
 0x1b4   :  { %v501_v53 = vpop.f32.mrf.mxu0 }
 0x273   :  { %v389_v55 = vpop.f32.mrf.mxu0 }
 0x274   :  { %v390_v56 = vadd.f32 %v405_v54, %v389_v55 }
 0x275   :  { %v512_v57 = vpop.f32.mrf.mxu0 }
 0x276   :  { %394 = vst.msk [vmem:[%s692_s9] sm:$0x3] %vm393_vm3, %v390_v56 }

// kernel: ppo_planner_forward.6
= control target key start
LH: loop header
LB: loop body
LE: loop exit
PB: predicated region body
PF: predicated region fallthrough
CT: control target
= control target key end

     0   :  { %s1040_s1 = inlined_call_operand.vmem [shape: bf16[640,128], index: 1, kind: input, shape index: {}]   ;;  %s1041_s0 = inlined_call_operand.vmem [shape: bf16[32,640], index: 0, kind: input, shape index: {}]   ;;  %s1042_s2 = inlined_call_operand.vmem [shape: f32[1,128], index: 2, kind: input, shape index: {}]   ;;  %s1043_s3 = inlined_call_operand.vmem [shape: f32[1,128], index: 3, kind: input, shape index: {}]   ;;  %s1044_s4 = inlined_call_operand.vmem [shape: f32[1,128], index: 4, kind: input, shape index: {}]   ;;  %s1045_s5 = inlined_call_operand.vmem [shape: f32[32,128], index: 5, kind: output, shape index: {}]  }
   0x1   :  { %v777_v0 = vld [vmem:[%s1040_s1 + $0x78] sm:$0xff]   ;;  %v781_v4 = vld [vmem:[%s1040_s1 + $0x70] sm:$0xff]   ;;  %v785_v8 = vld [vmem:[%s1040_s1 + $0x68] sm:$0xff]  }
   0x2   :  { %v778_v1 = vld [vmem:[%s1040_s1 + $0x38] sm:$0xff]   ;;  %691 = vmatprep.subr.bf16.mxu0 %v777_v0  ;;  %v782_v5 = vld [vmem:[%s1040_s1 + $0x30] sm:$0xff]   ;;  %v786_v9 = vld [vmem:[%s1040_s1 + $0x28] sm:$0xff]  }
   0x3   :  { %v779_v2 = vld [vmem:[%s1040_s1 + $0xf8] sm:$0xff]   ;;  %692 = vmatpush3.bf16.msra.mxu0 %v778_v1  ;;  %v783_v6 = vld [vmem:[%s1040_s1 + $0xf0] sm:$0xff]   ;;  %v787_v10 = vld [vmem:[%s1040_s1 + $0xe8] sm:$0xff]  }
   0x4   :  { %v780_v3 = vld [vmem:[%s1040_s1 + $0xb8] sm:$0xff]   ;;  %719 = vmatprep.subr.bf16.mxu1 %v779_v2  ;;  %693 = vmatprep.subr.bf16.mxu0 %v781_v4  ;;  %v784_v7 = vld [vmem:[%s1040_s1 + $0xb0] sm:$0xff]   ;;  %v788_v11 = vld [vmem:[%s1040_s1 + $0xa8] sm:$0xff]  }
   0x5   :  { %720 = vmatpush3.bf16.msra.mxu1 %v780_v3  ;;  %v789_v12 = vld [vmem:[%s1040_s1 + $0x60] sm:$0xff]   ;;  %v793_v16 = vld [vmem:[%s1040_s1 + $0x58] sm:$0xff]   ;;  %v797_v20 = vld [vmem:[%s1040_s1 + $0x50] sm:$0xff]  }
   0x6   :  { %721 = vmatprep.subr.bf16.mxu1 %v783_v6  ;;  %v790_v13 = vld [vmem:[%s1040_s1 + $0x20] sm:$0xff]   ;;  %v794_v17 = vld [vmem:[%s1040_s1 + $0x18] sm:$0xff]   ;;  %v798_v21 = vld [vmem:[%s1040_s1 + $0x10] sm:$0xff]  }
   0x7   :  { %694 = vmatpush3.bf16.msra.mxu0 %v782_v5  ;;  %v791_v14 = vld [vmem:[%s1040_s1 + $0xe0] sm:$0xff]   ;;  %v795_v18 = vld [vmem:[%s1040_s1 + $0xd8] sm:$0xff]   ;;  %v799_v22 = vld [vmem:[%s1040_s1 + $0xd0] sm:$0xff]  }
   0x8   :  { %695 = vmatprep.subr.bf16.mxu0 %v785_v8  ;;  %v792_v15 = vld [vmem:[%s1040_s1 + $0xa0] sm:$0xff]   ;;  %v796_v19 = vld [vmem:[%s1040_s1 + $0x98] sm:$0xff]   ;;  %v800_v23 = vld [vmem:[%s1040_s1 + $0x90] sm:$0xff]  }
   0x9   :  { %722 = vmatpush3.bf16.msra.mxu1 %v784_v7  ;;  %v801_v24 = vld [vmem:[%s1040_s1 + $0x48] sm:$0xff]   ;;  %v805_v28 = vld [vmem:[%s1040_s1 + $0x40] sm:$0xff]   ;;  %v812_v34 = vld [vmem:[%s1040_s1 + $0x138] sm:$0xff]  }
   0xa   :  { %723 = vmatprep.subr.bf16.mxu1 %v787_v10  ;;  %v802_v25 = vld [vmem:[%s1040_s1 + $0x8] sm:$0xff]   ;;  %v806_v29 = vld [vmem:[%s1040_s1] sm:$0xff]   ;;  %v816_v37 = vld [vmem:[%s1040_s1 + $0x130] sm:$0xff]  }
   0xb   :  { %696 = vmatpush3.bf16.msra.mxu0 %v786_v9  ;;  %v803_v26 = vld [vmem:[%s1040_s1 + $0xc8] sm:$0xff]   ;;  %v807_v30 = vld [vmem:[%s1040_s1 + $0xc0] sm:$0xff]   ;;  %v819_v44 = vld [vmem:[%s1040_s1 + $0x118] sm:$0xff]  }
   0xc   :  { %697 = vmatprep.subr.bf16.mxu0 %v789_v12  ;;  %v804_v27 = vld [vmem:[%s1040_s1 + $0x88] sm:$0xff]   ;;  %v808_v31 = vld [vmem:[%s1041_s0] ss:$20 sps:$4 sm:$0xff]   ;;  %v810_v32 = vld [vmem:[%s1041_s0 + $0x4] ss:$20 sps:$4 sm:$0xff]  }
   0xd   :  { %724 = vmatpush3.bf16.msra.mxu1 %v788_v11  ;;  %v811_v33 = vld [vmem:[%s1040_s1 + $0x80] sm:$0xff]   ;;  %444 = vmatprep.mubr.bf16.mxu0 %v810_v32  ;;  %v813_v35 = vld [vmem:[%s1041_s0 + $0x8] ss:$20 sps:$4 sm:$0xff]   ;;  %v826_v46 = vld [vmem:[%s1040_s1 + $0x110] sm:$0xff]  }
   0xe   :  { %725 = vmatprep.subr.bf16.mxu1 %v791_v14  ;;  %v815_v36 = vld [vmem:[%s1041_s0 + $0xc] ss:$20 sps:$4 sm:$0xff]   ;;  %v822_v41 = vld [vmem:[%s1041_s0 + $0x28] ss:$20 sps:$4 sm:$0xff]   ;;  %v825_v43 = vld [vmem:[%s1041_s0 + $0x30] ss:$20 sps:$4 sm:$0xff]  }
   0xf   :  { %698 = vmatpush3.bf16.msra.mxu0 %v790_v13  ;;  %493 = vmatprep.mubr.bf16.mxu1 %v815_v36  ;;  %v817_v38 = vld [vmem:[%s1040_s1 + $0x128] sm:$0xff]   ;;  %v818_v39 = vld [vmem:[%s1040_s1 + $0x120] sm:$0xff]  }
  0x10   :  { %699 = vmatprep.subr.bf16.mxu0 %v793_v16  ;;  %v820_v40 = vld [vmem:[%s1041_s0 + $0x2c] ss:$20 sps:$4 sm:$0xff]   ;;  %v823_v42 = vld [vmem:[%s1041_s0 + $0x34] ss:$20 sps:$4 sm:$0xff]   ;;  %v829_v45 = vld [vmem:[%s1041_s0 + $0x10] ss:$20 sps:$4 sm:$0xff]  }
  0x11   :  { %726 = vmatpush3.bf16.msra.mxu1 %v792_v15  ;;  %v827_v47 = vld [vmem:[%s1040_s1 + $0x108] sm:$0xff]   ;;  %v828_v48 = vld [vmem:[%s1040_s1 + $0x100] sm:$0xff]  }
  0x12   :  { %727 = vmatprep.subr.bf16.mxu1 %v795_v18  ;;  %v830_v49 = vld [vmem:[%s1041_s0 + $0x38] ss:$20 sps:$4 sm:$0xff]   ;;  %v638_v3 = vld [vmem:[%s1042_s2] ss:$0 sm:$0xff] }
  0x13   :  { %700 = vmatpush3.bf16.msra.mxu0 %v794_v17 }
  0x14   :  { %701 = vmatprep.subr.bf16.mxu0 %v797_v20 }
  0x15   :  { %728 = vmatpush3.bf16.msra.mxu1 %v796_v19 }
  0x16   :  { %729 = vmatprep.subr.bf16.mxu1 %v799_v22 }
  0x17   :  { %702 = vmatpush3.bf16.msra.mxu0 %v798_v21 }
  0x18   :  { %703 = vmatprep.subr.bf16.mxu0 %v801_v24 }
  0x19   :  { %730 = vmatpush3.bf16.msra.mxu1 %v800_v23 }
  0x1a   :  { %731 = vmatprep.subr.bf16.mxu1 %v803_v26 }
  0x1b   :  { %704 = vmatpush3.bf16.msra.mxu0 %v802_v25 }
  0x1c   :  { %705 = vmatprep.subr.bf16.mxu0 %v805_v28 }
  0x1d   :  { %732 = vmatpush3.bf16.msra.mxu1 %v804_v27 }
  0x1e   :  { %733 = vmatprep.subr.bf16.mxu1 %v807_v30 }
  0x1f   :  { %706 = vmatpush3.bf16.msra.mxu0 %v806_v29 }
  0x20   :  { %757 = vmatprep.subr.bf16.mxu0 %v812_v34 }
  0x21   :  { %734 = vmatpush3.bf16.msra.mxu1 %v811_v33 }
  0x22   :  { %445 = vmatmul.mubr.bf16.vlgmr.msra.gmra.mxu0 %v808_v31 }
  0x23   :  { %758 = vmatpush3.bf16.msra.mxu0 %v812_v34  ;;  %452 = vmatprep.mubr.bf16.mxu0 %v820_v40 }
  0x24   :  { %494 = vmatmul.mubr.bf16.vlgmr.msra.gmra.mxu1 %v813_v35  ;;  %759 = vmatprep.subr.bf16.mxu0 %v816_v37 }
  0x25   :  { %501 = vmatprep.mubr.bf16.mxu1 %v823_v42 }
  0x27   :  { %760 = vmatpush3.bf16.msra.mxu0 %v816_v37 }
  0x28   :  { %761 = vmatprep.subr.bf16.mxu0 %v817_v38 }
  0x2a   :  { %453 = vmatmul.mubr.bf16.gmra.mxu0 %v822_v41 }
  0x2b   :  { %762 = vmatpush3.bf16.msra.mxu0 %v817_v38  ;;  %773 = vmatprep.mubr.bf16.mxu0 %v829_v45 }
  0x2c   :  { %763 = vmatprep.subr.bf16.mxu0 %v818_v39  ;;  %502 = vmatmul.mubr.bf16.gmra.mxu1 %v825_v43 }
  0x2f   :  { %764 = vmatpush3.bf16.msra.mxu0 %v818_v39 }
  0x30   :  { %765 = vmatprep.subr.bf16.mxu0 %v819_v44 }
  0x33   :  { %766 = vmatpush3.bf16.msra.mxu0 %v819_v44 }
  0x34   :  { %767 = vmatprep.subr.bf16.mxu0 %v826_v46 }
  0x37   :  { %768 = vmatpush3.bf16.msra.mxu0 %v826_v46 }
  0x38   :  { %769 = vmatprep.subr.bf16.mxu0 %v827_v47 }
  0x3b   :  { %770 = vmatpush3.bf16.msra.mxu0 %v827_v47 }
  0x3c   :  { %771 = vmatprep.subr.bf16.mxu0 %v828_v48 }
  0x3f   :  { %772 = vmatpush3.bf16.msra.mxu0 %v828_v48 }
  0x42   :  { %774 = vmatmul.mubr.bf16.vlgmr.msra.gmra.mxu0 %v830_v49 }
  0xe2   :  { %v707_v50 = vpop.f32.mrf.mxu0 }
  0xe4   :  { %v708_v51 = vpop.f32.mrf.mxu0  ;;  %v735_v52 = vpop.f32.mrf.mxu1 }
  0xe5   :  { %v709_v2 = vadd.f32 %v708_v51, %v707_v50 }
  0xe6   :  { %v710_v53 = vpop.f32.mrf.mxu0  ;;  %v736_v54 = vpop.f32.mrf.mxu1 }
  0xe7   :  { %v447_v8 = vadd.f32 %v709_v2, %v638_v3  ;;  %v737_v9 = vadd.f32 %v736_v54, %v735_v52 }
  0xe8   :  { %v711_v55 = vpop.f32.mrf.mxu0  ;;  %v738_v56 = vpop.f32.mrf.mxu1 }
  0xe9   :  { %v712_v10 = vadd.f32 %v711_v55, %v710_v53  ;;  %v496_v18 = vadd.f32 %v737_v9, %v447_v8 }
  0xea   :  { %v713_v57 = vpop.f32.mrf.mxu0  ;;  %v739_v58 = vpop.f32.mrf.mxu1 }
  0xeb   :  { %v450_v15 = vadd.f32 %v712_v10, %v638_v3  ;;  %v740_v16 = vadd.f32 %v739_v58, %v738_v56  ;;  %v689_v56 = vld [vmem:[%s1043_s3] ss:$0 sm:$0xff] }
  0xec   :  { %v714_v59 = vpop.f32.mrf.mxu0  ;;  %v741_v60 = vpop.f32.mrf.mxu1  ;;  %v690_v58 = vld [vmem:[%s1044_s4] ss:$0 sm:$0xff] }
  0xed   :  { %v715_v63 = vadd.f32 %v714_v59, %v713_v57  ;;  %v499_v24 = vadd.f32 %v740_v16, %v450_v15 }
  0xee   :  { %v716_v61 = vpop.f32.mrf.mxu0  ;;  %v742_v62 = vpop.f32.mrf.mxu1 }
  0xef   :  { %v455_v4 = vadd.f32 %v715_v63, %v638_v3  ;;  %v743_v5 = vadd.f32 %v742_v62, %v741_v60 }
  0xf0   :  { %v717_v0 = vpop.f32.mrf.mxu0  ;;  %v744_v1 = vpop.f32.mrf.mxu1 }
  0xf1   :  { %v718_v6 = vadd.f32 %v717_v0, %v716_v61  ;;  %v504_v13 = vadd.f32 %v743_v5, %v455_v4 }
  0xf2   :  { %v745_v7 = vpop.f32.mrf.mxu1 }
  0xf3   :  { %v458_v11 = vadd.f32 %v718_v6, %v638_v3  ;;  %v746_v12 = vadd.f32 %v745_v7, %v744_v1 }
  0xf5   :  { %v507_v21 = vadd.f32 %v746_v12, %v458_v11 }
 0x102   :  { %v775_v14 = vpop.f32.mrf.mxu0 }
 0x103   :  { %v553_v17 = vadd.f32 %v775_v14, %v504_v13 }
 0x104   :  { %v544_v19 = vpop.f32.mrf.mxu0 }
 0x105   :  { %v545_v20 = vadd.f32 %v544_v19, %v496_v18  ;;  %563 = vadd.xlane.f32.xlu1 %v553_v17 }
 0x106   :  { %v776_v22 = vpop.f32.mrf.mxu0 }
 0x107   :  { %v556_v23 = vadd.f32 %v776_v22, %v507_v21  ;;  %559 = vadd.xlane.f32.xlu0 %v545_v20 }
 0x108   :  { %v547_v25 = vpop.f32.mrf.mxu0 }
 0x109   :  { %v548_v26 = vadd.f32 %v547_v25, %v499_v24  ;;  %565 = vadd.xlane.f32.xlu1 %v556_v23 }
 0x10b   :  { %561 = vadd.xlane.f32.xlu0 %v548_v26 }
 0x18e   :  { %v564_v27 = vpop.xlane.xlu1 %563 }
 0x18f   :  { %v570_v29 = vmul.f32 0.0078125, %v564_v27 }
 0x190   :  { %v560_v28 = vpop.xlane.xlu0 %559 }
 0x191   :  { %v568_v30 = vmul.f32 0.0078125, %v560_v28  ;;  %v574_v34 = vsub.f32 %v553_v17, %v570_v29 }
 0x192   :  { %v566_v31 = vpop.xlane.xlu1 %565 }
 0x193   :  { %v572_v32 = vsub.f32 %v545_v20, %v568_v30  ;;  %v571_v35 = vmul.f32 0.0078125, %v566_v31  ;;  %v578_v40 = vmul.f32 %v574_v34, %v574_v34 }
 0x194   :  { %v562_v33 = vpop.xlane.xlu0 %561 }
 0x195   :  { %v569_v36 = vmul.f32 0.0078125, %v562_v33  ;;  %v576_v37 = vmul.f32 %v572_v32, %v572_v32  ;;  %v575_v39 = vsub.f32 %v556_v23, %v571_v35 }
 0x197   :  { %v573_v38 = vsub.f32 %v548_v26, %v569_v36  ;;  %580 = vadd.xlane.f32.xlu0 %v576_v37  ;;  %v579_v42 = vmul.f32 %v575_v39, %v575_v39 }
 0x199   :  { %v577_v41 = vmul.f32 %v573_v38, %v573_v38 }
 0x19b   :  { %584 = vadd.xlane.f32.xlu0 %v578_v40  ;;  %582 = vadd.xlane.f32.xlu1 %v577_v41 }
 0x19f   :  { %586 = vadd.xlane.f32.xlu1 %v579_v42 }
 0x220   :  { %v581_v43 = vpop.xlane.xlu0 %580 }
 0x221   :  { %v588_v44 = vmul.f32 0.0078125, %v581_v43 }
 0x223   :  { %v592_v45 = vadd.f32 1e-05, %v588_v44 }
 0x224   :  { %v583_v46 = vpop.xlane.xlu1 %582  ;;  %v585_v47 = vpop.xlane.xlu0 %584 }
 0x225   :  { %831 = vrsqrt.f32 %v592_v45  ;;  %v589_v48 = vmul.f32 0.0078125, %v583_v46  ;;  %v590_v49 = vmul.f32 0.0078125, %v585_v47 }
 0x227   :  { %v593_v50 = vadd.f32 1e-05, %v589_v48  ;;  %v594_v51 = vadd.f32 1e-05, %v590_v49 }
 0x228   :  { %v587_v52 = vpop.xlane.xlu1 %586 }
 0x229   :  { %833 = vrsqrt.f32 %v593_v50  ;;  %v591_v53 = vmul.f32 0.0078125, %v587_v52 }
 0x22a   :  { %835 = vrsqrt.f32 %v594_v51 }
 0x22b   :  { %v595_v54 = vadd.f32 1e-05, %v591_v53 }
 0x22d   :  { %837 = vrsqrt.f32 %v595_v54 }
 0x232   :  { %v832_v55 = vpop.eup %831 }
 0x233   :  { %v600_v57 = vmul.f32 %v832_v55, %v572_v32 }
 0x235   :  { %v611_v59 = vmul.f32 %v689_v56, %v600_v57 }
 0x236   :  { %v834_v60 = vpop.eup %833 }
 0x237   :  { %v836_v61 = vpop.eup %835  ;;  %v622_v62 = vadd.f32 %v690_v58, %v611_v59  ;;  %v601_v63 = vmul.f32 %v834_v60, %v573_v38 }
 0x238   :  { %v602_v0 = vmul.f32 %v836_v61, %v574_v34 }
 0x239   :  { %v626_v1 = vmax.f32 %v622_v62, 0.0  ;;  %v612_v2 = vmul.f32 %v689_v56, %v601_v63 }
 0x23a   :  { %v838_v3 = vpop.eup %837  ;;  %v613_v4 = vmul.f32 %v689_v56, %v602_v0 }
 0x23b   :  { %630 = vst [vmem:[%s1045_s5] sm:$0xff] %v626_v1  ;;  %v623_v5 = vadd.f32 %v690_v58, %v612_v2  ;;  %v603_v6 = vmul.f32 %v838_v3, %v575_v39 }
 0x23c   :  { %v624_v7 = vadd.f32 %v690_v58, %v613_v4 }
 0x23d   :  { %v627_v8 = vmax.f32 %v623_v5, 0.0  ;;  %v614_v9 = vmul.f32 %v689_v56, %v603_v6 }
 0x23e   :  { %v628_v10 = vmax.f32 %v624_v7, 0.0 }
 0x23f   :  { %631 = vst [vmem:[%s1045_s5 + $0x8] sm:$0xff] %v627_v8  ;;  %v625_v11 = vadd.f32 %v690_v58, %v614_v9 }
 0x240   :  { %632 = vst [vmem:[%s1045_s5 + $0x10] sm:$0xff] %v628_v10 }
 0x241   :  { %v629_v12 = vmax.f32 %v625_v11, 0.0 }
 0x243   :  { %633 = vst [vmem:[%s1045_s5 + $0x18] sm:$0xff] %v629_v12 }

</bundles_post_ra>
